<compile_context>
chip_gen: v7x
topology: tpu7x:2x2x1
jax: 0.10.0
libtpu: 0.0.40
codegen_flags: <defaults>
</compile_context>

<pallas_src>
import functools

import jax
import jax.numpy as jnp
from jax.experimental import pallas as pl
from jax.experimental.pallas import tpu as pltpu


# ---------------------------------------------------------------------------
# Fused whole-network kernel (one grid step == one image).
# ---------------------------------------------------------------------------
def _forward_kernel(x_ref, feat_ref, mask_ref, w_ref, b_ref, fcw_ref, fcb_ref,
                    logits_ref, extr_ref, pbuf, *, H, W1, W2, num_blocks):
    # Layout: transposed (width-major) padded grid, row pitch HP = H + 2.
    #   grid position (u, v): u = padded width index, v = padded height index
    #   flat index g = u * HP + v ; interior pixel (y, x) sits at g=(x+1)*HP+y+1
    #   conv output anchor a = x * HP + y ; tap (kh, kw) reads  a + kw*HP + kh
    #   anchor columns y in {H, H+1} are "junk" (masked to 0 -> they land back
    #   exactly on the grid's zero border when written at offset GOFF).
    f32 = jnp.float32
    HP = H + 2
    M1 = W1 * HP                      # conv1 anchors
    M2 = (W2 - 1) * HP + H            # layer1 anchors
    GOFF = HP + 1                     # grid offset of anchor 0
    FOFF = (W1 + 1) * HP              # feature slab offset

    # Zero the padded grid: lane-dense bf16 (C, SP2) -> a handful of vreg
    # stores per step (cheap, and robust under megacore grid splitting).
    pbuf[...] = jnp.zeros_like(pbuf)

    mask2 = mask_ref[...]             # (1, M2) f32, 0 on junk anchor columns
    mask1 = mask2[:, :M1]

    def conv3x3(idx, src, M, mask, residual=None):
        """3x3 / stride-1 / pad-1 conv + fused-BN bias (+ residual) + ReLU.

        src : (C, >= M + 2*HP + 2) bf16 flattened padded grid (value).
        Returns (C, M) f32 in anchor space, junk columns zeroed.
        """
        acc = None
        for kw in range(3):           # grid rows == image width
            for kh in range(3):       # grid cols == image height
                t = kw * 3 + kh
                off = kw * HP + kh
                d = jnp.dot(w_ref[idx, t], src[:, off:off + M],
                            preferred_element_type=f32)          # (C, M)
                acc = d if acc is None else acc + d
        out = acc + b_ref[idx]                                    # (C,1) bcast
        if residual is not None:
            out = out + residual.astype(f32)
        return jnp.maximum(out, 0.0) * mask

    # --- conv1 + bn1 + relu --------------------------------------------------
    h1 = conv3x3(0, x_ref[0], M1, mask1)                          # (C, M1) f32
    extr_ref[0] = h1.astype(extr_ref.dtype)                       # lane-dense

    # --- torch.cat((extracted, feature), dim=3): width concat == two
    #     contiguous row-slab writes in the width-major grid ------------------
    pbuf[:, GOFF:GOFF + M1] = h1.astype(pbuf.dtype)
    pbuf[:, FOFF:FOFF + feat_ref.shape[-1]] = feat_ref[0]

    # --- layer1: BasicBlocks (16 -> 16, stride 1, no downsample) -------------
    cur = None
    for blk in range(num_blocks):
        i1, i2 = 1 + 2 * blk, 2 + 2 * blk
        identity = pbuf[:, GOFF:GOFF + M2]                        # bf16, ~5 vregs
        out = conv3x3(i1, pbuf[...], M2, mask2)                   # conv1+bn1+relu
        pbuf[:, GOFF:GOFF + M2] = out.astype(pbuf.dtype)
        cur = conv3x3(i2, pbuf[...], M2, mask2, residual=identity)
        if blk + 1 < num_blocks:
            pbuf[:, GOFF:GOFF + M2] = cur.astype(pbuf.dtype)

    # --- AdaptiveAvgPool2d((1,1)) + Linear (junk anchors are zero, so a plain
    #     lane sum / (H*W2) is the exact mean over the valid pixels) ----------
    t = jnp.dot(fcw_ref[...], cur, preferred_element_type=f32)    # (nc, M2)
    logits = jnp.sum(t, axis=1, keepdims=True) * (1.0 / (H * W2)) + fcb_ref[...]
    logits_ref[0] = logits.astype(logits_ref.dtype)


# ---------------------------------------------------------------------------
# Wrapper: parameter repacking, input layout plumbing, single pallas_call.
# ---------------------------------------------------------------------------
def _fold_bn_into_conv(w_oihw, bn, cin_pad, eps=1e-5):
    """Fold BN scale into the conv weight (f32, exact) and reorder taps for
    the width-major grid: returns (w_taps (9, Cout, cin_pad), bias (Cout,))."""
    scale = bn["gamma"] / jnp.sqrt(bn["var"] + eps)
    bias = bn["beta"] - bn["mean"] * scale
    cout, cin = w_oihw.shape[0], w_oihw.shape[1]
    w = w_oihw * scale[:, None, None, None]
    if cin < cin_pad:
        w = jnp.pad(w, ((0, 0), (0, cin_pad - cin), (0, 0), (0, 0)))
    # kernel tap t = kw*3 + kh needs W[:, :, kh, kw] -> transpose OIHW to
    # (KW, KH, O, I) then flatten the two kernel dims.
    w = jnp.transpose(w, (3, 2, 0, 1)).reshape(9, cout, cin_pad)
    return w, bias


def resnet_client_forward(params, x_nchw, feature_nchw):
    x = x_nchw.astype(jnp.float32)
    feat = feature_nchw.astype(jnp.float32)
    N, cin, H, W1 = x.shape
    Wf = feat.shape[3]
    W2 = W1 + Wf
    C = params["conv1"].shape[0]                    # planes = 16
    nc = params["fc_w"].shape[0]
    HP = H + 2
    M1 = W1 * HP
    M2 = (W2 - 1) * HP + H
    XSP = (W1 + 4) * HP                             # conv1 input grid (with slack)
    FSP = Wf * HP
    SP2 = (W2 + 2) * HP

    # Inputs: transpose to width-major (N, C, W, H), zero-pad into the
    # flattened padded grids consumed by the kernel (layout plumbing in XLA).
    xT = jnp.transpose(x, (0, 1, 3, 2))                               # (N,cin,W1,H)
    x_pad = jnp.pad(xT, ((0, 0), (0, C - cin), (1, 3), (1, 1)))       # (N,C,W1+4,HP)
    x_pad = x_pad.reshape(N, C, XSP).astype(jnp.bfloat16)

    fT = jnp.transpose(feat, (0, 1, 3, 2))                            # (N,C,Wf,H)
    f_pad = jnp.pad(fT, ((0, 0), (0, 0), (0, 0), (1, 1)))             # (N,C,Wf,HP)
    f_pad = f_pad.reshape(N, C, FSP).astype(jnp.bfloat16)

    # Junk-anchor-column mask: anchor a is a real pixel iff (a % HP) < H.
    a_idx = jnp.arange(M2)
    mask = ((a_idx % HP) < H).astype(jnp.float32).reshape(1, M2)

    # Conv weights with BN scale folded (f32) then cast to bf16; fused biases.
    w_list, b_list = [], []
    w, b = _fold_bn_into_conv(params["conv1"], params["bn1"], C)
    w_list.append(w); b_list.append(b)
    for blk in params["blocks"]:
        w, b = _fold_bn_into_conv(blk["conv1"], blk["bn1"], C)
        w_list.append(w); b_list.append(b)
        w, b = _fold_bn_into_conv(blk["conv2"], blk["bn2"], C)
        w_list.append(w); b_list.append(b)
    nconv = len(w_list)
    w_all = jnp.stack(w_list).astype(jnp.bfloat16)                    # (5,9,C,C)
    b_all = jnp.stack(b_list).astype(jnp.float32).reshape(nconv, C, 1)
    fcw = params["fc_w"].astype(jnp.float32)                          # (nc, C)
    fcb = params["fc_b"].astype(jnp.float32).reshape(nc, 1)

    kernel = functools.partial(_forward_kernel, H=H, W1=W1, W2=W2,
                               num_blocks=len(params["blocks"]))

    logits_col, extr = pl.pallas_call(
        kernel,
        out_shape=(jax.ShapeDtypeStruct((N, nc, 1), jnp.float32),
                   jax.ShapeDtypeStruct((N, C, M1), jnp.float32)),
        grid=(N,),
        in_specs=[
            pl.BlockSpec((1, C, XSP), lambda n: (n, 0, 0)),           # x (padded)
            pl.BlockSpec((1, C, FSP), lambda n: (n, 0, 0)),           # feature
            pl.BlockSpec((1, M2), lambda n: (0, 0)),                  # junk mask
            pl.BlockSpec((nconv, 9, C, C), lambda n: (0, 0, 0, 0)),   # conv weights
            pl.BlockSpec((nconv, C, 1), lambda n: (0, 0, 0)),         # fused biases
            pl.BlockSpec((nc, C), lambda n: (0, 0)),                  # fc weight
            pl.BlockSpec((nc, 1), lambda n: (0, 0)),                  # fc bias
        ],
        out_specs=(
            pl.BlockSpec((1, nc, 1), lambda n: (n, 0, 0)),
            pl.BlockSpec((1, C, M1), lambda n: (n, 0, 0)),
        ),
        scratch_shapes=[pltpu.VMEM((C, SP2), jnp.bfloat16)],          # padded grid
        compiler_params=pltpu.CompilerParams(
            dimension_semantics=("parallel",)),
    )(x_pad, f_pad, mask, w_all, b_all, fcw, fcb)

    logits = logits_col.reshape(N, nc)
    # extracted: (N, C, W1, HP)[..., :H] is (N, C, W, H); NCHW needs (N, C, H, W).
    extracted = jnp.transpose(extr.reshape(N, C, W1, HP)[:, :, :, :H],
                              (0, 1, 3, 2))
    return logits, extracted


# ---------------------------------------------------------------------------
# Parameter init mirroring ResNetClient.__init__ (BasicBlock, layers=[2]).
# ---------------------------------------------------------------------------
def init_params(key, num_blocks=2, num_classes=10):
    keys = jax.random.split(key, 2 * num_blocks + 4)
    it = iter(keys)

    def kaiming(k, cout, cin, ks=3):
        fan_out = cout * ks * ks                      # mode='fan_out', relu
        std = (2.0 / fan_out) ** 0.5
        return std * jax.random.normal(k, (cout, cin, ks, ks), jnp.float32)

    def bn(c):
        return dict(gamma=jnp.ones((c,), jnp.float32),
                    beta=jnp.zeros((c,), jnp.float32),
                    mean=jnp.zeros((c,), jnp.float32),
                    var=jnp.ones((c,), jnp.float32))

    params = dict(conv1=kaiming(next(it), 16, 3), bn1=bn(16), blocks=[])
    for _ in range(num_blocks):                       # layer1: 16 -> 16, stride 1
        params["blocks"].append(dict(
            conv1=kaiming(next(it), 16, 16), bn1=bn(16),
            conv2=kaiming(next(it), 16, 16), bn2=bn(16)))
    kfc = 1.0 / (16 ** 0.5)                           # nn.Linear default init
    params["fc_w"] = jax.random.uniform(next(it), (num_classes, 16),
                                        jnp.float32, -kfc, kfc)
    params["fc_b"] = jax.random.uniform(next(it), (num_classes,),
                                        jnp.float32, -kfc, kfc)
    return params


# ---------------------------------------------------------------------------
# Pure-JAX reference (NCHW, mirrors the PyTorch forward) for verification.
# ---------------------------------------------------------------------------
def ref_forward(params, x, feature, eps=1e-5):
    def conv(a, w):
        return jax.lax.conv_general_dilated(
            a, w, (1, 1), ((1, 1), (1, 1)),
            dimension_numbers=("NCHW", "OIHW", "NCHW"))

    def bnf(a, p):
        s = p["gamma"] / jnp.sqrt(p["var"] + eps)
        b = p["beta"] - p["mean"] * s
        return a * s[None, :, None, None] + b[None, :, None, None]

    h = jax.nn.relu(bnf(conv(x, params["conv1"]), params["bn1"]))
    extracted = h
    h = jnp.concatenate([h, feature], axis=3)
    for bp in params["blocks"]:
        identity = h
        out = jax.nn.relu(bnf(conv(h, bp["conv1"]), bp["bn1"]))
        out = bnf(conv(out, bp["conv2"]), bp["bn2"]) + identity
        h = jax.nn.relu(out)
    pooled = jnp.mean(h, axis=(2, 3))
    logits = pooled @ params["fc_w"].T + params["fc_b"]
    return logits, extracted


if __name__ == "__main__":
    key = jax.random.PRNGKey(0)
    kp, kx, kf = jax.random.split(key, 3)
    params = init_params(kp, num_blocks=2, num_classes=10)

    # NCHW inputs: `feature` is concatenated along dim=3 (width), so it matches
    # the extracted features in (N, C, H).
    x = jax.random.normal(kx, (2, 3, 16, 16), jnp.float32)
    feature = jax.random.normal(kf, (2, 16, 16, 16), jnp.float32)

    logits, extracted = jax.jit(resnet_client_forward)(params, x, feature)
    jax.block_until_ready((logits, extracted))

    ref_logits, ref_extracted = ref_forward(params, x, feature)
    assert logits.shape == (2, 10) and extracted.shape == (2, 16, 16, 16)
    # bf16 MXU operands / bf16 activation storage (f32 accumulation) -> looser
    # tolerance than a pure-f32 reference.
    assert jnp.allclose(logits, ref_logits, atol=2e-2, rtol=2e-2), (
        float(jnp.max(jnp.abs(logits - ref_logits))))
    assert jnp.allclose(extracted, ref_extracted, atol=2e-2, rtol=2e-2), (
        float(jnp.max(jnp.abs(extracted - ref_extracted))))

    print("KERNEL_OK")
</pallas_src>

<mosaic_0001>
module attributes {stable_mosaic.version = 11 : i64} {
  func.func @_forward_kernel(%arg0: i32, %arg1: memref<1x16x360xbf16, #tpu.memory_space<vmem>>, %arg2: memref<1x16x288xbf16, #tpu.memory_space<vmem>>, %arg3: memref<1x574xf32, #tpu.memory_space<vmem>>, %arg4: memref<5x9x16x16xbf16, #tpu.memory_space<vmem>>, %arg5: memref<5x16x1xf32, #tpu.memory_space<vmem>>, %arg6: memref<10x16xf32, #tpu.memory_space<vmem>>, %arg7: memref<10x1xf32, #tpu.memory_space<vmem>>, %arg8: memref<1x10x1xf32, #tpu.memory_space<vmem>>, %arg9: memref<1x16x288xf32, #tpu.memory_space<vmem>>, %arg10: memref<16x612xbf16, #tpu.memory_space<vmem>>) attributes {dimension_semantics = [#tpu.dimension_semantics<parallel>], iteration_bounds = array<i64: 2>, scalar_prefetch = 0 : i64, scratch_operands = 1 : i64, tpu.core_type = #tpu.core_type<tc>, window_params = [{transform_indices = @transform_0, window_bounds = array<i64: 1, 16, 360>}, {transform_indices = @transform_1, window_bounds = array<i64: 1, 16, 288>}, {pipeline_mode = #tpu.pipeline_mode<synchronous>, transform_indices = @transform_2, window_bounds = array<i64: 1, 574>}, {pipeline_mode = #tpu.pipeline_mode<synchronous>, transform_indices = @transform_3, window_bounds = array<i64: 5, 9, 16, 16>}, {pipeline_mode = #tpu.pipeline_mode<synchronous>, transform_indices = @transform_4, window_bounds = array<i64: 5, 16, 1>}, {pipeline_mode = #tpu.pipeline_mode<synchronous>, transform_indices = @transform_5, window_bounds = array<i64: 10, 16>}, {pipeline_mode = #tpu.pipeline_mode<synchronous>, transform_indices = @transform_6, window_bounds = array<i64: 10, 1>}, {transform_indices = @transform_7, window_bounds = array<i64: 1, 10, 1>}, {transform_indices = @transform_8, window_bounds = array<i64: 1, 16, 288>}]} {
    %cst = arith.constant 0.000000e+00 : bf16
    %0 = vector.broadcast %cst : bf16 to vector<16x612xbf16>
    %c0 = arith.constant 0 : index
    %c0_0 = arith.constant 0 : index
    %1 = vector.load %arg10[%c0, %c0_0] : memref<16x612xbf16, #tpu.memory_space<vmem>>, vector<16x612xbf16>
    tpu.vector_store %arg10[%c0, %c0_0], %0 {strides = array<i32>} : memref<16x612xbf16, #tpu.memory_space<vmem>>, vector<16x612xbf16>,
    %c0_1 = arith.constant 0 : index
    %c0_2 = arith.constant 0 : index
    %2 = vector.load %arg3[%c0_1, %c0_2] : memref<1x574xf32, #tpu.memory_space<vmem>>, vector<1x574xf32>
    %3 = vector.extract_strided_slice %2 {offsets = [0, 0], sizes = [1, 288], strides = [1, 1]} : vector<1x574xf32> to vector<1x288xf32>
    %c0_3 = arith.constant 0 : index
    %c0_4 = arith.constant 0 : index
    %c0_5 = arith.constant 0 : index
    %4 = vector.load %arg1[%c0_3, %c0_4, %c0_5] : memref<1x16x360xbf16, #tpu.memory_space<vmem>>, vector<1x16x360xbf16>
    %5 = vector.shape_cast %4 : vector<1x16x360xbf16> to vector<16x360xbf16>
    %c0_6 = arith.constant 0 : index
    %c0_7 = arith.constant 0 : index
    %c0_8 = arith.constant 0 : index
    %c0_9 = arith.constant 0 : index
    %6 = vector.load %arg4[%c0_6, %c0_7, %c0_8, %c0_9] : memref<5x9x16x16xbf16, #tpu.memory_space<vmem>>, vector<1x1x16x16xbf16>
    %7 = vector.shape_cast %6 : vector<1x1x16x16xbf16> to vector<16x16xbf16>
    %8 = vector.extract_strided_slice %5 {offsets = [0, 0], sizes = [16, 288], strides = [1, 1]} : vector<16x360xbf16> to vector<16x288xbf16>
    %cst_10 = arith.constant dense<0.000000e+00> : vector<16x288xf32>
    %9 = tpu.matmul %7, %8, %cst_10 {dimension_numbers = #tpu.dot_dimension_numbers<[1], [0], [0], [1], [0, 0, 1, 1], [], []>} : vector<16x16xbf16>, vector<16x288xbf16>, vector<16x288xf32> -> vector<16x288xf32>
    %c0_11 = arith.constant 0 : index
    %c1 = arith.constant 1 : index
    %c0_12 = arith.constant 0 : index
    %c0_13 = arith.constant 0 : index
    %10 = vector.load %arg4[%c0_11, %c1, %c0_12, %c0_13] : memref<5x9x16x16xbf16, #tpu.memory_space<vmem>>, vector<1x1x16x16xbf16>
    %11 = vector.shape_cast %10 : vector<1x1x16x16xbf16> to vector<16x16xbf16>
    %12 = vector.extract_strided_slice %5 {offsets = [0, 1], sizes = [16, 288], strides = [1, 1]} : vector<16x360xbf16> to vector<16x288xbf16>
    %cst_14 = arith.constant dense<0.000000e+00> : vector<16x288xf32>
    %13 = tpu.matmul %11, %12, %cst_14 {dimension_numbers = #tpu.dot_dimension_numbers<[1], [0], [0], [1], [0, 0, 1, 1], [], []>} : vector<16x16xbf16>, vector<16x288xbf16>, vector<16x288xf32> -> vector<16x288xf32>
    %14 = arith.addf %9, %13 : vector<16x288xf32>
    %c0_15 = arith.constant 0 : index
    %c2 = arith.constant 2 : index
    %c0_16 = arith.constant 0 : index
    %c0_17 = arith.constant 0 : index
    %15 = vector.load %arg4[%c0_15, %c2, %c0_16, %c0_17] : memref<5x9x16x16xbf16, #tpu.memory_space<vmem>>, vector<1x1x16x16xbf16>
    %16 = vector.shape_cast %15 : vector<1x1x16x16xbf16> to vector<16x16xbf16>
    %17 = vector.extract_strided_slice %5 {offsets = [0, 2], sizes = [16, 288], strides = [1, 1]} : vector<16x360xbf16> to vector<16x288xbf16>
    %cst_18 = arith.constant dense<0.000000e+00> : vector<16x288xf32>
    %18 = tpu.matmul %16, %17, %cst_18 {dimension_numbers = #tpu.dot_dimension_numbers<[1], [0], [0], [1], [0, 0, 1, 1], [], []>} : vector<16x16xbf16>, vector<16x288xbf16>, vector<16x288xf32> -> vector<16x288xf32>
    %19 = arith.addf %14, %18 : vector<16x288xf32>
    %c0_19 = arith.constant 0 : index
    %c3 = arith.constant 3 : index
    %c0_20 = arith.constant 0 : index
    %c0_21 = arith.constant 0 : index
    %20 = vector.load %arg4[%c0_19, %c3, %c0_20, %c0_21] : memref<5x9x16x16xbf16, #tpu.memory_space<vmem>>, vector<1x1x16x16xbf16>
    %21 = vector.shape_cast %20 : vector<1x1x16x16xbf16> to vector<16x16xbf16>
    %22 = vector.extract_strided_slice %5 {offsets = [0, 18], sizes = [16, 288], strides = [1, 1]} : vector<16x360xbf16> to vector<16x288xbf16>
    %cst_22 = arith.constant dense<0.000000e+00> : vector<16x288xf32>
    %23 = tpu.matmul %21, %22, %cst_22 {dimension_numbers = #tpu.dot_dimension_numbers<[1], [0], [0], [1], [0, 0, 1, 1], [], []>} : vector<16x16xbf16>, vector<16x288xbf16>, vector<16x288xf32> -> vector<16x288xf32>
    %24 = arith.addf %19, %23 : vector<16x288xf32>
    %c0_23 = arith.constant 0 : index
    %c4 = arith.constant 4 : index
    %c0_24 = arith.constant 0 : index
    %c0_25 = arith.constant 0 : index
    %25 = vector.load %arg4[%c0_23, %c4, %c0_24, %c0_25] : memref<5x9x16x16xbf16, #tpu.memory_space<vmem>>, vector<1x1x16x16xbf16>
    %26 = vector.shape_cast %25 : vector<1x1x16x16xbf16> to vector<16x16xbf16>
    %27 = vector.extract_strided_slice %5 {offsets = [0, 19], sizes = [16, 288], strides = [1, 1]} : vector<16x360xbf16> to vector<16x288xbf16>
    %cst_26 = arith.constant dense<0.000000e+00> : vector<16x288xf32>
    %28 = tpu.matmul %26, %27, %cst_26 {dimension_numbers = #tpu.dot_dimension_numbers<[1], [0], [0], [1], [0, 0, 1, 1], [], []>} : vector<16x16xbf16>, vector<16x288xbf16>, vector<16x288xf32> -> vector<16x288xf32>
    %29 = arith.addf %24, %28 : vector<16x288xf32>
    %c0_27 = arith.constant 0 : index
    %c5 = arith.constant 5 : index
    %c0_28 = arith.constant 0 : index
    %c0_29 = arith.constant 0 : index
    %30 = vector.load %arg4[%c0_27, %c5, %c0_28, %c0_29] : memref<5x9x16x16xbf16, #tpu.memory_space<vmem>>, vector<1x1x16x16xbf16>
    %31 = vector.shape_cast %30 : vector<1x1x16x16xbf16> to vector<16x16xbf16>
    %32 = vector.extract_strided_slice %5 {offsets = [0, 20], sizes = [16, 288], strides = [1, 1]} : vector<16x360xbf16> to vector<16x288xbf16>
    %cst_30 = arith.constant dense<0.000000e+00> : vector<16x288xf32>
    %33 = tpu.matmul %31, %32, %cst_30 {dimension_numbers = #tpu.dot_dimension_numbers<[1], [0], [0], [1], [0, 0, 1, 1], [], []>} : vector<16x16xbf16>, vector<16x288xbf16>, vector<16x288xf32> -> vector<16x288xf32>
    %34 = arith.addf %29, %33 : vector<16x288xf32>
    %c0_31 = arith.constant 0 : index
    %c6 = arith.constant 6 : index
    %c0_32 = arith.constant 0 : index
    %c0_33 = arith.constant 0 : index
    %35 = vector.load %arg4[%c0_31, %c6, %c0_32, %c0_33] : memref<5x9x16x16xbf16, #tpu.memory_space<vmem>>, vector<1x1x16x16xbf16>
    %36 = vector.shape_cast %35 : vector<1x1x16x16xbf16> to vector<16x16xbf16>
    %37 = vector.extract_strided_slice %5 {offsets = [0, 36], sizes = [16, 288], strides = [1, 1]} : vector<16x360xbf16> to vector<16x288xbf16>
    %cst_34 = arith.constant dense<0.000000e+00> : vector<16x288xf32>
    %38 = tpu.matmul %36, %37, %cst_34 {dimension_numbers = #tpu.dot_dimension_numbers<[1], [0], [0], [1], [0, 0, 1, 1], [], []>} : vector<16x16xbf16>, vector<16x288xbf16>, vector<16x288xf32> -> vector<16x288xf32>
    %39 = arith.addf %34, %38 : vector<16x288xf32>
    %c0_35 = arith.constant 0 : index
    %c7 = arith.constant 7 : index
    %c0_36 = arith.constant 0 : index
    %c0_37 = arith.constant 0 : index
    %40 = vector.load %arg4[%c0_35, %c7, %c0_36, %c0_37] : memref<5x9x16x16xbf16, #tpu.memory_space<vmem>>, vector<1x1x16x16xbf16>
    %41 = vector.shape_cast %40 : vector<1x1x16x16xbf16> to vector<16x16xbf16>
    %42 = vector.extract_strided_slice %5 {offsets = [0, 37], sizes = [16, 288], strides = [1, 1]} : vector<16x360xbf16> to vector<16x288xbf16>
    %cst_38 = arith.constant dense<0.000000e+00> : vector<16x288xf32>
    %43 = tpu.matmul %41, %42, %cst_38 {dimension_numbers = #tpu.dot_dimension_numbers<[1], [0], [0], [1], [0, 0, 1, 1], [], []>} : vector<16x16xbf16>, vector<16x288xbf16>, vector<16x288xf32> -> vector<16x288xf32>
    %44 = arith.addf %39, %43 : vector<16x288xf32>
    %c0_39 = arith.constant 0 : index
    %c8 = arith.constant 8 : index
    %c0_40 = arith.constant 0 : index
    %c0_41 = arith.constant 0 : index
    %45 = vector.load %arg4[%c0_39, %c8, %c0_40, %c0_41] : memref<5x9x16x16xbf16, #tpu.memory_space<vmem>>, vector<1x1x16x16xbf16>
    %46 = vector.shape_cast %45 : vector<1x1x16x16xbf16> to vector<16x16xbf16>
    %47 = vector.extract_strided_slice %5 {offsets = [0, 38], sizes = [16, 288], strides = [1, 1]} : vector<16x360xbf16> to vector<16x288xbf16>
    %cst_42 = arith.constant dense<0.000000e+00> : vector<16x288xf32>
    %48 = tpu.matmul %46, %47, %cst_42 {dimension_numbers = #tpu.dot_dimension_numbers<[1], [0], [0], [1], [0, 0, 1, 1], [], []>} : vector<16x16xbf16>, vector<16x288xbf16>, vector<16x288xf32> -> vector<16x288xf32>
    %49 = arith.addf %44, %48 : vector<16x288xf32>
    %c0_43 = arith.constant 0 : index
    %c0_44 = arith.constant 0 : index
    %c0_45 = arith.constant 0 : index
    %50 = vector.load %arg5[%c0_43, %c0_44, %c0_45] : memref<5x16x1xf32, #tpu.memory_space<vmem>>, vector<1x16x1xf32>
    %51 = vector.shape_cast %50 : vector<1x16x1xf32> to vector<16x1xf32>
    %52 = vector.broadcast %51 : vector<16x1xf32> to vector<16x288xf32>
    %53 = arith.addf %49, %52 : vector<16x288xf32>
    %cst_46 = arith.constant 0.000000e+00 : f32
    %54 = vector.broadcast %cst_46 : f32 to vector<16x288xf32>
    %55 = arith.maximumf %53, %54 : vector<16x288xf32>
    %56 = vector.broadcast %3 : vector<1x288xf32> to vector<16x288xf32>
    %57 = arith.mulf %55, %56 : vector<16x288xf32>
    %c0_47 = arith.constant 0 : index
    %c0_48 = arith.constant 0 : index
    %c0_49 = arith.constant 0 : index
    %58 = vector.load %arg9[%c0_47, %c0_48, %c0_49] : memref<1x16x288xf32, #tpu.memory_space<vmem>>, vector<1x16x288xf32>
    %59 = vector.shape_cast %58 : vector<1x16x288xf32> to vector<16x288xf32>
    %60 = vector.shape_cast %57 : vector<16x288xf32> to vector<1x16x288xf32>
    tpu.vector_store %arg9[%c0_47, %c0_48, %c0_49], %60 {strides = array<i32>} : memref<1x16x288xf32, #tpu.memory_space<vmem>>, vector<1x16x288xf32>,
    %61 = arith.truncf %57 : vector<16x288xf32> to vector<16x288xbf16>
    %c0_50 = arith.constant 0 : index
    %c19 = arith.constant 19 : index
    %62 = vector.load %arg10[%c0_50, %c19] : memref<16x612xbf16, #tpu.memory_space<vmem>>, vector<16x288xbf16>
    tpu.vector_store %arg10[%c0_50, %c19], %61 {strides = array<i32>} : memref<16x612xbf16, #tpu.memory_space<vmem>>, vector<16x288xbf16>,
    %c0_51 = arith.constant 0 : index
    %c0_52 = arith.constant 0 : index
    %c0_53 = arith.constant 0 : index
    %63 = vector.load %arg2[%c0_51, %c0_52, %c0_53] : memref<1x16x288xbf16, #tpu.memory_space<vmem>>, vector<1x16x288xbf16>
    %64 = vector.shape_cast %63 : vector<1x16x288xbf16> to vector<16x288xbf16>
    %c0_54 = arith.constant 0 : index
    %c306 = arith.constant 306 : index
    %65 = vector.load %arg10[%c0_54, %c306] : memref<16x612xbf16, #tpu.memory_space<vmem>>, vector<16x288xbf16>
    tpu.vector_store %arg10[%c0_54, %c306], %64 {strides = array<i32>} : memref<16x612xbf16, #tpu.memory_space<vmem>>, vector<16x288xbf16>,
    %c0_55 = arith.constant 0 : index
    %c19_56 = arith.constant 19 : index
    %66 = vector.load %arg10[%c0_55, %c19_56] : memref<16x612xbf16, #tpu.memory_space<vmem>>, vector<16x574xbf16>
    %c0_57 = arith.constant 0 : index
    %c0_58 = arith.constant 0 : index
    %67 = vector.load %arg10[%c0_57, %c0_58] : memref<16x612xbf16, #tpu.memory_space<vmem>>, vector<16x612xbf16>
    %c1_59 = arith.constant 1 : index
    %c0_60 = arith.constant 0 : index
    %c0_61 = arith.constant 0 : index
    %c0_62 = arith.constant 0 : index
    %68 = vector.load %arg4[%c1_59, %c0_60, %c0_61, %c0_62] : memref<5x9x16x16xbf16, #tpu.memory_space<vmem>>, vector<1x1x16x16xbf16>
    %69 = vector.shape_cast %68 : vector<1x1x16x16xbf16> to vector<16x16xbf16>
    %70 = vector.extract_strided_slice %67 {offsets = [0, 0], sizes = [16, 574], strides = [1, 1]} : vector<16x612xbf16> to vector<16x574xbf16>
    %cst_63 = arith.constant dense<0.000000e+00> : vector<16x574xf32>
    %71 = tpu.matmul %69, %70, %cst_63 {dimension_numbers = #tpu.dot_dimension_numbers<[1], [0], [0], [1], [0, 0, 1, 1], [], []>} : vector<16x16xbf16>, vector<16x574xbf16>, vector<16x574xf32> -> vector<16x574xf32>
    %c1_64 = arith.constant 1 : index
    %c1_65 = arith.constant 1 : index
    %c0_66 = arith.constant 0 : index
    %c0_67 = arith.constant 0 : index
    %72 = vector.load %arg4[%c1_64, %c1_65, %c0_66, %c0_67] : memref<5x9x16x16xbf16, #tpu.memory_space<vmem>>, vector<1x1x16x16xbf16>
    %73 = vector.shape_cast %72 : vector<1x1x16x16xbf16> to vector<16x16xbf16>
    %74 = vector.extract_strided_slice %67 {offsets = [0, 1], sizes = [16, 574], strides = [1, 1]} : vector<16x612xbf16> to vector<16x574xbf16>
    %cst_68 = arith.constant dense<0.000000e+00> : vector<16x574xf32>
    %75 = tpu.matmul %73, %74, %cst_68 {dimension_numbers = #tpu.dot_dimension_numbers<[1], [0], [0], [1], [0, 0, 1, 1], [], []>} : vector<16x16xbf16>, vector<16x574xbf16>, vector<16x574xf32> -> vector<16x574xf32>
    %76 = arith.addf %71, %75 : vector<16x574xf32>
    %c1_69 = arith.constant 1 : index
    %c2_70 = arith.constant 2 : index
    %c0_71 = arith.constant 0 : index
    %c0_72 = arith.constant 0 : index
    %77 = vector.load %arg4[%c1_69, %c2_70, %c0_71, %c0_72] : memref<5x9x16x16xbf16, #tpu.memory_space<vmem>>, vector<1x1x16x16xbf16>
    %78 = vector.shape_cast %77 : vector<1x1x16x16xbf16> to vector<16x16xbf16>
    %79 = vector.extract_strided_slice %67 {offsets = [0, 2], sizes = [16, 574], strides = [1, 1]} : vector<16x612xbf16> to vector<16x574xbf16>
    %cst_73 = arith.constant dense<0.000000e+00> : vector<16x574xf32>
    %80 = tpu.matmul %78, %79, %cst_73 {dimension_numbers = #tpu.dot_dimension_numbers<[1], [0], [0], [1], [0, 0, 1, 1], [], []>} : vector<16x16xbf16>, vector<16x574xbf16>, vector<16x574xf32> -> vector<16x574xf32>
    %81 = arith.addf %76, %80 : vector<16x574xf32>
    %c1_74 = arith.constant 1 : index
    %c3_75 = arith.constant 3 : index
    %c0_76 = arith.constant 0 : index
    %c0_77 = arith.constant 0 : index
    %82 = vector.load %arg4[%c1_74, %c3_75, %c0_76, %c0_77] : memref<5x9x16x16xbf16, #tpu.memory_space<vmem>>, vector<1x1x16x16xbf16>
    %83 = vector.shape_cast %82 : vector<1x1x16x16xbf16> to vector<16x16xbf16>
    %84 = vector.extract_strided_slice %67 {offsets = [0, 18], sizes = [16, 574], strides = [1, 1]} : vector<16x612xbf16> to vector<16x574xbf16>
    %cst_78 = arith.constant dense<0.000000e+00> : vector<16x574xf32>
    %85 = tpu.matmul %83, %84, %cst_78 {dimension_numbers = #tpu.dot_dimension_numbers<[1], [0], [0], [1], [0, 0, 1, 1], [], []>} : vector<16x16xbf16>, vector<16x574xbf16>, vector<16x574xf32> -> vector<16x574xf32>
    %86 = arith.addf %81, %85 : vector<16x574xf32>
    %c1_79 = arith.constant 1 : index
    %c4_80 = arith.constant 4 : index
    %c0_81 = arith.constant 0 : index
    %c0_82 = arith.constant 0 : index
    %87 = vector.load %arg4[%c1_79, %c4_80, %c0_81, %c0_82] : memref<5x9x16x16xbf16, #tpu.memory_space<vmem>>, vector<1x1x16x16xbf16>
    %88 = vector.shape_cast %87 : vector<1x1x16x16xbf16> to vector<16x16xbf16>
    %89 = vector.extract_strided_slice %67 {offsets = [0, 19], sizes = [16, 574], strides = [1, 1]} : vector<16x612xbf16> to vector<16x574xbf16>
    %cst_83 = arith.constant dense<0.000000e+00> : vector<16x574xf32>
    %90 = tpu.matmul %88, %89, %cst_83 {dimension_numbers = #tpu.dot_dimension_numbers<[1], [0], [0], [1], [0, 0, 1, 1], [], []>} : vector<16x16xbf16>, vector<16x574xbf16>, vector<16x574xf32> -> vector<16x574xf32>
    %91 = arith.addf %86, %90 : vector<16x574xf32>
    %c1_84 = arith.constant 1 : index
    %c5_85 = arith.constant 5 : index
    %c0_86 = arith.constant 0 : index
    %c0_87 = arith.constant 0 : index
    %92 = vector.load %arg4[%c1_84, %c5_85, %c0_86, %c0_87] : memref<5x9x16x16xbf16, #tpu.memory_space<vmem>>, vector<1x1x16x16xbf16>
    %93 = vector.shape_cast %92 : vector<1x1x16x16xbf16> to vector<16x16xbf16>
    %94 = vector.extract_strided_slice %67 {offsets = [0, 20], sizes = [16, 574], strides = [1, 1]} : vector<16x612xbf16> to vector<16x574xbf16>
    %cst_88 = arith.constant dense<0.000000e+00> : vector<16x574xf32>
    %95 = tpu.matmul %93, %94, %cst_88 {dimension_numbers = #tpu.dot_dimension_numbers<[1], [0], [0], [1], [0, 0, 1, 1], [], []>} : vector<16x16xbf16>, vector<16x574xbf16>, vector<16x574xf32> -> vector<16x574xf32>
    %96 = arith.addf %91, %95 : vector<16x574xf32>
    %c1_89 = arith.constant 1 : index
    %c6_90 = arith.constant 6 : index
    %c0_91 = arith.constant 0 : index
    %c0_92 = arith.constant 0 : index
    %97 = vector.load %arg4[%c1_89, %c6_90, %c0_91, %c0_92] : memref<5x9x16x16xbf16, #tpu.memory_space<vmem>>, vector<1x1x16x16xbf16>
    %98 = vector.shape_cast %97 : vector<1x1x16x16xbf16> to vector<16x16xbf16>
    %99 = vector.extract_strided_slice %67 {offsets = [0, 36], sizes = [16, 574], strides = [1, 1]} : vector<16x612xbf16> to vector<16x574xbf16>
    %cst_93 = arith.constant dense<0.000000e+00> : vector<16x574xf32>
    %100 = tpu.matmul %98, %99, %cst_93 {dimension_numbers = #tpu.dot_dimension_numbers<[1], [0], [0], [1], [0, 0, 1, 1], [], []>} : vector<16x16xbf16>, vector<16x574xbf16>, vector<16x574xf32> -> vector<16x574xf32>
    %101 = arith.addf %96, %100 : vector<16x574xf32>
    %c1_94 = arith.constant 1 : index
    %c7_95 = arith.constant 7 : index
    %c0_96 = arith.constant 0 : index
    %c0_97 = arith.constant 0 : index
    %102 = vector.load %arg4[%c1_94, %c7_95, %c0_96, %c0_97] : memref<5x9x16x16xbf16, #tpu.memory_space<vmem>>, vector<1x1x16x16xbf16>
    %103 = vector.shape_cast %102 : vector<1x1x16x16xbf16> to vector<16x16xbf16>
    %104 = vector.extract_strided_slice %67 {offsets = [0, 37], sizes = [16, 574], strides = [1, 1]} : vector<16x612xbf16> to vector<16x574xbf16>
    %cst_98 = arith.constant dense<0.000000e+00> : vector<16x574xf32>
    %105 = tpu.matmul %103, %104, %cst_98 {dimension_numbers = #tpu.dot_dimension_numbers<[1], [0], [0], [1], [0, 0, 1, 1], [], []>} : vector<16x16xbf16>, vector<16x574xbf16>, vector<16x574xf32> -> vector<16x574xf32>
    %106 = arith.addf %101, %105 : vector<16x574xf32>
    %c1_99 = arith.constant 1 : index
    %c8_100 = arith.constant 8 : index
    %c0_101 = arith.constant 0 : index
    %c0_102 = arith.constant 0 : index
    %107 = vector.load %arg4[%c1_99, %c8_100, %c0_101, %c0_102] : memref<5x9x16x16xbf16, #tpu.memory_space<vmem>>, vector<1x1x16x16xbf16>
    %108 = vector.shape_cast %107 : vector<1x1x16x16xbf16> to vector<16x16xbf16>
    %109 = vector.extract_strided_slice %67 {offsets = [0, 38], sizes = [16, 574], strides = [1, 1]} : vector<16x612xbf16> to vector<16x574xbf16>
    %cst_103 = arith.constant dense<0.000000e+00> : vector<16x574xf32>
    %110 = tpu.matmul %108, %109, %cst_103 {dimension_numbers = #tpu.dot_dimension_numbers<[1], [0], [0], [1], [0, 0, 1, 1], [], []>} : vector<16x16xbf16>, vector<16x574xbf16>, vector<16x574xf32> -> vector<16x574xf32>
    %111 = arith.addf %106, %110 : vector<16x574xf32>
    %c1_104 = arith.constant 1 : index
    %c0_105 = arith.constant 0 : index
    %c0_106 = arith.constant 0 : index
    %112 = vector.load %arg5[%c1_104, %c0_105, %c0_106] : memref<5x16x1xf32, #tpu.memory_space<vmem>>, vector<1x16x1xf32>
    %113 = vector.shape_cast %112 : vector<1x16x1xf32> to vector<16x1xf32>
    %114 = vector.broadcast %113 : vector<16x1xf32> to vector<16x574xf32>
    %115 = arith.addf %111, %114 : vector<16x574xf32>
    %cst_107 = arith.constant 0.000000e+00 : f32
    %116 = vector.broadcast %cst_107 : f32 to vector<16x574xf32>
    %117 = arith.maximumf %115, %116 : vector<16x574xf32>
    %118 = vector.broadcast %2 : vector<1x574xf32> to vector<16x574xf32>
    %119 = arith.mulf %117, %118 : vector<16x574xf32>
    %120 = arith.truncf %119 : vector<16x574xf32> to vector<16x574xbf16>
    %c0_108 = arith.constant 0 : index
    %c19_109 = arith.constant 19 : index
    %121 = vector.load %arg10[%c0_108, %c19_109] : memref<16x612xbf16, #tpu.memory_space<vmem>>, vector<16x574xbf16>
    tpu.vector_store %arg10[%c0_108, %c19_109], %120 {strides = array<i32>} : memref<16x612xbf16, #tpu.memory_space<vmem>>, vector<16x574xbf16>,
    %c0_110 = arith.constant 0 : index
    %c0_111 = arith.constant 0 : index
    %122 = vector.load %arg10[%c0_110, %c0_111] : memref<16x612xbf16, #tpu.memory_space<vmem>>, vector<16x612xbf16>
    %c2_112 = arith.constant 2 : index
    %c0_113 = arith.constant 0 : index
    %c0_114 = arith.constant 0 : index
    %c0_115 = arith.constant 0 : index
    %123 = vector.load %arg4[%c2_112, %c0_113, %c0_114, %c0_115] : memref<5x9x16x16xbf16, #tpu.memory_space<vmem>>, vector<1x1x16x16xbf16>
    %124 = vector.shape_cast %123 : vector<1x1x16x16xbf16> to vector<16x16xbf16>
    %125 = vector.extract_strided_slice %122 {offsets = [0, 0], sizes = [16, 574], strides = [1, 1]} : vector<16x612xbf16> to vector<16x574xbf16>
    %cst_116 = arith.constant dense<0.000000e+00> : vector<16x574xf32>
    %126 = tpu.matmul %124, %125, %cst_116 {dimension_numbers = #tpu.dot_dimension_numbers<[1], [0], [0], [1], [0, 0, 1, 1], [], []>} : vector<16x16xbf16>, vector<16x574xbf16>, vector<16x574xf32> -> vector<16x574xf32>
    %c2_117 = arith.constant 2 : index
    %c1_118 = arith.constant 1 : index
    %c0_119 = arith.constant 0 : index
    %c0_120 = arith.constant 0 : index
    %127 = vector.load %arg4[%c2_117, %c1_118, %c0_119, %c0_120] : memref<5x9x16x16xbf16, #tpu.memory_space<vmem>>, vector<1x1x16x16xbf16>
    %128 = vector.shape_cast %127 : vector<1x1x16x16xbf16> to vector<16x16xbf16>
    %129 = vector.extract_strided_slice %122 {offsets = [0, 1], sizes = [16, 574], strides = [1, 1]} : vector<16x612xbf16> to vector<16x574xbf16>
    %cst_121 = arith.constant dense<0.000000e+00> : vector<16x574xf32>
    %130 = tpu.matmul %128, %129, %cst_121 {dimension_numbers = #tpu.dot_dimension_numbers<[1], [0], [0], [1], [0, 0, 1, 1], [], []>} : vector<16x16xbf16>, vector<16x574xbf16>, vector<16x574xf32> -> vector<16x574xf32>
    %131 = arith.addf %126, %130 : vector<16x574xf32>
    %c2_122 = arith.constant 2 : index
    %c2_123 = arith.constant 2 : index
    %c0_124 = arith.constant 0 : index
    %c0_125 = arith.constant 0 : index
    %132 = vector.load %arg4[%c2_122, %c2_123, %c0_124, %c0_125] : memref<5x9x16x16xbf16, #tpu.memory_space<vmem>>, vector<1x1x16x16xbf16>
    %133 = vector.shape_cast %132 : vector<1x1x16x16xbf16> to vector<16x16xbf16>
    %134 = vector.extract_strided_slice %122 {offsets = [0, 2], sizes = [16, 574], strides = [1, 1]} : vector<16x612xbf16> to vector<16x574xbf16>
    %cst_126 = arith.constant dense<0.000000e+00> : vector<16x574xf32>
    %135 = tpu.matmul %133, %134, %cst_126 {dimension_numbers = #tpu.dot_dimension_numbers<[1], [0], [0], [1], [0, 0, 1, 1], [], []>} : vector<16x16xbf16>, vector<16x574xbf16>, vector<16x574xf32> -> vector<16x574xf32>
    %136 = arith.addf %131, %135 : vector<16x574xf32>
    %c2_127 = arith.constant 2 : index
    %c3_128 = arith.constant 3 : index
    %c0_129 = arith.constant 0 : index
    %c0_130 = arith.constant 0 : index
    %137 = vector.load %arg4[%c2_127, %c3_128, %c0_129, %c0_130] : memref<5x9x16x16xbf16, #tpu.memory_space<vmem>>, vector<1x1x16x16xbf16>
    %138 = vector.shape_cast %137 : vector<1x1x16x16xbf16> to vector<16x16xbf16>
    %139 = vector.extract_strided_slice %122 {offsets = [0, 18], sizes = [16, 574], strides = [1, 1]} : vector<16x612xbf16> to vector<16x574xbf16>
    %cst_131 = arith.constant dense<0.000000e+00> : vector<16x574xf32>
    %140 = tpu.matmul %138, %139, %cst_131 {dimension_numbers = #tpu.dot_dimension_numbers<[1], [0], [0], [1], [0, 0, 1, 1], [], []>} : vector<16x16xbf16>, vector<16x574xbf16>, vector<16x574xf32> -> vector<16x574xf32>
    %141 = arith.addf %136, %140 : vector<16x574xf32>
    %c2_132 = arith.constant 2 : index
    %c4_133 = arith.constant 4 : index
    %c0_134 = arith.constant 0 : index
    %c0_135 = arith.constant 0 : index
    %142 = vector.load %arg4[%c2_132, %c4_133, %c0_134, %c0_135] : memref<5x9x16x16xbf16, #tpu.memory_space<vmem>>, vector<1x1x16x16xbf16>
    %143 = vector.shape_cast %142 : vector<1x1x16x16xbf16> to vector<16x16xbf16>
    %144 = vector.extract_strided_slice %122 {offsets = [0, 19], sizes = [16, 574], strides = [1, 1]} : vector<16x612xbf16> to vector<16x574xbf16>
    %cst_136 = arith.constant dense<0.000000e+00> : vector<16x574xf32>
    %145 = tpu.matmul %143, %144, %cst_136 {dimension_numbers = #tpu.dot_dimension_numbers<[1], [0], [0], [1], [0, 0, 1, 1], [], []>} : vector<16x16xbf16>, vector<16x574xbf16>, vector<16x574xf32> -> vector<16x574xf32>
    %146 = arith.addf %141, %145 : vector<16x574xf32>
    %c2_137 = arith.constant 2 : index
    %c5_138 = arith.constant 5 : index
    %c0_139 = arith.constant 0 : index
    %c0_140 = arith.constant 0 : index
    %147 = vector.load %arg4[%c2_137, %c5_138, %c0_139, %c0_140] : memref<5x9x16x16xbf16, #tpu.memory_space<vmem>>, vector<1x1x16x16xbf16>
    %148 = vector.shape_cast %147 : vector<1x1x16x16xbf16> to vector<16x16xbf16>
    %149 = vector.extract_strided_slice %122 {offsets = [0, 20], sizes = [16, 574], strides = [1, 1]} : vector<16x612xbf16> to vector<16x574xbf16>
    %cst_141 = arith.constant dense<0.000000e+00> : vector<16x574xf32>
    %150 = tpu.matmul %148, %149, %cst_141 {dimension_numbers = #tpu.dot_dimension_numbers<[1], [0], [0], [1], [0, 0, 1, 1], [], []>} : vector<16x16xbf16>, vector<16x574xbf16>, vector<16x574xf32> -> vector<16x574xf32>
    %151 = arith.addf %146, %150 : vector<16x574xf32>
    %c2_142 = arith.constant 2 : index
    %c6_143 = arith.constant 6 : index
    %c0_144 = arith.constant 0 : index
    %c0_145 = arith.constant 0 : index
    %152 = vector.load %arg4[%c2_142, %c6_143, %c0_144, %c0_145] : memref<5x9x16x16xbf16, #tpu.memory_space<vmem>>, vector<1x1x16x16xbf16>
    %153 = vector.shape_cast %152 : vector<1x1x16x16xbf16> to vector<16x16xbf16>
    %154 = vector.extract_strided_slice %122 {offsets = [0, 36], sizes = [16, 574], strides = [1, 1]} : vector<16x612xbf16> to vector<16x574xbf16>
    %cst_146 = arith.constant dense<0.000000e+00> : vector<16x574xf32>
    %155 = tpu.matmul %153, %154, %cst_146 {dimension_numbers = #tpu.dot_dimension_numbers<[1], [0], [0], [1], [0, 0, 1, 1], [], []>} : vector<16x16xbf16>, vector<16x574xbf16>, vector<16x574xf32> -> vector<16x574xf32>
    %156 = arith.addf %151, %155 : vector<16x574xf32>
    %c2_147 = arith.constant 2 : index
    %c7_148 = arith.constant 7 : index
    %c0_149 = arith.constant 0 : index
    %c0_150 = arith.constant 0 : index
    %157 = vector.load %arg4[%c2_147, %c7_148, %c0_149, %c0_150] : memref<5x9x16x16xbf16, #tpu.memory_space<vmem>>, vector<1x1x16x16xbf16>
    %158 = vector.shape_cast %157 : vector<1x1x16x16xbf16> to vector<16x16xbf16>
    %159 = vector.extract_strided_slice %122 {offsets = [0, 37], sizes = [16, 574], strides = [1, 1]} : vector<16x612xbf16> to vector<16x574xbf16>
    %cst_151 = arith.constant dense<0.000000e+00> : vector<16x574xf32>
    %160 = tpu.matmul %158, %159, %cst_151 {dimension_numbers = #tpu.dot_dimension_numbers<[1], [0], [0], [1], [0, 0, 1, 1], [], []>} : vector<16x16xbf16>, vector<16x574xbf16>, vector<16x574xf32> -> vector<16x574xf32>
    %161 = arith.addf %156, %160 : vector<16x574xf32>
    %c2_152 = arith.constant 2 : index
    %c8_153 = arith.constant 8 : index
    %c0_154 = arith.constant 0 : index
    %c0_155 = arith.constant 0 : index
    %162 = vector.load %arg4[%c2_152, %c8_153, %c0_154, %c0_155] : memref<5x9x16x16xbf16, #tpu.memory_space<vmem>>, vector<1x1x16x16xbf16>
    %163 = vector.shape_cast %162 : vector<1x1x16x16xbf16> to vector<16x16xbf16>
    %164 = vector.extract_strided_slice %122 {offsets = [0, 38], sizes = [16, 574], strides = [1, 1]} : vector<16x612xbf16> to vector<16x574xbf16>
    %cst_156 = arith.constant dense<0.000000e+00> : vector<16x574xf32>
    %165 = tpu.matmul %163, %164, %cst_156 {dimension_numbers = #tpu.dot_dimension_numbers<[1], [0], [0], [1], [0, 0, 1, 1], [], []>} : vector<16x16xbf16>, vector<16x574xbf16>, vector<16x574xf32> -> vector<16x574xf32>
    %166 = arith.addf %161, %165 : vector<16x574xf32>
    %c2_157 = arith.constant 2 : index
    %c0_158 = arith.constant 0 : index
    %c0_159 = arith.constant 0 : index
    %167 = vector.load %arg5[%c2_157, %c0_158, %c0_159] : memref<5x16x1xf32, #tpu.memory_space<vmem>>, vector<1x16x1xf32>
    %168 = vector.shape_cast %167 : vector<1x16x1xf32> to vector<16x1xf32>
    %169 = vector.broadcast %168 : vector<16x1xf32> to vector<16x574xf32>
    %170 = arith.addf %166, %169 : vector<16x574xf32>
    %171 = arith.extf %66 : vector<16x574xbf16> to vector<16x574xf32>
    %172 = arith.addf %170, %171 : vector<16x574xf32>
    %cst_160 = arith.constant 0.000000e+00 : f32
    %173 = vector.broadcast %cst_160 : f32 to vector<16x574xf32>
    %174 = arith.maximumf %172, %173 : vector<16x574xf32>
    %175 = vector.broadcast %2 : vector<1x574xf32> to vector<16x574xf32>
    %176 = arith.mulf %174, %175 : vector<16x574xf32>
    %177 = arith.truncf %176 : vector<16x574xf32> to vector<16x574xbf16>
    %c0_161 = arith.constant 0 : index
    %c19_162 = arith.constant 19 : index
    %178 = vector.load %arg10[%c0_161, %c19_162] : memref<16x612xbf16, #tpu.memory_space<vmem>>, vector<16x574xbf16>
    tpu.vector_store %arg10[%c0_161, %c19_162], %177 {strides = array<i32>} : memref<16x612xbf16, #tpu.memory_space<vmem>>, vector<16x574xbf16>,
    %c0_163 = arith.constant 0 : index
    %c19_164 = arith.constant 19 : index
    %179 = vector.load %arg10[%c0_163, %c19_164] : memref<16x612xbf16, #tpu.memory_space<vmem>>, vector<16x574xbf16>
    %c0_165 = arith.constant 0 : index
    %c0_166 = arith.constant 0 : index
    %180 = vector.load %arg10[%c0_165, %c0_166] : memref<16x612xbf16, #tpu.memory_space<vmem>>, vector<16x612xbf16>
    %c3_167 = arith.constant 3 : index
    %c0_168 = arith.constant 0 : index
    %c0_169 = arith.constant 0 : index
    %c0_170 = arith.constant 0 : index
    %181 = vector.load %arg4[%c3_167, %c0_168, %c0_169, %c0_170] : memref<5x9x16x16xbf16, #tpu.memory_space<vmem>>, vector<1x1x16x16xbf16>
    %182 = vector.shape_cast %181 : vector<1x1x16x16xbf16> to vector<16x16xbf16>
    %183 = vector.extract_strided_slice %180 {offsets = [0, 0], sizes = [16, 574], strides = [1, 1]} : vector<16x612xbf16> to vector<16x574xbf16>
    %cst_171 = arith.constant dense<0.000000e+00> : vector<16x574xf32>
    %184 = tpu.matmul %182, %183, %cst_171 {dimension_numbers = #tpu.dot_dimension_numbers<[1], [0], [0], [1], [0, 0, 1, 1], [], []>} : vector<16x16xbf16>, vector<16x574xbf16>, vector<16x574xf32> -> vector<16x574xf32>
    %c3_172 = arith.constant 3 : index
    %c1_173 = arith.constant 1 : index
    %c0_174 = arith.constant 0 : index
    %c0_175 = arith.constant 0 : index
    %185 = vector.load %arg4[%c3_172, %c1_173, %c0_174, %c0_175] : memref<5x9x16x16xbf16, #tpu.memory_space<vmem>>, vector<1x1x16x16xbf16>
    %186 = vector.shape_cast %185 : vector<1x1x16x16xbf16> to vector<16x16xbf16>
    %187 = vector.extract_strided_slice %180 {offsets = [0, 1], sizes = [16, 574], strides = [1, 1]} : vector<16x612xbf16> to vector<16x574xbf16>
    %cst_176 = arith.constant dense<0.000000e+00> : vector<16x574xf32>
    %188 = tpu.matmul %186, %187, %cst_176 {dimension_numbers = #tpu.dot_dimension_numbers<[1], [0], [0], [1], [0, 0, 1, 1], [], []>} : vector<16x16xbf16>, vector<16x574xbf16>, vector<16x574xf32> -> vector<16x574xf32>
    %189 = arith.addf %184, %188 : vector<16x574xf32>
    %c3_177 = arith.constant 3 : index
    %c2_178 = arith.constant 2 : index
    %c0_179 = arith.constant 0 : index
    %c0_180 = arith.constant 0 : index
    %190 = vector.load %arg4[%c3_177, %c2_178, %c0_179, %c0_180] : memref<5x9x16x16xbf16, #tpu.memory_space<vmem>>, vector<1x1x16x16xbf16>
    %191 = vector.shape_cast %190 : vector<1x1x16x16xbf16> to vector<16x16xbf16>
    %192 = vector.extract_strided_slice %180 {offsets = [0, 2], sizes = [16, 574], strides = [1, 1]} : vector<16x612xbf16> to vector<16x574xbf16>
    %cst_181 = arith.constant dense<0.000000e+00> : vector<16x574xf32>
    %193 = tpu.matmul %191, %192, %cst_181 {dimension_numbers = #tpu.dot_dimension_numbers<[1], [0], [0], [1], [0, 0, 1, 1], [], []>} : vector<16x16xbf16>, vector<16x574xbf16>, vector<16x574xf32> -> vector<16x574xf32>
    %194 = arith.addf %189, %193 : vector<16x574xf32>
    %c3_182 = arith.constant 3 : index
    %c3_183 = arith.constant 3 : index
    %c0_184 = arith.constant 0 : index
    %c0_185 = arith.constant 0 : index
    %195 = vector.load %arg4[%c3_182, %c3_183, %c0_184, %c0_185] : memref<5x9x16x16xbf16, #tpu.memory_space<vmem>>, vector<1x1x16x16xbf16>
    %196 = vector.shape_cast %195 : vector<1x1x16x16xbf16> to vector<16x16xbf16>
    %197 = vector.extract_strided_slice %180 {offsets = [0, 18], sizes = [16, 574], strides = [1, 1]} : vector<16x612xbf16> to vector<16x574xbf16>
    %cst_186 = arith.constant dense<0.000000e+00> : vector<16x574xf32>
    %198 = tpu.matmul %196, %197, %cst_186 {dimension_numbers = #tpu.dot_dimension_numbers<[1], [0], [0], [1], [0, 0, 1, 1], [], []>} : vector<16x16xbf16>, vector<16x574xbf16>, vector<16x574xf32> -> vector<16x574xf32>
    %199 = arith.addf %194, %198 : vector<16x574xf32>
    %c3_187 = arith.constant 3 : index
    %c4_188 = arith.constant 4 : index
    %c0_189 = arith.constant 0 : index
    %c0_190 = arith.constant 0 : index
    %200 = vector.load %arg4[%c3_187, %c4_188, %c0_189, %c0_190] : memref<5x9x16x16xbf16, #tpu.memory_space<vmem>>, vector<1x1x16x16xbf16>
    %201 = vector.shape_cast %200 : vector<1x1x16x16xbf16> to vector<16x16xbf16>
    %202 = vector.extract_strided_slice %180 {offsets = [0, 19], sizes = [16, 574], strides = [1, 1]} : vector<16x612xbf16> to vector<16x574xbf16>
    %cst_191 = arith.constant dense<0.000000e+00> : vector<16x574xf32>
    %203 = tpu.matmul %201, %202, %cst_191 {dimension_numbers = #tpu.dot_dimension_numbers<[1], [0], [0], [1], [0, 0, 1, 1], [], []>} : vector<16x16xbf16>, vector<16x574xbf16>, vector<16x574xf32> -> vector<16x574xf32>
    %204 = arith.addf %199, %203 : vector<16x574xf32>
    %c3_192 = arith.constant 3 : index
    %c5_193 = arith.constant 5 : index
    %c0_194 = arith.constant 0 : index
    %c0_195 = arith.constant 0 : index
    %205 = vector.load %arg4[%c3_192, %c5_193, %c0_194, %c0_195] : memref<5x9x16x16xbf16, #tpu.memory_space<vmem>>, vector<1x1x16x16xbf16>
    %206 = vector.shape_cast %205 : vector<1x1x16x16xbf16> to vector<16x16xbf16>
    %207 = vector.extract_strided_slice %180 {offsets = [0, 20], sizes = [16, 574], strides = [1, 1]} : vector<16x612xbf16> to vector<16x574xbf16>
    %cst_196 = arith.constant dense<0.000000e+00> : vector<16x574xf32>
    %208 = tpu.matmul %206, %207, %cst_196 {dimension_numbers = #tpu.dot_dimension_numbers<[1], [0], [0], [1], [0, 0, 1, 1], [], []>} : vector<16x16xbf16>, vector<16x574xbf16>, vector<16x574xf32> -> vector<16x574xf32>
    %209 = arith.addf %204, %208 : vector<16x574xf32>
    %c3_197 = arith.constant 3 : index
    %c6_198 = arith.constant 6 : index
    %c0_199 = arith.constant 0 : index
    %c0_200 = arith.constant 0 : index
    %210 = vector.load %arg4[%c3_197, %c6_198, %c0_199, %c0_200] : memref<5x9x16x16xbf16, #tpu.memory_space<vmem>>, vector<1x1x16x16xbf16>
    %211 = vector.shape_cast %210 : vector<1x1x16x16xbf16> to vector<16x16xbf16>
    %212 = vector.extract_strided_slice %180 {offsets = [0, 36], sizes = [16, 574], strides = [1, 1]} : vector<16x612xbf16> to vector<16x574xbf16>
    %cst_201 = arith.constant dense<0.000000e+00> : vector<16x574xf32>
    %213 = tpu.matmul %211, %212, %cst_201 {dimension_numbers = #tpu.dot_dimension_numbers<[1], [0], [0], [1], [0, 0, 1, 1], [], []>} : vector<16x16xbf16>, vector<16x574xbf16>, vector<16x574xf32> -> vector<16x574xf32>
    %214 = arith.addf %209, %213 : vector<16x574xf32>
    %c3_202 = arith.constant 3 : index
    %c7_203 = arith.constant 7 : index
    %c0_204 = arith.constant 0 : index
    %c0_205 = arith.constant 0 : index
    %215 = vector.load %arg4[%c3_202, %c7_203, %c0_204, %c0_205] : memref<5x9x16x16xbf16, #tpu.memory_space<vmem>>, vector<1x1x16x16xbf16>
    %216 = vector.shape_cast %215 : vector<1x1x16x16xbf16> to vector<16x16xbf16>
    %217 = vector.extract_strided_slice %180 {offsets = [0, 37], sizes = [16, 574], strides = [1, 1]} : vector<16x612xbf16> to vector<16x574xbf16>
    %cst_206 = arith.constant dense<0.000000e+00> : vector<16x574xf32>
    %218 = tpu.matmul %216, %217, %cst_206 {dimension_numbers = #tpu.dot_dimension_numbers<[1], [0], [0], [1], [0, 0, 1, 1], [], []>} : vector<16x16xbf16>, vector<16x574xbf16>, vector<16x574xf32> -> vector<16x574xf32>
    %219 = arith.addf %214, %218 : vector<16x574xf32>
    %c3_207 = arith.constant 3 : index
    %c8_208 = arith.constant 8 : index
    %c0_209 = arith.constant 0 : index
    %c0_210 = arith.constant 0 : index
    %220 = vector.load %arg4[%c3_207, %c8_208, %c0_209, %c0_210] : memref<5x9x16x16xbf16, #tpu.memory_space<vmem>>, vector<1x1x16x16xbf16>
    %221 = vector.shape_cast %220 : vector<1x1x16x16xbf16> to vector<16x16xbf16>
    %222 = vector.extract_strided_slice %180 {offsets = [0, 38], sizes = [16, 574], strides = [1, 1]} : vector<16x612xbf16> to vector<16x574xbf16>
    %cst_211 = arith.constant dense<0.000000e+00> : vector<16x574xf32>
    %223 = tpu.matmul %221, %222, %cst_211 {dimension_numbers = #tpu.dot_dimension_numbers<[1], [0], [0], [1], [0, 0, 1, 1], [], []>} : vector<16x16xbf16>, vector<16x574xbf16>, vector<16x574xf32> -> vector<16x574xf32>
    %224 = arith.addf %219, %223 : vector<16x574xf32>
    %c3_212 = arith.constant 3 : index
    %c0_213 = arith.constant 0 : index
    %c0_214 = arith.constant 0 : index
    %225 = vector.load %arg5[%c3_212, %c0_213, %c0_214] : memref<5x16x1xf32, #tpu.memory_space<vmem>>, vector<1x16x1xf32>
    %226 = vector.shape_cast %225 : vector<1x16x1xf32> to vector<16x1xf32>
    %227 = vector.broadcast %226 : vector<16x1xf32> to vector<16x574xf32>
    %228 = arith.addf %224, %227 : vector<16x574xf32>
    %cst_215 = arith.constant 0.000000e+00 : f32
    %229 = vector.broadcast %cst_215 : f32 to vector<16x574xf32>
    %230 = arith.maximumf %228, %229 : vector<16x574xf32>
    %231 = vector.broadcast %2 : vector<1x574xf32> to vector<16x574xf32>
    %232 = arith.mulf %230, %231 : vector<16x574xf32>
    %233 = arith.truncf %232 : vector<16x574xf32> to vector<16x574xbf16>
    %c0_216 = arith.constant 0 : index
    %c19_217 = arith.constant 19 : index
    %234 = vector.load %arg10[%c0_216, %c19_217] : memref<16x612xbf16, #tpu.memory_space<vmem>>, vector<16x574xbf16>
    tpu.vector_store %arg10[%c0_216, %c19_217], %233 {strides = array<i32>} : memref<16x612xbf16, #tpu.memory_space<vmem>>, vector<16x574xbf16>,
    %c0_218 = arith.constant 0 : index
    %c0_219 = arith.constant 0 : index
    %235 = vector.load %arg10[%c0_218, %c0_219] : memref<16x612xbf16, #tpu.memory_space<vmem>>, vector<16x612xbf16>
    %c4_220 = arith.constant 4 : index
    %c0_221 = arith.constant 0 : index
    %c0_222 = arith.constant 0 : index
    %c0_223 = arith.constant 0 : index
    %236 = vector.load %arg4[%c4_220, %c0_221, %c0_222, %c0_223] : memref<5x9x16x16xbf16, #tpu.memory_space<vmem>>, vector<1x1x16x16xbf16>
    %237 = vector.shape_cast %236 : vector<1x1x16x16xbf16> to vector<16x16xbf16>
    %238 = vector.extract_strided_slice %235 {offsets = [0, 0], sizes = [16, 574], strides = [1, 1]} : vector<16x612xbf16> to vector<16x574xbf16>
    %cst_224 = arith.constant dense<0.000000e+00> : vector<16x574xf32>
    %239 = tpu.matmul %237, %238, %cst_224 {dimension_numbers = #tpu.dot_dimension_numbers<[1], [0], [0], [1], [0, 0, 1, 1], [], []>} : vector<16x16xbf16>, vector<16x574xbf16>, vector<16x574xf32> -> vector<16x574xf32>
    %c4_225 = arith.constant 4 : index
    %c1_226 = arith.constant 1 : index
    %c0_227 = arith.constant 0 : index
    %c0_228 = arith.constant 0 : index
    %240 = vector.load %arg4[%c4_225, %c1_226, %c0_227, %c0_228] : memref<5x9x16x16xbf16, #tpu.memory_space<vmem>>, vector<1x1x16x16xbf16>
    %241 = vector.shape_cast %240 : vector<1x1x16x16xbf16> to vector<16x16xbf16>
    %242 = vector.extract_strided_slice %235 {offsets = [0, 1], sizes = [16, 574], strides = [1, 1]} : vector<16x612xbf16> to vector<16x574xbf16>
    %cst_229 = arith.constant dense<0.000000e+00> : vector<16x574xf32>
    %243 = tpu.matmul %241, %242, %cst_229 {dimension_numbers = #tpu.dot_dimension_numbers<[1], [0], [0], [1], [0, 0, 1, 1], [], []>} : vector<16x16xbf16>, vector<16x574xbf16>, vector<16x574xf32> -> vector<16x574xf32>
    %244 = arith.addf %239, %243 : vector<16x574xf32>
    %c4_230 = arith.constant 4 : index
    %c2_231 = arith.constant 2 : index
    %c0_232 = arith.constant 0 : index
    %c0_233 = arith.constant 0 : index
    %245 = vector.load %arg4[%c4_230, %c2_231, %c0_232, %c0_233] : memref<5x9x16x16xbf16, #tpu.memory_space<vmem>>, vector<1x1x16x16xbf16>
    %246 = vector.shape_cast %245 : vector<1x1x16x16xbf16> to vector<16x16xbf16>
    %247 = vector.extract_strided_slice %235 {offsets = [0, 2], sizes = [16, 574], strides = [1, 1]} : vector<16x612xbf16> to vector<16x574xbf16>
    %cst_234 = arith.constant dense<0.000000e+00> : vector<16x574xf32>
    %248 = tpu.matmul %246, %247, %cst_234 {dimension_numbers = #tpu.dot_dimension_numbers<[1], [0], [0], [1], [0, 0, 1, 1], [], []>} : vector<16x16xbf16>, vector<16x574xbf16>, vector<16x574xf32> -> vector<16x574xf32>
    %249 = arith.addf %244, %248 : vector<16x574xf32>
    %c4_235 = arith.constant 4 : index
    %c3_236 = arith.constant 3 : index
    %c0_237 = arith.constant 0 : index
    %c0_238 = arith.constant 0 : index
    %250 = vector.load %arg4[%c4_235, %c3_236, %c0_237, %c0_238] : memref<5x9x16x16xbf16, #tpu.memory_space<vmem>>, vector<1x1x16x16xbf16>
    %251 = vector.shape_cast %250 : vector<1x1x16x16xbf16> to vector<16x16xbf16>
    %252 = vector.extract_strided_slice %235 {offsets = [0, 18], sizes = [16, 574], strides = [1, 1]} : vector<16x612xbf16> to vector<16x574xbf16>
    %cst_239 = arith.constant dense<0.000000e+00> : vector<16x574xf32>
    %253 = tpu.matmul %251, %252, %cst_239 {dimension_numbers = #tpu.dot_dimension_numbers<[1], [0], [0], [1], [0, 0, 1, 1], [], []>} : vector<16x16xbf16>, vector<16x574xbf16>, vector<16x574xf32> -> vector<16x574xf32>
    %254 = arith.addf %249, %253 : vector<16x574xf32>
    %c4_240 = arith.constant 4 : index
    %c4_241 = arith.constant 4 : index
    %c0_242 = arith.constant 0 : index
    %c0_243 = arith.constant 0 : index
    %255 = vector.load %arg4[%c4_240, %c4_241, %c0_242, %c0_243] : memref<5x9x16x16xbf16, #tpu.memory_space<vmem>>, vector<1x1x16x16xbf16>
    %256 = vector.shape_cast %255 : vector<1x1x16x16xbf16> to vector<16x16xbf16>
    %257 = vector.extract_strided_slice %235 {offsets = [0, 19], sizes = [16, 574], strides = [1, 1]} : vector<16x612xbf16> to vector<16x574xbf16>
    %cst_244 = arith.constant dense<0.000000e+00> : vector<16x574xf32>
    %258 = tpu.matmul %256, %257, %cst_244 {dimension_numbers = #tpu.dot_dimension_numbers<[1], [0], [0], [1], [0, 0, 1, 1], [], []>} : vector<16x16xbf16>, vector<16x574xbf16>, vector<16x574xf32> -> vector<16x574xf32>
    %259 = arith.addf %254, %258 : vector<16x574xf32>
    %c4_245 = arith.constant 4 : index
    %c5_246 = arith.constant 5 : index
    %c0_247 = arith.constant 0 : index
    %c0_248 = arith.constant 0 : index
    %260 = vector.load %arg4[%c4_245, %c5_246, %c0_247, %c0_248] : memref<5x9x16x16xbf16, #tpu.memory_space<vmem>>, vector<1x1x16x16xbf16>
    %261 = vector.shape_cast %260 : vector<1x1x16x16xbf16> to vector<16x16xbf16>
    %262 = vector.extract_strided_slice %235 {offsets = [0, 20], sizes = [16, 574], strides = [1, 1]} : vector<16x612xbf16> to vector<16x574xbf16>
    %cst_249 = arith.constant dense<0.000000e+00> : vector<16x574xf32>
    %263 = tpu.matmul %261, %262, %cst_249 {dimension_numbers = #tpu.dot_dimension_numbers<[1], [0], [0], [1], [0, 0, 1, 1], [], []>} : vector<16x16xbf16>, vector<16x574xbf16>, vector<16x574xf32> -> vector<16x574xf32>
    %264 = arith.addf %259, %263 : vector<16x574xf32>
    %c4_250 = arith.constant 4 : index
    %c6_251 = arith.constant 6 : index
    %c0_252 = arith.constant 0 : index
    %c0_253 = arith.constant 0 : index
    %265 = vector.load %arg4[%c4_250, %c6_251, %c0_252, %c0_253] : memref<5x9x16x16xbf16, #tpu.memory_space<vmem>>, vector<1x1x16x16xbf16>
    %266 = vector.shape_cast %265 : vector<1x1x16x16xbf16> to vector<16x16xbf16>
    %267 = vector.extract_strided_slice %235 {offsets = [0, 36], sizes = [16, 574], strides = [1, 1]} : vector<16x612xbf16> to vector<16x574xbf16>
    %cst_254 = arith.constant dense<0.000000e+00> : vector<16x574xf32>
    %268 = tpu.matmul %266, %267, %cst_254 {dimension_numbers = #tpu.dot_dimension_numbers<[1], [0], [0], [1], [0, 0, 1, 1], [], []>} : vector<16x16xbf16>, vector<16x574xbf16>, vector<16x574xf32> -> vector<16x574xf32>
    %269 = arith.addf %264, %268 : vector<16x574xf32>
    %c4_255 = arith.constant 4 : index
    %c7_256 = arith.constant 7 : index
    %c0_257 = arith.constant 0 : index
    %c0_258 = arith.constant 0 : index
    %270 = vector.load %arg4[%c4_255, %c7_256, %c0_257, %c0_258] : memref<5x9x16x16xbf16, #tpu.memory_space<vmem>>, vector<1x1x16x16xbf16>
    %271 = vector.shape_cast %270 : vector<1x1x16x16xbf16> to vector<16x16xbf16>
    %272 = vector.extract_strided_slice %235 {offsets = [0, 37], sizes = [16, 574], strides = [1, 1]} : vector<16x612xbf16> to vector<16x574xbf16>
    %cst_259 = arith.constant dense<0.000000e+00> : vector<16x574xf32>
    %273 = tpu.matmul %271, %272, %cst_259 {dimension_numbers = #tpu.dot_dimension_numbers<[1], [0], [0], [1], [0, 0, 1, 1], [], []>} : vector<16x16xbf16>, vector<16x574xbf16>, vector<16x574xf32> -> vector<16x574xf32>
    %274 = arith.addf %269, %273 : vector<16x574xf32>
    %c4_260 = arith.constant 4 : index
    %c8_261 = arith.constant 8 : index
    %c0_262 = arith.constant 0 : index
    %c0_263 = arith.constant 0 : index
    %275 = vector.load %arg4[%c4_260, %c8_261, %c0_262, %c0_263] : memref<5x9x16x16xbf16, #tpu.memory_space<vmem>>, vector<1x1x16x16xbf16>
    %276 = vector.shape_cast %275 : vector<1x1x16x16xbf16> to vector<16x16xbf16>
    %277 = vector.extract_strided_slice %235 {offsets = [0, 38], sizes = [16, 574], strides = [1, 1]} : vector<16x612xbf16> to vector<16x574xbf16>
    %cst_264 = arith.constant dense<0.000000e+00> : vector<16x574xf32>
    %278 = tpu.matmul %276, %277, %cst_264 {dimension_numbers = #tpu.dot_dimension_numbers<[1], [0], [0], [1], [0, 0, 1, 1], [], []>} : vector<16x16xbf16>, vector<16x574xbf16>, vector<16x574xf32> -> vector<16x574xf32>
    %279 = arith.addf %274, %278 : vector<16x574xf32>
    %c4_265 = arith.constant 4 : index
    %c0_266 = arith.constant 0 : index
    %c0_267 = arith.constant 0 : index
    %280 = vector.load %arg5[%c4_265, %c0_266, %c0_267] : memref<5x16x1xf32, #tpu.memory_space<vmem>>, vector<1x16x1xf32>
    %281 = vector.shape_cast %280 : vector<1x16x1xf32> to vector<16x1xf32>
    %282 = vector.broadcast %281 : vector<16x1xf32> to vector<16x574xf32>
    %283 = arith.addf %279, %282 : vector<16x574xf32>
    %284 = arith.extf %179 : vector<16x574xbf16> to vector<16x574xf32>
    %285 = arith.addf %283, %284 : vector<16x574xf32>
    %cst_268 = arith.constant 0.000000e+00 : f32
    %286 = vector.broadcast %cst_268 : f32 to vector<16x574xf32>
    %287 = arith.maximumf %285, %286 : vector<16x574xf32>
    %288 = vector.broadcast %2 : vector<1x574xf32> to vector<16x574xf32>
    %289 = arith.mulf %287, %288 : vector<16x574xf32>
    %c0_269 = arith.constant 0 : index
    %c0_270 = arith.constant 0 : index
    %290 = vector.load %arg6[%c0_269, %c0_270] : memref<10x16xf32, #tpu.memory_space<vmem>>, vector<10x16xf32>
    %cst_271 = arith.constant dense<0.000000e+00> : vector<10x574xf32>
    %291 = tpu.matmul %290, %289, %cst_271 {dimension_numbers = #tpu.dot_dimension_numbers<[1], [0], [0], [1], [0, 0, 1, 1], [], []>} : vector<10x16xf32>, vector<16x574xf32>, vector<10x574xf32> -> vector<10x574xf32>
    %cst_272 = arith.constant dense<0.000000e+00> : vector<10xf32>
    %292 = vector.multi_reduction <add>, %291, %cst_272 [1] : vector<10x574xf32> to vector<10xf32>
    %293 = vector.shape_cast %292 : vector<10xf32> to vector<10x1xf32>
    %cst_273 = arith.constant 0.001953125 : f32
    %294 = vector.broadcast %cst_273 : f32 to vector<10x1xf32>
    %295 = arith.mulf %293, %294 : vector<10x1xf32>
    %c0_274 = arith.constant 0 : index
    %c0_275 = arith.constant 0 : index
    %296 = vector.load %arg7[%c0_274, %c0_275] : memref<10x1xf32, #tpu.memory_space<vmem>>, vector<10x1xf32>
    %297 = arith.addf %295, %296 : vector<10x1xf32>
    %c0_276 = arith.constant 0 : index
    %c0_277 = arith.constant 0 : index
    %c0_278 = arith.constant 0 : index
    %298 = vector.load %arg8[%c0_276, %c0_277, %c0_278] : memref<1x10x1xf32, #tpu.memory_space<vmem>>, vector<1x10x1xf32>
    %299 = vector.shape_cast %298 : vector<1x10x1xf32> to vector<10x1xf32>
    %300 = vector.shape_cast %297 : vector<10x1xf32> to vector<1x10x1xf32>
    tpu.vector_store %arg8[%c0_276, %c0_277, %c0_278], %300 {strides = array<i32>} : memref<1x10x1xf32, #tpu.memory_space<vmem>>, vector<1x10x1xf32>,
    return
  }
  func.func @transform_0(%arg0: i32) -> (i32, i32, i32) {
    %c0_i32 = arith.constant 0 : i32
    %c0_i32_0 = arith.constant 0 : i32
    %c0_i32_1 = arith.constant 0 : i32
    return %arg0, %c0_i32, %c0_i32_0 : i32, i32, i32
  }
  func.func @transform_1(%arg0: i32) -> (i32, i32, i32) {
    %c0_i32 = arith.constant 0 : i32
    %c0_i32_0 = arith.constant 0 : i32
    %c0_i32_1 = arith.constant 0 : i32
    return %arg0, %c0_i32, %c0_i32_0 : i32, i32, i32
  }
  func.func @transform_2(%arg0: i32) -> (i32, i32) {
    %c0_i32 = arith.constant 0 : i32
    %c0_i32_0 = arith.constant 0 : i32
    %c0_i32_1 = arith.constant 0 : i32
    return %c0_i32, %c0_i32_0 : i32, i32
  }
  func.func @transform_3(%arg0: i32) -> (i32, i32, i32, i32) {
    %c0_i32 = arith.constant 0 : i32
    %c0_i32_0 = arith.constant 0 : i32
    %c0_i32_1 = arith.constant 0 : i32
    %c0_i32_2 = arith.constant 0 : i32
    %c0_i32_3 = arith.constant 0 : i32
    return %c0_i32, %c0_i32_0, %c0_i32_1, %c0_i32_2 : i32, i32, i32, i32
  }
  func.func @transform_4(%arg0: i32) -> (i32, i32, i32) {
    %c0_i32 = arith.constant 0 : i32
    %c0_i32_0 = arith.constant 0 : i32
    %c0_i32_1 = arith.constant 0 : i32
    %c0_i32_2 = arith.constant 0 : i32
    return %c0_i32, %c0_i32_0, %c0_i32_1 : i32, i32, i32
  }
  func.func @transform_5(%arg0: i32) -> (i32, i32) {
    %c0_i32 = arith.constant 0 : i32
    %c0_i32_0 = arith.constant 0 : i32
    %c0_i32_1 = arith.constant 0 : i32
    return %c0_i32, %c0_i32_0 : i32, i32
  }
  func.func @transform_6(%arg0: i32) -> (i32, i32) {
    %c0_i32 = arith.constant 0 : i32
    %c0_i32_0 = arith.constant 0 : i32
    %c0_i32_1 = arith.constant 0 : i32
    return %c0_i32, %c0_i32_0 : i32, i32
  }
  func.func @transform_7(%arg0: i32) -> (i32, i32, i32) {
    %c0_i32 = arith.constant 0 : i32
    %c0_i32_0 = arith.constant 0 : i32
    %c0_i32_1 = arith.constant 0 : i32
    return %arg0, %c0_i32, %c0_i32_0 : i32, i32, i32
  }
  func.func @transform_8(%arg0: i32) -> (i32, i32, i32) {
    %c0_i32 = arith.constant 0 : i32
    %c0_i32_0 = arith.constant 0 : i32
    %c0_i32_1 = arith.constant 0 : i32
    return %arg0, %c0_i32, %c0_i32_0 : i32, i32, i32
  }
}

</mosaic_0001>

<bundles_post_ra>
// kernel: resnet_client_forward.1
= control target key start
LH: loop header
LB: loop body
LE: loop exit
PB: predicated region body
PF: predicated region fallthrough
CT: control target
= control target key end

     0   :  { %s9313_s27 = smov 0   ;;  %s10635_s0 = inlined_call_operand.vmem [shape: bf16[2,16,360], index: 0, kind: input, shape index: {}]   ;;  %s10636_s1 = inlined_call_operand.vmem [shape: bf16[2,16,288], index: 1, kind: input, shape index: {}]   ;;  %s10637_s2 = inlined_call_operand.vmem [shape: f32[1,574], index: 2, kind: input, shape index: {}]   ;;  %s10638_s3 = inlined_call_operand.vmem [shape: bf16[5,9,16,16], index: 3, kind: input, shape index: {}]   ;;  %s10639_s4 = inlined_call_operand.vmem [shape: f32[5,16,1], index: 4, kind: input, shape index: {}]   ;;  %s10640_s5 = inlined_call_operand.vmem [shape: f32[10,16], index: 5, kind: input, shape index: {}]   ;;  %s10641_s6 = inlined_call_operand.vmem [shape: f32[10,1], index: 6, kind: input, shape index: {}]   ;;  %s10642_s7 = inlined_call_operand.vmem [shape: f32[2,10,1], index: 7, kind: output, shape index: {0}]   ;;  %s10643_s8 = inlined_call_operand.vmem [shape: f32[2,16,288], index: 8, kind: output, shape index: {1}]  }
   0x1 LB: > { %s8156_s28 = sadd.s32 4294967295, %s9253_s27   ;;  %p8160_p0 = scmp.ge.s32.totalorder %s9253_s27, 1  ;;  %s9253_s27 = sphi %s9313_s27, %s19_s27  }
   0x2   : > { %p275_p1 = scmp.lt.s32.totalorder %s9253_s27, 3 }
   0x4   : > { %p276_p2 = pnand %p8160_p0, %p275_p1 }
   0x5   : > { %p319_p3 = scmp.lt.s32.totalorder (!%p276_p2), %s8156_s28, 1  ;;  %v9255_v0 = vmov (!%p276_p2), 0.0   ;;  %vm9256_vm0 = vmmov (!%p276_p2), 0   ;;  %v9257_v1 = vmov (!%p276_p2), 0   ;;  %s9258_s11 = smov (!%p276_p2), 127   ;;  %v1360_v5 = vld [vmem:[%s10639_s4] sm:$0xff] (!%p276_p2) }
   0x6   : > { %279 = sbr.rel (%p276_p2) target bundleno = 3181 (0xc6d), region = 48  ;;  %8542 = vmatprep.subr.bf16.mxu1 (!%p276_p2), %v9255_v0  ;;  %8544 = vmatprep.mubr.msk.bf16.mxu1 (!%p276_p2), %vm9256_vm0, %v9255_v0  ;;  %340 = vst [vmem:[#allocation2] sm:$0xff] (!%p276_p2), %v9257_v1  ;;  %342 = vst [vmem:[#allocation2 + $0x10] sm:$0xff] (!%p276_p2), %v9257_v1  ;;  %s9259_s12 = smov (!%p276_p2), 126   ;;  %v1361_v6 = vld [vmem:[%s10639_s4 + $0x8] sm:$0xff] (!%p276_p2)  ;;  %vm380_vm1 = vcmask (!%p276_p2), 1039360  }
   0x7   : > { %422 = vmatprep.mubr.bf16.mxu0 (!%p276_p2), %v9257_v1  ;;  %9142 = vset.pattern.permute.xlu0 (!%p276_p2), %v9257_v1  ;;  %s9260_s13 = smov (!%p276_p2), 110   ;;  %s9261_s14 = smov (!%p276_p2), 109   ;;  %v9198_v10 = vld [vmem:[%s10638_s3 + $0x8] sm:$0xff] (!%p276_p2)   ;;  %vm386_vm2 = vcmask (!%p276_p2), 130048   ;;  %vm583_vm3 = vcmask (!%p276_p2), 1031168   ;;  %v9199_v16 = vld [vmem:[%s10638_s3] sm:$0xff] (!%p276_p2)  }
   0x8   : > { %9143 = vset.pattern.permute.xlu1 (!%p276_p2), %v9257_v1  ;;  %s9262_s15 = smov (!%p276_p2), 108   ;;  %s9263_s16 = smov (!%p276_p2), 92   ;;  %vm696_vm4 = vcmask (!%p276_p2), 900096   ;;  %v9200_v20 = vld [vmem:[%s10638_s3 + $0x10] sm:$0xff] (!%p276_p2)   ;;  %v9201_v25 = vld [vmem:[%s10638_s3 + $0x18] sm:$0xff] (!%p276_p2)   ;;  %vm809_vm5 = vcmask (!%p276_p2), 891904  }
   0x9   : > { %s9264_s17 = smov (!%p276_p2), 91   ;;  %s9265_s18 = smov (!%p276_p2), 90   ;;  %v9202_v31 = vld [vmem:[%s10638_s3 + $0x20] sm:$0xff] (!%p276_p2)   ;;  %vm922_vm6 = vcmask (!%p276_p2), 883712   ;;  %v9203_v36 = vld [vmem:[%s10638_s3 + $0x28] sm:$0xff] (!%p276_p2)   ;;  %v9204_v41 = vld [vmem:[%s10638_s3 + $0x30] sm:$0xff] (!%p276_p2)  }
   0xa   : > { %vm1035_vm7 = vcmask (!%p276_p2), 752640   ;;  %v9205_v46 = vld [vmem:[%s10638_s3 + $0x38] sm:$0xff] (!%p276_p2)   ;;  %vm1148_vm8 = vcmask (!%p276_p2), 744448   ;;  %v9206_v49 = vld [vmem:[%s10638_s3 + $0x40] sm:$0xff] (!%p276_p2)   ;;  %vm1261_vm9 = vcmask (!%p276_p2), 736256   ;;  %vm1408_vm10 = vcmask (!%p276_p2), 261120  }
   0xb   : > { %s9266_s30 = smov (!%p276_p2), 19   ;;  %s9267_s9 = smov (!%p276_p2), 50   ;;  %vm344_vm11 = vcmask (!%p276_p2), 818176   ;;  %vm1425_vm12 = vcmask (!%p276_p2), 154624   ;;  %vm1434_vm13 = vcmask (!%p276_p2), 416768   ;;  %vm1465_vm14 = vcmask (!%p276_p2), 1047952  }
   0xc   : > { %345 = vst.msk [vmem:[#allocation2 + $0x20] sm:$0xff] (!%p276_p2), %vm344_vm11, %v9257_v1  ;;  %vm1431_vm15 = vcmask (!%p276_p2), 1047704   ;;  %vm1468_vm11 = vcmask (!%p276_p2), 670720  }
   0xd   : > { %s10645_s28 = smov (!%p319_p3, %s8156_s28), 1 }
   0xe   : > { %s9119_s29 = smul.u32 24, %s10645_s28 }
   0xf   : > { %s9120_s23 = smul.u32 48, %s10645_s28 }
  0x10   : > { %s323_s10 = scalar_lea.vmem %s10635_s0, %s9119_s29  ;;  %s9467_s21 = scalar_lea.vmem %s10636_s1, %s9119_s29 }
  0x11   : > { %v9194_v2 = vld [vmem:[%s323_s10 + $0x4] ss:$12 sps:$4 sm:$0xff]   ;;  %v9196_v3 = vld [vmem:[%s323_s10] ss:$12 sps:$4 sm:$0xff]   ;;  %v9197_v4 = vld [vmem:[%s323_s10 + $0x8] ss:$12 sps:$4 sm:$0xff]   ;;  %s9484_s26 = scalar_lea.vmem %s10643_s8, %s9120_s23 }
  0x12   : > { %376 = vrot.lane.b32.xlu0 %v9194_v2, %s9258_s11  ;;  %374 = vrot.lane.b32.xlu1 %v9196_v3, %s9258_s11 }
  0x16   : > { %378 = vrot.lane.b32.xlu0 %v9197_v4, %s9258_s11  ;;  %579 = vrot.lane.b32.xlu1 %v9194_v2, %s9259_s12 }
  0x1a   : > { %581 = vrot.lane.b32.xlu0 %v9197_v4, %s9259_s12  ;;  %577 = vrot.lane.b32.xlu1 %v9196_v3, %s9259_s12 }
  0x1e   : > { %692 = vrot.lane.b32.xlu0 %v9194_v2, %s9260_s13  ;;  %694 = vrot.lane.b32.xlu1 %v9197_v4, %s9260_s13 }
  0x22   : > { %690 = vrot.lane.b32.xlu0 %v9196_v3, %s9260_s13  ;;  %805 = vrot.lane.b32.xlu1 %v9194_v2, %s9261_s14 }
  0x26   : > { %807 = vrot.lane.b32.xlu0 %v9197_v4, %s9261_s14  ;;  %803 = vrot.lane.b32.xlu1 %v9196_v3, %s9261_s14 }
  0x2a   : > { %918 = vrot.lane.b32.xlu0 %v9194_v2, %s9262_s15  ;;  %920 = vrot.lane.b32.xlu1 %v9197_v4, %s9262_s15 }
  0x2e   : > { %916 = vrot.lane.b32.xlu0 %v9196_v3, %s9262_s15  ;;  %1031 = vrot.lane.b32.xlu1 %v9194_v2, %s9263_s16 }
  0x32   : > { %1033 = vrot.lane.b32.xlu0 %v9197_v4, %s9263_s16  ;;  %1029 = vrot.lane.b32.xlu1 %v9196_v3, %s9263_s16 }
  0x36   : > { %1144 = vrot.lane.b32.xlu0 %v9194_v2, %s9264_s17  ;;  %1146 = vrot.lane.b32.xlu1 %v9197_v4, %s9264_s17 }
  0x3a   : > { %1142 = vrot.lane.b32.xlu0 %v9196_v3, %s9264_s17  ;;  %1257 = vrot.lane.b32.xlu1 %v9194_v2, %s9265_s18 }
  0x3e   : > { %1259 = vrot.lane.b32.xlu0 %v9197_v4, %s9265_s18  ;;  %1255 = vrot.lane.b32.xlu1 %v9196_v3, %s9265_s18 }
  0x42   : > { %1364 = vperm.xlu0 %9142, %v1360_v5   ;;  %1369 = vperm.xlu1 %9143, %v1361_v6  }
  0x84   : > { %v377_v7 = vpop.permute.xlu0 %376  ;;  %v375_v8 = vpop.permute.xlu1 %374 }
  0x85   : > { %v381_v12 = vsel %vm380_vm1, %v375_v8, %v377_v7 }
  0x88   : > { %v379_v9 = vpop.permute.xlu0 %378  ;;  %v580_v13 = vpop.permute.xlu1 %579 }
  0x89   : > { %8543 = vmatpush3.bf16.msra.mxu1 %v379_v9  ;;  %v382_v11 = vsel %vm380_vm1, %v377_v7, %v379_v9 }
  0x8a   : > { %390 = vmatprep.subr.bf16.mxu0 %v382_v11  ;;  %8548 = vmatprep.subr.bf16.mxu1 %v9255_v0 }
  0x8b   : > { %391 = vmatpush1.bf16.msra.mxu0 %v381_v12 }
  0x8c   : > { %8545 = vmatmul.mubr.msk.bf16.vlgmr.msra.gmra.mrb[0].mxu1 %vm386_vm2, %v9198_v10  ;;  %485 = vmatprep.subr.bf16.mxu0 %v9194_v2  ;;  %v582_v14 = vpop.permute.xlu0 %581  ;;  %v578_v17 = vpop.permute.xlu1 %577 }
  0x8d   : > { %8549 = vmatpush3.bf16.msra.mxu1 %v9197_v4  ;;  %8550 = vmatprep.mubr.msk.bf16.mxu1 %vm9256_vm0, %v9255_v0  ;;  %v585_v15 = vsel %vm583_vm3, %v580_v13, %v582_v14  ;;  %v584_v19 = vsel %vm583_vm3, %v578_v17, %v580_v13 }
  0x8e   : > { %8172 = vmatmul.mubr.msk.bf16.vlgmr.msra.gmra.mrb[0].mxu0 %vm386_vm2, %v9198_v10  ;;  %8554 = vmatprep.subr.bf16.mxu1 %v9255_v0 }
  0x8f   : > { %486 = vmatpush1.bf16.msra.mxu0 %v9196_v3  ;;  %517 = vmatprep.mubr.bf16.mxu0 %v9257_v1 }
  0x90   : > { %592 = vmatprep.subr.bf16.mxu0 %v585_v15  ;;  %v693_v18 = vpop.permute.xlu0 %692  ;;  %v695_v21 = vpop.permute.xlu1 %694 }
  0x91   : > { %v698_v22 = vsel %vm696_vm4, %v693_v18, %v695_v21 }
  0x94   : > { %8551 = vmatmul.mubr.msk.bf16.vlgmr.msra.gmra.mrb[4].mxu1 %vm386_vm2, %v9199_v16  ;;  %v691_v23 = vpop.permute.xlu0 %690  ;;  %v806_v24 = vpop.permute.xlu1 %805 }
  0x95   : > { %8555 = vmatpush3.bf16.msra.mxu1 %v582_v14  ;;  %8556 = vmatprep.mubr.msk.bf16.mxu1 %vm9256_vm0, %v9255_v0  ;;  %v697_v27 = vsel %vm696_vm4, %v691_v23, %v693_v18 }
  0x96   : > { %8560 = vmatprep.subr.bf16.mxu1 %v9255_v0 }
  0x98   : > { %v808_v26 = vpop.permute.xlu0 %807  ;;  %v804_v28 = vpop.permute.xlu1 %803 }
  0x99   : > { %v811_v29 = vsel %vm809_vm5, %v806_v24, %v808_v26  ;;  %v810_v35 = vsel %vm809_vm5, %v804_v28, %v806_v24 }
  0x9a   : > { %8175 = vmatmul.mubr.msk.bf16.vlgmr.msra.gmra.mrb[0].mxu0 %vm386_vm2, %v9199_v16 }
  0x9b   : > { %593 = vmatpush1.bf16.msra.mxu0 %v584_v19  ;;  %624 = vmatprep.mubr.bf16.mxu0 %v9257_v1 }
  0x9c   : > { %8557 = vmatmul.mubr.msk.bf16.vlgmr.msra.gmra.mrb[8].mxu1 %vm386_vm2, %v9200_v20  ;;  %705 = vmatprep.subr.bf16.mxu0 %v698_v22  ;;  %v919_v30 = vpop.permute.xlu0 %918  ;;  %v921_v32 = vpop.permute.xlu1 %920 }
  0x9d   : > { %8561 = vmatpush3.bf16.msra.mxu1 %v695_v21  ;;  %8562 = vmatprep.mubr.msk.bf16.mxu1 %vm9256_vm0, %v9255_v0  ;;  %v924_v37 = vsel %vm922_vm6, %v919_v30, %v921_v32 }
  0x9e   : > { %8566 = vmatprep.subr.bf16.mxu1 %v9255_v0 }
  0xa0   : > { %v917_v33 = vpop.permute.xlu0 %916  ;;  %v1032_v34 = vpop.permute.xlu1 %1031 }
  0xa1   : > { %v923_v43 = vsel %vm922_vm6, %v917_v33, %v919_v30 }
  0xa4   : > { %8563 = vmatmul.mubr.msk.bf16.vlgmr.msra.gmra.mrb[12].mxu1 %vm386_vm2, %v9201_v25  ;;  %v1034_v38 = vpop.permute.xlu0 %1033  ;;  %v1030_v39 = vpop.permute.xlu1 %1029 }
  0xa5   : > { %8567 = vmatpush3.bf16.msra.mxu1 %v808_v26  ;;  %8568 = vmatprep.mubr.msk.bf16.mxu1 %vm9256_vm0, %v9255_v0  ;;  %v1037_v45 = vsel %vm1035_vm7, %v1032_v34, %v1034_v38  ;;  %v1036_v48 = vsel %vm1035_vm7, %v1030_v39, %v1032_v34  ;;  %v1385_v34 = vlaneseq }
  0xa6   : > { %8180 = vmatmul.mubr.msk.bf16.vlgmr.msra.gmra.mrb[0].mxu0 %vm386_vm2, %v9200_v20  ;;  %8572 = vmatprep.subr.bf16.mxu1 %v9255_v0 }
  0xa7   : > { %706 = vmatpush1.bf16.msra.mxu0 %v697_v27  ;;  %737 = vmatprep.mubr.bf16.mxu0 %v9257_v1 }
  0xa8   : > { %818 = vmatprep.subr.bf16.mxu0 %v811_v29  ;;  %v1145_v40 = vpop.permute.xlu0 %1144  ;;  %v1147_v42 = vpop.permute.xlu1 %1146 }
  0xa9   : > { %v1150_v50 = vsel %vm1148_vm8, %v1145_v40, %v1147_v42 }
  0xac   : > { %8569 = vmatmul.mubr.msk.bf16.vlgmr.msra.gmra.mrb[16].mxu1 %vm386_vm2, %v9202_v31  ;;  %v1143_v44 = vpop.permute.xlu0 %1142  ;;  %v1258_v52 = vpop.permute.xlu1 %1257 }
  0xad   : > { %8573 = vmatpush3.bf16.msra.mxu1 %v921_v32  ;;  %8574 = vmatprep.mubr.msk.bf16.mxu1 %vm9256_vm0, %v9255_v0  ;;  %v1149_v51 = vsel %vm1148_vm8, %v1143_v44, %v1145_v40 }
  0xae   : > { %8578 = vmatprep.subr.bf16.mxu1 %v9255_v0 }
  0xb0   : > { %v1260_v47 = vpop.permute.xlu0 %1259  ;;  %v1256_v54 = vpop.permute.xlu1 %1255 }
  0xb1   : > { %v1263_v53 = vsel %vm1261_vm9, %v1258_v52, %v1260_v47  ;;  %v1262_v55 = vsel %vm1261_vm9, %v1256_v54, %v1258_v52 }
  0xb2   : > { %8185 = vmatmul.mubr.msk.bf16.vlgmr.msra.gmra.mrb[0].mxu0 %vm386_vm2, %v9201_v25 }
  0xb3   : > { %819 = vmatpush1.bf16.msra.mxu0 %v810_v35  ;;  %850 = vmatprep.mubr.bf16.mxu0 %v9257_v1 }
  0xb4   : > { %8575 = vmatmul.mubr.msk.bf16.vlgmr.msra.gmra.mrb[20].mxu1 %vm386_vm2, %v9203_v36  ;;  %931 = vmatprep.subr.bf16.mxu0 %v924_v37 }
  0xb5   : > { %8579 = vmatpush3.bf16.msra.mxu1 %v1034_v38  ;;  %8580 = vmatprep.mubr.msk.bf16.mxu1 %vm9256_vm0, %v9255_v0 }
  0xb6   : > { %8584 = vmatprep.subr.bf16.mxu1 %v9255_v0 }
  0xbc   : > { %8581 = vmatmul.mubr.msk.bf16.vlgmr.msra.gmra.mrb[24].mxu1 %vm386_vm2, %v9204_v41 }
  0xbd   : > { %8585 = vmatpush3.bf16.msra.mxu1 %v1147_v42  ;;  %8586 = vmatprep.mubr.msk.bf16.mxu1 %vm9256_vm0, %v9255_v0 }
  0xbe   : > { %8190 = vmatmul.mubr.msk.bf16.vlgmr.msra.gmra.mrb[0].mxu0 %vm386_vm2, %v9202_v31  ;;  %8590 = vmatprep.subr.bf16.mxu1 %v9255_v0 }
  0xbf   : > { %932 = vmatpush1.bf16.msra.mxu0 %v923_v43  ;;  %963 = vmatprep.mubr.bf16.mxu0 %v9257_v1 }
  0xc0   : > { %1044 = vmatprep.subr.bf16.mxu0 %v1037_v45  ;;  %v9475_v45 = vld [vmem:[%s10637_s2] sm:$0x1f] }
  0xc1   : > { %v1365_v44 = vpop.permute.xlu0 %1364 }
  0xc4   : > { %8587 = vmatmul.mubr.msk.bf16.vlgmr.msra.gmra.mrb[28].mxu1 %vm386_vm2, %v9205_v46 }
  0xc5   : > { %8591 = vmatpush3.bf16.msra.mxu1 %v1260_v47  ;;  %8592 = vmatprep.mubr.msk.bf16.mxu1 %vm9256_vm0, %v9255_v0 }
  0xca   : > { %8195 = vmatmul.mubr.msk.bf16.vlgmr.msra.gmra.mrb[0].mxu0 %vm386_vm2, %v9203_v36 }
  0xcb   : > { %1045 = vmatpush1.bf16.msra.mxu0 %v1036_v48  ;;  %1076 = vmatprep.mubr.bf16.mxu0 %v9257_v1 }
  0xcc   : > { %8593 = vmatmul.mubr.msk.bf16.vlgmr.msra.gmra.mrb[32].mxu1 %vm386_vm2, %v9206_v49  ;;  %1157 = vmatprep.subr.bf16.mxu0 %v1150_v50 }
  0xcd   : > { %1588 = vmatprep.mubr.bf16.mxu1 %v9257_v1 }
  0xd6   : > { %8200 = vmatmul.mubr.msk.bf16.vlgmr.msra.gmra.mrb[0].mxu0 %vm386_vm2, %v9204_v41  ;;  %v9469_v41 = vshrl.u32 %v1385_v34, 7 }
  0xd7   : > { %1158 = vmatpush1.bf16.msra.mxu0 %v1149_v51  ;;  %1189 = vmatprep.mubr.bf16.mxu0 %v9257_v1 }
  0xd8   : > { %1270 = vmatprep.subr.bf16.mxu0 %v1263_v53  ;;  %v1395_v42 = vsub.s32 2, %v9469_v41 }
  0xda   : > { %v9479_v52 = vrot.slane %v9475_v45, %v1395_v42 }
  0xe2   : > { %8205 = vmatmul.mubr.msk.bf16.vlgmr.msra.gmra.mrb[0].mxu0 %vm386_vm2, %v9205_v46 }
  0xe3   : > { %1271 = vmatpush1.bf16.msra.mxu0 %v1262_v55  ;;  %1302 = vmatprep.mubr.bf16.mxu0 %v9257_v1 }
  0xee   : > { %8210 = vmatmul.mubr.msk.bf16.vlgmr.msra.gmra.mrb[0].mxu0 %vm386_vm2, %v9206_v49  ;;  %v1370_v49 = vpop.permute.xlu1 %1369 }
  0xef   : > { %1545 = vmatprep.mubr.bf16.mxu0 %v9257_v1 }
 0x15f   : > { %v467_v56 = vpop.f32.mrb[0].mxu1 }
 0x160   : > { %v8546_v57 = vpop.f32.mrb[1].mxu1 }
 0x161   : > { %v470_v58 = vpop.f32.mrb[2].mxu1 }
 0x162   : > { %v8547_v59 = vpop.f32.mrb[3].mxu1 }
 0x167   : > { %v562_v60 = vpop.f32.mrb[4].mxu1 }
 0x168   : > { %v563_v61 = vadd.f32 %v562_v60, %v467_v56  ;;  %v8552_v62 = vpop.f32.mrb[5].mxu1  ;;  %v9207_v60 = vld [vmem:[%s9467_s21] ss:$12 sps:$4 sm:$0xff]  }
 0x169   : > { %v565_v63 = vpop.f32.mrb[6].mxu1  ;;  %v1387_v62 = vsub.s32 0, %v9469_v41 }
 0x16a   : > { %v566_v2 = vadd.f32 %v565_v63, %v470_v58  ;;  %v8553_v3 = vpop.f32.mrb[7].mxu1  ;;  %v1391_v63 = vsub.s32 1, %v9469_v41 }
 0x16f   : > { %v669_v4 = vpop.f32.mrb[8].mxu1 }
 0x170   : > { %v678_v5 = vadd.f32 %v669_v4, %v563_v61  ;;  %v8558_v6 = vpop.f32.mrb[9].mxu1  ;;  %v9210_v61 = vld [vmem:[%s9467_s21 + $0x8] ss:$12 sps:$4 sm:$0xff]   ;;  %v9498_v4 = vrot.slane %v9475_v45, %v1387_v62 }
 0x171   : > { %v672_v7 = vpop.f32.mrb[10].mxu1 }
 0x172   : > { %v681_v8 = vadd.f32 %v672_v7, %v566_v2  ;;  %v8559_v9 = vpop.f32.mrb[11].mxu1  ;;  %v9501_v7 = vrot.slane %v9475_v45, %v1391_v63 }
 0x177   : > { %v782_v10 = vpop.f32.mrb[12].mxu1 }
 0x178   : > { %v791_v11 = vadd.f32 %v782_v10, %v678_v5  ;;  %v8564_v12 = vpop.f32.mrb[13].mxu1 }
 0x179   : > { %v785_v13 = vpop.f32.mrb[14].mxu1 }
 0x17a   : > { %v794_v14 = vadd.f32 %v785_v13, %v681_v8  ;;  %v8565_v15 = vpop.f32.mrb[15].mxu1 }
 0x17f   : > { %v895_v16 = vpop.f32.mrb[16].mxu1 }
 0x180   : > { %v904_v17 = vadd.f32 %v895_v16, %v791_v11  ;;  %v8570_v18 = vpop.f32.mrb[17].mxu1 }
 0x181   : > { %v898_v19 = vpop.f32.mrb[18].mxu1 }
 0x182   : > { %v907_v20 = vadd.f32 %v898_v19, %v794_v14  ;;  %v8571_v21 = vpop.f32.mrb[19].mxu1 }
 0x187   : > { %v1008_v22 = vpop.f32.mrb[20].mxu1 }
 0x188   : > { %v1017_v23 = vadd.f32 %v1008_v22, %v904_v17  ;;  %v8576_v24 = vpop.f32.mrb[21].mxu1  ;;  %v9209_v22 = vld [vmem:[%s9467_s21 + $0x4] ss:$12 sps:$4 sm:$0xff]  }
 0x189   : > { %v1011_v25 = vpop.f32.mrb[22].mxu1 }
 0x18a   : > { %v1020_v26 = vadd.f32 %v1011_v25, %v907_v20  ;;  %v8577_v27 = vpop.f32.mrb[23].mxu1 }
 0x18f   : > { %v1121_v28 = vpop.f32.mrb[24].mxu1 }
 0x190   : > { %v1130_v29 = vadd.f32 %v1121_v28, %v1017_v23  ;;  %v8582_v30 = vpop.f32.mrb[25].mxu1 }
 0x191   : > { %v1124_v31 = vpop.f32.mrb[26].mxu1 }
 0x192   : > { %v1133_v32 = vadd.f32 %v1124_v31, %v1020_v26  ;;  %v8583_v33 = vpop.f32.mrb[27].mxu1 }
 0x197   : > { %v1234_v35 = vpop.f32.mrb[28].mxu1 }
 0x198   : > { %v1243_v36 = vadd.f32 %v1234_v35, %v1130_v29  ;;  %v8588_v37 = vpop.f32.mrb[29].mxu1 }
 0x199   : > { %v1237_v38 = vpop.f32.mrb[30].mxu1  ;;  %v8270_v37 = vld [vmem:[%s10639_s4 + $0x18] sm:$0xff] }
 0x19a   : > { %v1246_v39 = vadd.f32 %v1237_v38, %v1133_v32  ;;  %v8589_v40 = vpop.f32.mrb[31].mxu1 }
 0x19f   : > { %v1347_v43 = vpop.f32.mrb[32].mxu1 }
 0x1a0   : > { %v1356_v46 = vadd.f32 %v1347_v43, %v1243_v36  ;;  %v8594_v47 = vpop.f32.mrb[33].mxu1  ;;  %v8269_v36 = vld [vmem:[%s10639_s4 + $0x10] sm:$0xff] }
 0x1a1   : > { %v1350_v48 = vpop.f32.mrb[34].mxu1 }
 0x1a2   : > { %v1374_v50 = vadd.f32 %v1365_v44, %v1356_v46  ;;  %v1359_v51 = vadd.f32 %v1350_v48, %v1246_v39  ;;  %v8595_v53 = vpop.f32.mrb[35].mxu1 }
 0x1a4   : > { %v1380_v54 = vmax.f32 %v1374_v50, 0.0  ;;  %v1377_v55 = vadd.f32 %v1370_v49, %v1359_v51 }
 0x1a6   : > { %v1383_v56 = vmax.f32 %v1377_v55, 0.0  ;;  %v1402_v57 = vmul.f32 %v9479_v52, %v1380_v54 }
 0x1a8   : > { %v1405_v58 = vmul.f32 %v9479_v52, %v1383_v56  ;;  %1409 = vst.msk [vmem:[%s9484_s26 + $0x10] sm:$0xff] %vm1408_vm10, %v1402_v57 }
 0x1aa   : > { %v1415_v59 = vpack.c.bf16 %v1405_v58, %v1402_v57  ;;  %1412 = vst.msk [vmem:[%s9484_s26 + $0x28] sm:$0xff] %vm1408_vm10, %v1405_v58  ;;  %vm1459_vm10 = vcmask 408576   ;;  %v9212_v58 = vld [vmem:[%s10638_s3 + $0x48] sm:$0xff]  }
 0x1ac   : > { %1423 = vrot.lane.b32.xlu0 %v1415_v59, %s9266_s30 }
 0x1b0   : > { %1453 = vrot.lane.b32.xlu0 %v9207_v60, %s9267_s9 }
 0x1b4   : > { %1457 = vrot.lane.b32.xlu0 %v9210_v61, %s9267_s9 }
 0x1c1   : > { %v1304_v2 = vpop.f32.mrb[0].mxu0 }
 0x1c2   : > { %v1372_v3 = vadd.f32 %v1365_v44, %v1304_v2  ;;  %v1306_v5 = vpop.f32.mrb[1].mxu0 }
 0x1c3   : > { %v1373_v6 = vadd.f32 %v1365_v44, %v1306_v5  ;;  %v1308_v8 = vpop.f32.mrb[2].mxu0  ;;  %v9211_v44 = vld [vmem:[%s10638_s3 + $0x50] sm:$0xff]  }
 0x1c4   : > { %v1378_v9 = vmax.f32 %v1372_v3, 0.0  ;;  %v1375_v10 = vadd.f32 %v1370_v49, %v1308_v8  ;;  %v1310_v11 = vpop.f32.mrb[3].mxu0  ;;  %v9213_v3 = vld [vmem:[%s10638_s3 + $0x58] sm:$0xff]  }
 0x1c5   : > { %v1379_v12 = vmax.f32 %v1373_v6, 0.0  ;;  %v1376_v13 = vadd.f32 %v1370_v49, %v1310_v11 }
 0x1c6   : > { %v1400_v14 = vmul.f32 %v9498_v4, %v1378_v9  ;;  %v1381_v15 = vmax.f32 %v1375_v10, 0.0 }
 0x1c7   : > { %v1401_v16 = vmul.f32 %v9501_v7, %v1379_v12  ;;  %v1382_v17 = vmax.f32 %v1376_v13, 0.0 }
 0x1c8   : > { %1406 = vst [vmem:[%s9484_s26] sm:$0xff] %v1400_v14  ;;  %v1403_v18 = vmul.f32 %v9498_v4, %v1381_v15 }
 0x1c9   : > { %1407 = vst [vmem:[%s9484_s26 + $0x8] sm:$0xff] %v1401_v16  ;;  %v1404_v19 = vmul.f32 %v9501_v7, %v1382_v17 }
 0x1ca   : > { %1410 = vst [vmem:[%s9484_s26 + $0x18] sm:$0xff] %v1403_v18  ;;  %v1413_v20 = vpack.c.bf16 %v1403_v18, %v1400_v14  ;;  %v9214_v18 = vld [vmem:[%s10638_s3 + $0x60] sm:$0xff]  }
 0x1cb   : > { %1411 = vst [vmem:[%s9484_s26 + $0x20] sm:$0xff] %v1404_v19  ;;  %v1414_v21 = vpack.c.bf16 %v1404_v19, %v1401_v16 }
 0x1cd   : > { %1421 = vrot.lane.b32.xlu1 %v1414_v21, %s9266_s30 }
 0x1d1   : > { %1419 = vrot.lane.b32.xlu1 %v1413_v20, %s9266_s30 }
 0x1d5   : > { %1455 = vrot.lane.b32.xlu1 %v9209_v22, %s9267_s9 }
 0x21e   : > { %v1424_v23 = vpop.permute.xlu0 %1423 }
 0x222   : > { %v1454_v25 = vpop.permute.xlu0 %1453 }
 0x226   : > { %v1458_v29 = vpop.permute.xlu0 %1457 }
 0x23f   : > { %v1422_v24 = vpop.permute.xlu1 %1421 }
 0x240   : > { %v1427_v26 = vsel %vm1425_vm12, %v1422_v24, %v1424_v23 }
 0x241   : > { %1435 = vst.msk [vmem:[#allocation2 + $0x10] sm:$0xff] %vm1434_vm13, %v1427_v26  ;;  %vm3030_vm13 = vcmask 662528  }
 0x242   : > { %1466 = vst.msk [vmem:[#allocation2 + $0x10] sm:$0xff] %vm1465_vm14, %v1454_v25 }
 0x243   : > { %v1420_v27 = vpop.permute.xlu1 %1419 }
 0x244   : > { %v9518_v28 = vsel %vm1425_vm12, %v1420_v27, %v1422_v24  ;;  %1432 = vst.msk [vmem:[#allocation2] sm:$0xff] %vm1431_vm15, %v1420_v27 }
 0x245   : > { %1493 = vrot.lane.b32.xlu1 %v9518_v28, %s9258_s11 }
 0x247   : > { %v1456_v30 = vpop.permute.xlu1 %1455 }
 0x248   : > { %v1461_v31 = vsel %vm1459_vm10, %v1456_v30, %v1458_v29  ;;  %v9531_v34 = vsel %vm1459_vm10, %v1454_v25, %v1456_v30  ;;  %v9215_v25 = vld [vmem:[%s10638_s3 + $0x68] sm:$0xff]  }
 0x249   : > { %1469 = vst.msk [vmem:[#allocation2 + $0x20] sm:$0xff] %vm1468_vm11, %v1461_v31  ;;  %v9523_v32 = vld [vmem:[#allocation2 + $0x10] sm:$0xff] }
 0x24a   : > { %1495 = vrot.lane.b32.xlu0 %v9523_v32, %s9258_s11 }
 0x24b   : > { %v9527_v33 = vld [vmem:[#allocation2] sm:$0xff] }
 0x24c   : > { %1491 = vrot.lane.b32.xlu1 %v9527_v33, %s9258_s11 }
 0x24e   : > { %1497 = vrot.lane.b32.xlu0 %v9531_v34, %s9258_s11 }
 0x250   : > { %v9535_v35 = vld [vmem:[#allocation2 + $0x20] sm:$0xff] }
 0x251   : > { %1499 = vrot.lane.b32.xlu1 %v9535_v35, %s9258_s11 }
 0x252   : > { %1785 = vrot.lane.b32.xlu0 %v9518_v28, %s9259_s12 }
 0x255   : > { %1787 = vrot.lane.b32.xlu1 %v9523_v32, %s9259_s12 }
 0x256   : > { %1783 = vrot.lane.b32.xlu0 %v9527_v33, %s9259_s12 }
 0x259   : > { %1789 = vrot.lane.b32.xlu1 %v9531_v34, %s9259_s12 }
 0x25a   : > { %1791 = vrot.lane.b32.xlu0 %v9535_v35, %s9259_s12 }
 0x25d   : > { %1952 = vrot.lane.b32.xlu1 %v9518_v28, %s9260_s13 }
 0x25e   : > { %1954 = vrot.lane.b32.xlu0 %v9523_v32, %s9260_s13 }
 0x261   : > { %1950 = vrot.lane.b32.xlu1 %v9527_v33, %s9260_s13 }
 0x262   : > { %1956 = vrot.lane.b32.xlu0 %v9531_v34, %s9260_s13 }
 0x265   : > { %1958 = vrot.lane.b32.xlu1 %v9535_v35, %s9260_s13 }
 0x266   : > { %2119 = vrot.lane.b32.xlu0 %v9518_v28, %s9261_s14 }
 0x269   : > { %2121 = vrot.lane.b32.xlu1 %v9523_v32, %s9261_s14 }
 0x26a   : > { %2117 = vrot.lane.b32.xlu0 %v9527_v33, %s9261_s14 }
 0x26d   : > { %2123 = vrot.lane.b32.xlu1 %v9531_v34, %s9261_s14 }
 0x26e   : > { %2125 = vrot.lane.b32.xlu0 %v9535_v35, %s9261_s14 }
 0x271   : > { %2286 = vrot.lane.b32.xlu1 %v9518_v28, %s9262_s15 }
 0x272   : > { %2288 = vrot.lane.b32.xlu0 %v9523_v32, %s9262_s15 }
 0x275   : > { %2284 = vrot.lane.b32.xlu1 %v9527_v33, %s9262_s15 }
 0x276   : > { %2290 = vrot.lane.b32.xlu0 %v9531_v34, %s9262_s15 }
 0x279   : > { %2292 = vrot.lane.b32.xlu1 %v9535_v35, %s9262_s15 }
 0x27a   : > { %2453 = vrot.lane.b32.xlu0 %v9518_v28, %s9263_s16 }
 0x27d   : > { %2455 = vrot.lane.b32.xlu1 %v9523_v32, %s9263_s16 }
 0x27e   : > { %2451 = vrot.lane.b32.xlu0 %v9527_v33, %s9263_s16 }
 0x281   : > { %2457 = vrot.lane.b32.xlu1 %v9531_v34, %s9263_s16 }
 0x282   : > { %2459 = vrot.lane.b32.xlu0 %v9535_v35, %s9263_s16 }
 0x285   : > { %2620 = vrot.lane.b32.xlu1 %v9518_v28, %s9264_s17 }
 0x286   : > { %2622 = vrot.lane.b32.xlu0 %v9523_v32, %s9264_s17 }
 0x289   : > { %2618 = vrot.lane.b32.xlu1 %v9527_v33, %s9264_s17 }
 0x28a   : > { %2624 = vrot.lane.b32.xlu0 %v9531_v34, %s9264_s17 }
 0x28d   : > { %2626 = vrot.lane.b32.xlu1 %v9535_v35, %s9264_s17 }
 0x28e   : > { %2787 = vrot.lane.b32.xlu0 %v9518_v28, %s9265_s18 }
 0x291   : > { %2789 = vrot.lane.b32.xlu1 %v9523_v32, %s9265_s18 }
 0x292   : > { %2785 = vrot.lane.b32.xlu0 %v9527_v33, %s9265_s18 }
 0x295   : > { %2791 = vrot.lane.b32.xlu1 %v9531_v34, %s9265_s18 }
 0x296   : > { %2793 = vrot.lane.b32.xlu0 %v9535_v35, %s9265_s18 }
 0x299   : > { %2949 = vperm.xlu1 %9143, %v8269_v36  }
 0x29a   : > { %2954 = vperm.xlu0 %9142, %v8270_v37  }
 0x2b7   : > { %v1494_v38 = vpop.permute.xlu1 %1493 }
 0x2bc   : > { %v1496_v39 = vpop.permute.xlu0 %1495 }
 0x2bd   : > { %v1502_v40 = vsel %vm380_vm1, %v1494_v38, %v1496_v39 }
 0x2be   : > { %1513 = vmatprep.subr.bf16.mxu0 %v1502_v40  ;;  %v1492_v42 = vpop.permute.xlu1 %1491 }
 0x2bf   : > { %v1501_v43 = vsel %vm380_vm1, %v1492_v42, %v1494_v38 }
 0x2c0   : > { %v1498_v46 = vpop.permute.xlu0 %1497  ;;  %1514 = vmatpush1.bf16.msra.mxu0 %v1501_v43  ;;  %v9216_v43 = vld [vmem:[%s10638_s3 + $0x70] sm:$0xff]  }
 0x2c1   : > { %8596 = vmatprep.subr.bf16.mxu0 %v9255_v0  ;;  %v1503_v50 = vsel %vm380_vm1, %v1496_v39, %v1498_v46 }
 0x2c3   : > { %v1500_v47 = vpop.permute.xlu1 %1499  ;;  %8220 = vmatmul.mubr.msk.bf16.vlgmr.msra.gmra.mrb[4].mxu0 %vm386_vm2, %v9211_v44 }
 0x2c4   : > { %v1786_v48 = vpop.permute.xlu0 %1785  ;;  %v1504_v49 = vsel %vm380_vm1, %v1498_v46, %v1500_v47  ;;  %8597 = vmatpush3.bf16.msra.mxu0 %v1500_v47  ;;  %8598 = vmatprep.mubr.msk.bf16.mxu0 %vm9256_vm0, %v9255_v0 }
 0x2c5   : > { %1556 = vmatprep.subr.bf16.mxu1 %v1504_v49  ;;  %1648 = vmatprep.subr.bf16.mxu0 %v9518_v28 }
 0x2c6   : > { %1557 = vmatpush1.bf16.msra.mxu1 %v1503_v50 }
 0x2c7   : > { %1691 = vmatprep.subr.bf16.mxu1 %v9531_v34  ;;  %v1788_v51 = vpop.permute.xlu1 %1787 }
 0x2c8   : > { %v1784_v53 = vpop.permute.xlu0 %1783  ;;  %v1794_v55 = vsel %vm583_vm3, %v1786_v48, %v1788_v51 }
 0x2c9   : > { %8221 = vmatmul.mubr.msk.bf16.vlgmr.msra.gmra.mrb[36].mxu1 %vm386_vm2, %v9211_v44  ;;  %v1793_v59 = vsel %vm583_vm3, %v1784_v53, %v1786_v48 }
 0x2ca   : > { %1692 = vmatpush1.bf16.msra.mxu1 %v9523_v32  ;;  %1723 = vmatprep.mubr.bf16.mxu1 %v9257_v1 }
 0x2cb   : > { %v1790_v54 = vpop.permute.xlu1 %1789  ;;  %8599 = vmatmul.mubr.msk.bf16.vlgmr.msra.gmra.mrb[8].mxu0 %vm386_vm2, %v9211_v44  ;;  %8602 = vmatprep.subr.bf16.mxu1 %v9255_v0 }
 0x2cc   : > { %1649 = vmatpush1.bf16.msra.mxu0 %v9527_v33  ;;  %1680 = vmatprep.mubr.bf16.mxu0 %v9257_v1  ;;  %v1792_v56 = vpop.permute.xlu0 %1791  ;;  %v1795_v6 = vsel %vm583_vm3, %v1788_v51, %v1790_v54  ;;  %v9217_v51 = vld [vmem:[%s10638_s3 + $0x78] sm:$0xff]  }
 0x2cd   : > { %1805 = vmatprep.subr.bf16.mxu0 %v1794_v55  ;;  %v1796_v62 = vsel %vm583_vm3, %v1790_v54, %v1792_v56 }
 0x2cf   : > { %v1953_v57 = vpop.permute.xlu1 %1952 }
 0x2d0   : > { %v1955_v60 = vpop.permute.xlu0 %1954 }
 0x2d1   : > { %v1961_v10 = vsel %vm696_vm4, %v1953_v57, %v1955_v60 }
 0x2d3   : > { %v1951_v61 = vpop.permute.xlu1 %1950  ;;  %8224 = vmatmul.mubr.msk.bf16.vlgmr.msra.gmra.mrb[4].mxu0 %vm386_vm2, %v9212_v58 }
 0x2d4   : > { %1806 = vmatpush1.bf16.msra.mxu0 %v1793_v59  ;;  %1837 = vmatprep.mubr.bf16.mxu0 %v9257_v1  ;;  %v1957_v2 = vpop.permute.xlu0 %1956  ;;  %v1960_v14 = vsel %vm696_vm4, %v1951_v61, %v1953_v57 }
 0x2d5   : > { %8225 = vmatmul.mubr.msk.bf16.vlgmr.msra.gmra.mrb[36].mxu1 %vm386_vm2, %v9212_v58  ;;  %8608 = vmatprep.subr.bf16.mxu0 %v9255_v0  ;;  %v1962_v13 = vsel %vm696_vm4, %v1955_v60, %v1957_v2 }
 0x2d6   : > { %8603 = vmatpush3.bf16.msra.mxu1 %v9535_v35  ;;  %8604 = vmatprep.mubr.msk.bf16.mxu1 %vm9256_vm0, %v9255_v0 }
 0x2d7   : > { %1848 = vmatprep.subr.bf16.mxu1 %v1796_v62  ;;  %v1959_v63 = vpop.permute.xlu1 %1958 }
 0x2d8   : > { %v1963_v8 = vsel %vm696_vm4, %v1957_v2, %v1959_v63  ;;  %v2120_v9 = vpop.permute.xlu0 %2119 }
 0x2db   : > { %v2122_v5 = vpop.permute.xlu1 %2121 }
 0x2dc   : > { %v2118_v12 = vpop.permute.xlu0 %2117  ;;  %v2128_v15 = vsel %vm809_vm5, %v2120_v9, %v2122_v5 }
 0x2dd   : > { %8605 = vmatmul.mubr.msk.bf16.vlgmr.msra.gmra.mrb[40].mxu1 %vm386_vm2, %v9212_v58  ;;  %v2127_v19 = vsel %vm809_vm5, %v2118_v12, %v2120_v9 }
 0x2de   : > { %1849 = vmatpush1.bf16.msra.mxu1 %v1795_v6  ;;  %1880 = vmatprep.mubr.bf16.mxu1 %v9257_v1 }
 0x2df   : > { %2015 = vmatprep.subr.bf16.mxu1 %v1963_v8  ;;  %8230 = vmatmul.mubr.msk.bf16.vlgmr.msra.gmra.mrb[4].mxu0 %vm386_vm2, %v9213_v3  ;;  %v2124_v11 = vpop.permute.xlu1 %2123  ;;  %v9219_v8 = vld [vmem:[%s10638_s3 + $0x88] sm:$0xff]  }
 0x2e0   : > { %8609 = vmatpush3.bf16.msra.mxu0 %v1792_v56  ;;  %8610 = vmatprep.mubr.msk.bf16.mxu0 %vm9256_vm0, %v9255_v0  ;;  %v2126_v17 = vpop.permute.xlu0 %2125  ;;  %v2129_v26 = vsel %vm809_vm5, %v2122_v5, %v2124_v11 }
 0x2e1   : > { %1972 = vmatprep.subr.bf16.mxu0 %v1961_v10  ;;  %v2130_v22 = vsel %vm809_vm5, %v2124_v11, %v2126_v17 }
 0x2e3   : > { %v2287_v16 = vpop.permute.xlu1 %2286 }
 0x2e4   : > { %v2289_v21 = vpop.permute.xlu0 %2288 }
 0x2e5   : > { %8231 = vmatmul.mubr.msk.bf16.vlgmr.msra.gmra.mrb[36].mxu1 %vm386_vm2, %v9213_v3  ;;  %v2295_v30 = vsel %vm922_vm6, %v2287_v16, %v2289_v21 }
 0x2e6   : > { %2016 = vmatpush1.bf16.msra.mxu1 %v1962_v13  ;;  %2047 = vmatprep.mubr.bf16.mxu1 %v9257_v1 }
 0x2e7   : > { %8611 = vmatmul.mubr.msk.bf16.vlgmr.msra.gmra.mrb[12].mxu0 %vm386_vm2, %v9213_v3  ;;  %8614 = vmatprep.subr.bf16.mxu1 %v9255_v0  ;;  %v2285_v20 = vpop.permute.xlu1 %2284 }
 0x2e8   : > { %1973 = vmatpush1.bf16.msra.mxu0 %v1960_v14  ;;  %2004 = vmatprep.mubr.bf16.mxu0 %v9257_v1  ;;  %v2291_v24 = vpop.permute.xlu0 %2290  ;;  %v2294_v38 = vsel %vm922_vm6, %v2285_v20, %v2287_v16 }
 0x2e9   : > { %2139 = vmatprep.subr.bf16.mxu0 %v2128_v15  ;;  %v2296_v37 = vsel %vm922_vm6, %v2289_v21, %v2291_v24 }
 0x2eb   : > { %v2293_v23 = vpop.permute.xlu1 %2292 }
 0x2ec   : > { %v2297_v27 = vsel %vm922_vm6, %v2291_v24, %v2293_v23  ;;  %v2454_v31 = vpop.permute.xlu0 %2453 }
 0x2ef   : > { %8236 = vmatmul.mubr.msk.bf16.vlgmr.msra.gmra.mrb[4].mxu0 %vm386_vm2, %v9214_v18  ;;  %v2456_v29 = vpop.permute.xlu1 %2455 }
 0x2f0   : > { %2140 = vmatpush1.bf16.msra.mxu0 %v2127_v19  ;;  %2171 = vmatprep.mubr.bf16.mxu0 %v9257_v1  ;;  %v2452_v39 = vpop.permute.xlu0 %2451  ;;  %v2462_v40 = vsel %vm1035_vm7, %v2454_v31, %v2456_v29 }
 0x2f1   : > { %8237 = vmatmul.mubr.msk.bf16.vlgmr.msra.gmra.mrb[36].mxu1 %vm386_vm2, %v9214_v18  ;;  %8620 = vmatprep.subr.bf16.mxu0 %v9255_v0  ;;  %v2461_v46 = vsel %vm1035_vm7, %v2452_v39, %v2454_v31 }
 0x2f2   : > { %8615 = vmatpush3.bf16.msra.mxu1 %v1959_v63  ;;  %8616 = vmatprep.mubr.msk.bf16.mxu1 %vm9256_vm0, %v9255_v0  ;;  %v9218_v63 = vld [vmem:[%s10638_s3 + $0x80] sm:$0xff]  }
 0x2f3   : > { %2182 = vmatprep.subr.bf16.mxu1 %v2130_v22  ;;  %v2458_v36 = vpop.permute.xlu1 %2457 }
 0x2f4   : > { %v2460_v44 = vpop.permute.xlu0 %2459  ;;  %v2463_v54 = vsel %vm1035_vm7, %v2456_v29, %v2458_v36 }
 0x2f5   : > { %v2464_v48 = vsel %vm1035_vm7, %v2458_v36, %v2460_v44 }
 0x2f7   : > { %v2621_v42 = vpop.permute.xlu1 %2620 }
 0x2f8   : > { %v2623_v49 = vpop.permute.xlu0 %2622 }
 0x2f9   : > { %8617 = vmatmul.mubr.msk.bf16.vlgmr.msra.gmra.mrb[44].mxu1 %vm386_vm2, %v9214_v18  ;;  %v2629_v56 = vsel %vm1148_vm8, %v2621_v42, %v2623_v49 }
 0x2fa   : > { %2183 = vmatpush1.bf16.msra.mxu1 %v2129_v26  ;;  %2214 = vmatprep.mubr.bf16.mxu1 %v9257_v1 }
 0x2fb   : > { %2349 = vmatprep.subr.bf16.mxu1 %v2297_v27  ;;  %8242 = vmatmul.mubr.msk.bf16.vlgmr.msra.gmra.mrb[4].mxu0 %vm386_vm2, %v9215_v25  ;;  %v2619_v47 = vpop.permute.xlu1 %2618 }
 0x2fc   : > { %8621 = vmatpush3.bf16.msra.mxu0 %v2126_v17  ;;  %8622 = vmatprep.mubr.msk.bf16.mxu0 %vm9256_vm0, %v9255_v0  ;;  %v2625_v53 = vpop.permute.xlu0 %2624  ;;  %v2628_v60 = vsel %vm1148_vm8, %v2619_v47, %v2621_v42 }
 0x2fd   : > { %2306 = vmatprep.subr.bf16.mxu0 %v2295_v30  ;;  %v2630_v59 = vsel %vm1148_vm8, %v2623_v49, %v2625_v53 }
 0x2ff   : > { %v2627_v50 = vpop.permute.xlu1 %2626 }
 0x300   : > { %v2631_v55 = vsel %vm1148_vm8, %v2625_v53, %v2627_v50  ;;  %v2788_v57 = vpop.permute.xlu0 %2787 }
 0x301   : > { %8243 = vmatmul.mubr.msk.bf16.vlgmr.msra.gmra.mrb[36].mxu1 %vm386_vm2, %v9215_v25 }
 0x302   : > { %2350 = vmatpush1.bf16.msra.mxu1 %v2296_v37  ;;  %2381 = vmatprep.mubr.bf16.mxu1 %v9257_v1 }
 0x303   : > { %8623 = vmatmul.mubr.msk.bf16.vlgmr.msra.gmra.mrb[16].mxu0 %vm386_vm2, %v9215_v25  ;;  %8626 = vmatprep.subr.bf16.mxu1 %v9255_v0  ;;  %v2790_v58 = vpop.permute.xlu1 %2789 }
 0x304   : > { %2307 = vmatpush1.bf16.msra.mxu0 %v2294_v38  ;;  %2338 = vmatprep.mubr.bf16.mxu0 %v9257_v1  ;;  %v2796_v61 = vsel %vm1261_vm9, %v2788_v57, %v2790_v58  ;;  %v2786_v62 = vpop.permute.xlu0 %2785 }
 0x305   : > { %2473 = vmatprep.subr.bf16.mxu0 %v2462_v40  ;;  %v2795_v2 = vsel %vm1261_vm9, %v2786_v62, %v2788_v57 }
 0x307   : > { %v2792_v5 = vpop.permute.xlu1 %2791 }
 0x308   : > { %v2794_v3 = vpop.permute.xlu0 %2793  ;;  %v2797_v9 = vsel %vm1261_vm9, %v2790_v58, %v2792_v5 }
 0x309   : > { %v2798_v6 = vsel %vm1261_vm9, %v2792_v5, %v2794_v3 }
 0x30b   : > { %8248 = vmatmul.mubr.msk.bf16.vlgmr.msra.gmra.mrb[4].mxu0 %vm386_vm2, %v9216_v43 }
 0x30c   : > { %2474 = vmatpush1.bf16.msra.mxu0 %v2461_v46  ;;  %2505 = vmatprep.mubr.bf16.mxu0 %v9257_v1 }
 0x30d   : > { %8249 = vmatmul.mubr.msk.bf16.vlgmr.msra.gmra.mrb[36].mxu1 %vm386_vm2, %v9216_v43  ;;  %8632 = vmatprep.subr.bf16.mxu0 %v9255_v0 }
 0x30e   : > { %8627 = vmatpush3.bf16.msra.mxu1 %v2293_v23  ;;  %8628 = vmatprep.mubr.msk.bf16.mxu1 %vm9256_vm0, %v9255_v0 }
 0x30f   : > { %2516 = vmatprep.subr.bf16.mxu1 %v2464_v48 }
 0x315   : > { %8629 = vmatmul.mubr.msk.bf16.vlgmr.msra.gmra.mrb[48].mxu1 %vm386_vm2, %v9216_v43 }
 0x316   : > { %2517 = vmatpush1.bf16.msra.mxu1 %v2463_v54  ;;  %2548 = vmatprep.mubr.bf16.mxu1 %v9257_v1 }
 0x317   : > { %2683 = vmatprep.subr.bf16.mxu1 %v2631_v55  ;;  %8254 = vmatmul.mubr.msk.bf16.vlgmr.msra.gmra.mrb[4].mxu0 %vm386_vm2, %v9217_v51 }
 0x318   : > { %8633 = vmatpush3.bf16.msra.mxu0 %v2460_v44  ;;  %8634 = vmatprep.mubr.msk.bf16.mxu0 %vm9256_vm0, %v9255_v0 }
 0x319   : > { %2640 = vmatprep.subr.bf16.mxu0 %v2629_v56 }
 0x31d   : > { %8255 = vmatmul.mubr.msk.bf16.vlgmr.msra.gmra.mrb[36].mxu1 %vm386_vm2, %v9217_v51 }
 0x31e   : > { %2684 = vmatpush1.bf16.msra.mxu1 %v2630_v59  ;;  %2715 = vmatprep.mubr.bf16.mxu1 %v9257_v1  ;;  %v2950_v59 = vpop.permute.xlu1 %2949 }
 0x31f   : > { %8635 = vmatmul.mubr.msk.bf16.vlgmr.msra.gmra.mrb[20].mxu0 %vm386_vm2, %v9217_v51  ;;  %8638 = vmatprep.subr.bf16.mxu1 %v9255_v0 }
 0x320   : > { %2641 = vmatpush1.bf16.msra.mxu0 %v2628_v60  ;;  %2672 = vmatprep.mubr.bf16.mxu0 %v9257_v1 }
 0x321   : > { %2807 = vmatprep.subr.bf16.mxu0 %v2796_v61 }
 0x327   : > { %8260 = vmatmul.mubr.msk.bf16.vlgmr.msra.gmra.mrb[4].mxu0 %vm386_vm2, %v9218_v63 }
 0x328   : > { %2808 = vmatpush1.bf16.msra.mxu0 %v2795_v2  ;;  %2839 = vmatprep.mubr.bf16.mxu0 %v9257_v1 }
 0x329   : > { %8261 = vmatmul.mubr.msk.bf16.vlgmr.msra.gmra.mrb[36].mxu1 %vm386_vm2, %v9218_v63  ;;  %8644 = vmatprep.subr.bf16.mxu0 %v9255_v0 }
 0x32a   : > { %8639 = vmatpush3.bf16.msra.mxu1 %v2627_v50  ;;  %8640 = vmatprep.mubr.msk.bf16.mxu1 %vm9256_vm0, %v9255_v0 }
 0x32b   : > { %2850 = vmatprep.subr.bf16.mxu1 %v2798_v6 }
 0x331   : > { %8641 = vmatmul.mubr.msk.bf16.vlgmr.msra.gmra.mrb[52].mxu1 %vm386_vm2, %v9218_v63 }
 0x332   : > { %2851 = vmatpush1.bf16.msra.mxu1 %v2797_v9  ;;  %2882 = vmatprep.mubr.bf16.mxu1 %v9257_v1 }
 0x333   : > { %8266 = vmatmul.mubr.msk.bf16.vlgmr.msra.gmra.mrb[4].mxu0 %vm386_vm2, %v9219_v8 }
 0x334   : > { %8645 = vmatpush3.bf16.msra.mxu0 %v2794_v3  ;;  %8646 = vmatprep.mubr.msk.bf16.mxu0 %vm9256_vm0, %v9255_v0 }
 0x339   : > { %8267 = vmatmul.mubr.msk.bf16.vlgmr.msra.gmra.mrb[36].mxu1 %vm386_vm2, %v9219_v8 }
 0x33a   : > { %3107 = vmatprep.mubr.bf16.mxu1 %v9257_v1 }
 0x33b   : > { %8647 = vmatmul.mubr.msk.bf16.vlgmr.msra.gmra.mrb[24].mxu0 %vm386_vm2, %v9219_v8  ;;  %v2955_v8 = vpop.permute.xlu0 %2954 }
 0x33c   : > { %3150 = vmatprep.mubr.bf16.mxu0 %v9257_v1 }
 0x39e   : > { %v1633_v10 = vpop.f32.mrb[8].mxu0 }
 0x39f   : > { %v8600_v11 = vpop.f32.mrb[9].mxu0 }
 0x3a0   : > { %v1636_v12 = vpop.f32.mrb[10].mxu0 }
 0x3a1   : > { %v8601_v13 = vpop.f32.mrb[11].mxu0 }
 0x3b0   : > { %v1768_v14 = vpop.f32.mrb[40].mxu1 }
 0x3b1   : > { %v1769_v15 = vadd.f32 %v1768_v14, %v1633_v10  ;;  %v8606_v16 = vpop.f32.mrb[41].mxu1 }
 0x3b2   : > { %v1771_v17 = vpop.f32.mrb[42].mxu1 }
 0x3b3   : > { %v1772_v18 = vadd.f32 %v1771_v17, %v1636_v12  ;;  %v8607_v19 = vpop.f32.mrb[43].mxu1 }
 0x3b4   : > { %v2979_v19 = vsub.s32 3, %v9469_v41 }
 0x3ba   : > { %v1925_v20 = vpop.f32.mrb[12].mxu0 }
 0x3bb   : > { %v1936_v21 = vadd.f32 %v1925_v20, %v1769_v15  ;;  %v8612_v22 = vpop.f32.mrb[13].mxu0 }
 0x3bc   : > { %v1928_v23 = vpop.f32.mrb[14].mxu0 }
 0x3bd   : > { %v1941_v24 = vadd.f32 %v1928_v23, %v1772_v18  ;;  %v8613_v25 = vpop.f32.mrb[15].mxu0 }
 0x3cc   : > { %v2092_v26 = vpop.f32.mrb[44].mxu1 }
 0x3cd   : > { %v2103_v27 = vadd.f32 %v2092_v26, %v1936_v21  ;;  %v8618_v29 = vpop.f32.mrb[45].mxu1 }
 0x3ce   : > { %v2095_v30 = vpop.f32.mrb[46].mxu1 }
 0x3cf   : > { %v2108_v31 = vadd.f32 %v2095_v30, %v1941_v24  ;;  %v8619_v36 = vpop.f32.mrb[47].mxu1  ;;  %v2983_v30 = vsub.s32 4, %v9469_v41 }
 0x3d1   : > { %v9761_v41 = vrot.slane %v9475_v45, %v2983_v30  ;;  %v4538_v30 = vunpack.c.h.bf16 %v9535_v35 }
 0x3d6   : > { %v2259_v37 = vpop.f32.mrb[16].mxu0 }
 0x3d7   : > { %v2270_v38 = vadd.f32 %v2259_v37, %v2103_v27  ;;  %v8624_v39 = vpop.f32.mrb[17].mxu0 }
 0x3d8   : > { %v2262_v40 = vpop.f32.mrb[18].mxu0 }
 0x3d9   : > { %v2275_v42 = vadd.f32 %v2262_v40, %v2108_v31  ;;  %v8625_v43 = vpop.f32.mrb[19].mxu0 }
 0x3da   : > { %v9758_v43 = vrot.slane %v9475_v45, %v2979_v19 }
 0x3e8   : > { %v2426_v44 = vpop.f32.mrb[48].mxu1 }
 0x3e9   : > { %v2437_v46 = vadd.f32 %v2426_v44, %v2270_v38  ;;  %v8630_v47 = vpop.f32.mrb[49].mxu1 }
 0x3ea   : > { %v2429_v48 = vpop.f32.mrb[50].mxu1 }
 0x3eb   : > { %v2442_v49 = vadd.f32 %v2429_v48, %v2275_v42  ;;  %v8631_v50 = vpop.f32.mrb[51].mxu1 }
 0x3f2   : > { %v2593_v51 = vpop.f32.mrb[20].mxu0 }
 0x3f3   : > { %v2604_v53 = vadd.f32 %v2593_v51, %v2437_v46  ;;  %v8636_v54 = vpop.f32.mrb[21].mxu0 }
 0x3f4   : > { %v2596_v55 = vpop.f32.mrb[22].mxu0 }
 0x3f5   : > { %v2609_v56 = vadd.f32 %v2596_v55, %v2442_v49  ;;  %v8637_v57 = vpop.f32.mrb[23].mxu0 }
 0x404   : > { %v2760_v58 = vpop.f32.mrb[52].mxu1 }
 0x405   : > { %v2771_v60 = vadd.f32 %v2760_v58, %v2604_v53  ;;  %v8642_v61 = vpop.f32.mrb[53].mxu1 }
 0x406   : > { %v2763_v62 = vpop.f32.mrb[54].mxu1  ;;  %v2841_v63 = vpop.f32.mrb[4].mxu0 }
 0x407   : > { %v2776_v2 = vadd.f32 %v2763_v62, %v2609_v56  ;;  %v8643_v3 = vpop.f32.mrb[55].mxu1  ;;  %v2957_v5 = vadd.f32 %v2950_v59, %v2841_v63  ;;  %v2843_v6 = vpop.f32.mrb[5].mxu0 }
 0x408   : > { %v2958_v9 = vadd.f32 %v2950_v59, %v2843_v6  ;;  %v2845_v10 = vpop.f32.mrb[6].mxu0 }
 0x409   : > { %v2967_v11 = vmax.f32 %v2957_v5, 0.0  ;;  %v2962_v12 = vadd.f32 %v2955_v8, %v2845_v10  ;;  %v2847_v13 = vpop.f32.mrb[7].mxu0 }
 0x40a   : > { %v2968_v14 = vmax.f32 %v2958_v9, 0.0  ;;  %v2963_v15 = vadd.f32 %v2955_v8, %v2847_v13 }
 0x40b   : > { %v2972_v16 = vmax.f32 %v2962_v12, 0.0  ;;  %v2987_v20 = vmul.f32 %v2967_v11, %v9498_v4 }
 0x40c   : > { %v2973_v17 = vmax.f32 %v2963_v15, 0.0  ;;  %v2884_v18 = vpop.f32.mrb[36].mxu1  ;;  %v2988_v24 = vmul.f32 %v2968_v14, %v9501_v7 }
 0x40d   : > { %v2992_v21 = vmul.f32 %v2972_v16, %v9498_v4  ;;  %v2959_v22 = vadd.f32 %v2950_v59, %v2884_v18  ;;  %v2886_v23 = vpop.f32.mrb[37].mxu1  ;;  %v8326_v16 = vld [vmem:[%s10639_s4 + $0x28] sm:$0xff]  ;;  %v4532_v18 = vunpack.c.l.bf16 %v9531_v34 }
 0x40e   : > { %v2993_v25 = vmul.f32 %v2973_v17, %v9501_v7  ;;  %v2960_v26 = vadd.f32 %v2950_v59, %v2886_v23  ;;  %v2888_v27 = vpop.f32.mrb[38].mxu1  ;;  %v2927_v29 = vpop.f32.mrb[24].mxu0  ;;  %v4531_v17 = vunpack.c.l.bf16 %v9523_v32  ;;  %v8325_v23 = vld [vmem:[%s10639_s4 + $0x20] sm:$0xff] }
 0x40f   : > { %v2969_v31 = vmax.f32 %v2959_v22, 0.0  ;;  %v2964_v36 = vadd.f32 %v2955_v8, %v2888_v27  ;;  %v2890_v37 = vpop.f32.mrb[39].mxu1  ;;  %v2938_v38 = vadd.f32 %v2927_v29, %v2771_v60  ;;  %v8648_v39 = vpop.f32.mrb[25].mxu0  ;;  %v2997_v40 = vpack.c.bf16 %v2992_v21, %v2987_v20 }
 0x410   : > { %v2970_v42 = vmax.f32 %v2960_v26, 0.0  ;;  %v2965_v44 = vadd.f32 %v2955_v8, %v2890_v37  ;;  %v2930_v46 = vpop.f32.mrb[26].mxu0  ;;  %v2998_v47 = vpack.c.bf16 %v2993_v25, %v2988_v24  ;;  %v9149_v19 = vpack.i.bf16 %v4532_v18, %v4531_v17 }
 0x411   : > { %v2974_v48 = vmax.f32 %v2964_v36, 0.0  ;;  %v2961_v49 = vadd.f32 %v2950_v59, %v2938_v38  ;;  %v2943_v50 = vadd.f32 %v2930_v46, %v2776_v2  ;;  %v8649_v51 = vpop.f32.mrb[27].mxu0  ;;  %v2989_v54 = vmul.f32 %v2969_v31, %v9479_v52 }
 0x412   : > { %v2975_v53 = vmax.f32 %v2965_v44, 0.0  ;;  %3009 = vrot.lane.b32.xlu0 %v2998_v47, %s9266_s30  ;;  %v2990_v58 = vmul.f32 %v9758_v43, %v2970_v42  ;;  %v4536_v20 = vunpack.c.h.bf16 %v9523_v32  ;;  %v4537_v21 = vunpack.c.h.bf16 %v9531_v34 }
 0x413   : > { %v2994_v55 = vmul.f32 %v2974_v48, %v9479_v52  ;;  %v2971_v56 = vmax.f32 %v2961_v49, 0.0  ;;  %v2966_v57 = vadd.f32 %v2955_v8, %v2943_v50  ;;  %v4529_v24 = vunpack.c.l.bf16 %v9527_v33 }
 0x414   : > { %v2995_v60 = vmul.f32 %v9758_v43, %v2975_v53  ;;  %v9159_v22 = vpack.i.bf16 %v4537_v21, %v4536_v20  ;;  %v4530_v32 = vunpack.c.l.bf16 %v9518_v28  ;;  %v4534_v25 = vunpack.c.h.bf16 %v9527_v33  ;;  %v9224_v20 = vld [vmem:[%s10638_s3 + $0xb0] sm:$0xff]  }
 0x415   : > { %v2976_v61 = vmax.f32 %v2966_v57, 0.0  ;;  %v2999_v59 = vpack.c.bf16 %v2994_v55, %v2989_v54  ;;  %v2991_v63 = vmul.f32 %v9761_v41, %v2971_v56  ;;  %v4535_v26 = vunpack.c.h.bf16 %v9518_v28  ;;  %v9220_v28 = vld [vmem:[%s10638_s3 + $0x98] sm:$0xff]   ;;  %v9221_v54 = vld [vmem:[%s10638_s3 + $0x90] sm:$0xff]  }
 0x416   : > { %v3000_v62 = vpack.c.bf16 %v2995_v60, %v2990_v58  ;;  %v9144_v34 = vpack.i.bf16 %v4530_v32, %v4529_v24  ;;  %v4533_v29 = vunpack.c.l.bf16 %v9535_v35 }
 0x417   : > { %v2996_v45 = vmul.f32 %v9761_v41, %v2976_v61  ;;  %3011 = vrot.lane.b32.xlu1 %v2999_v59, %s9266_s30  ;;  %v9154_v27 = vpack.i.bf16 %v4535_v26, %v4534_v25 }
 0x418   : > { %3013 = vrot.lane.b32.xlu0 %v3000_v62, %s9266_s30  ;;  %v9164_v31 = vpack.i.bf16 %v4538_v30, %v4533_v29  ;;  %v9222_v62 = vld [vmem:[%s10638_s3 + $0xa0] sm:$0xff]   ;;  %v9225_v30 = vld [vmem:[%s10638_s3 + $0xb8] sm:$0xff]  }
 0x419   : > { %v3001_v2 = vpack.c.bf16 %v2996_v45, %v2991_v63 }
 0x41b   : > { %3007 = vrot.lane.b32.xlu1 %v2997_v40, %s9266_s30 }
 0x41f   : > { %3015 = vrot.lane.b32.xlu1 %v3001_v2, %s9266_s30 }
 0x484   : > { %v3010_v3 = vpop.permute.xlu0 %3009 }
 0x489   : > { %v3012_v5 = vpop.permute.xlu1 %3011 }
 0x48a   : > { %v9775_v6 = vsel %vm1425_vm12, %v3010_v3, %v3012_v5  ;;  %v3014_v8 = vpop.permute.xlu0 %3013 }
 0x48b   : > { %3057 = vrot.lane.b32.xlu1 %v9775_v6, %s9258_s11  ;;  %v9780_v10 = vsel %vm1425_vm12, %v3012_v5, %v3014_v8 }
 0x48d   : > { %v3008_v9 = vpop.permute.xlu1 %3007 }
 0x48e   : > { %3026 = vst.msk [vmem:[#allocation2] sm:$0xff] %vm1431_vm15, %v3008_v9  ;;  %v9786_v12 = vsel %vm1425_vm12, %v3008_v9, %v3010_v3 }
 0x48f   : > { %3059 = vrot.lane.b32.xlu1 %v9780_v10, %s9258_s11 }
 0x491   : > { %v3016_v11 = vpop.permute.xlu1 %3015 }
 0x492   : > { %v3020_v13 = vsel %vm1425_vm12, %v3014_v8, %v3016_v11 }
 0x493   : > { %3031 = vst.msk [vmem:[#allocation2 + $0x20] sm:$0xff] %vm3030_vm13, %v3020_v13  ;;  %3347 = vrot.lane.b32.xlu1 %v9786_v12, %s9259_s12 }
 0x495   : > { %v9792_v14 = vld [vmem:[#allocation2] sm:$0xff] }
 0x496   : > { %3053 = vrot.lane.b32.xlu0 %v9792_v14, %s9258_s11 }
 0x497   : > { %3345 = vrot.lane.b32.xlu1 %v9792_v14, %s9259_s12 }
 0x49a   : > { %3055 = vrot.lane.b32.xlu0 %v9786_v12, %s9258_s11  ;;  %v9800_v15 = vld [vmem:[#allocation2 + $0x20] sm:$0xff] }
 0x49b   : > { %3353 = vrot.lane.b32.xlu1 %v9800_v15, %s9259_s12 }
 0x49e   : > { %3061 = vrot.lane.b32.xlu0 %v9800_v15, %s9258_s11 }
 0x49f   : > { %3520 = vrot.lane.b32.xlu1 %v9800_v15, %s9260_s13 }
 0x4a2   : > { %3349 = vrot.lane.b32.xlu0 %v9775_v6, %s9259_s12 }
 0x4a3   : > { %3516 = vrot.lane.b32.xlu1 %v9775_v6, %s9260_s13 }
 0x4a6   : > { %3351 = vrot.lane.b32.xlu0 %v9780_v10, %s9259_s12 }
 0x4a7   : > { %3681 = vrot.lane.b32.xlu1 %v9786_v12, %s9261_s14 }
 0x4aa   : > { %3518 = vrot.lane.b32.xlu0 %v9780_v10, %s9260_s13 }
 0x4ab   : > { %3679 = vrot.lane.b32.xlu1 %v9792_v14, %s9261_s14 }
 0x4ae   : > { %3514 = vrot.lane.b32.xlu0 %v9786_v12, %s9260_s13 }
 0x4af   : > { %3687 = vrot.lane.b32.xlu1 %v9800_v15, %s9261_s14 }
 0x4b2   : > { %3512 = vrot.lane.b32.xlu0 %v9792_v14, %s9260_s13 }
 0x4b3   : > { %3854 = vrot.lane.b32.xlu1 %v9800_v15, %s9262_s15 }
 0x4b6   : > { %3683 = vrot.lane.b32.xlu0 %v9775_v6, %s9261_s14 }
 0x4b7   : > { %3850 = vrot.lane.b32.xlu1 %v9775_v6, %s9262_s15 }
 0x4ba   : > { %3685 = vrot.lane.b32.xlu0 %v9780_v10, %s9261_s14 }
 0x4bb   : > { %4015 = vrot.lane.b32.xlu1 %v9786_v12, %s9263_s16 }
 0x4be   : > { %3852 = vrot.lane.b32.xlu0 %v9780_v10, %s9262_s15 }
 0x4bf   : > { %4013 = vrot.lane.b32.xlu1 %v9792_v14, %s9263_s16 }
 0x4c2   : > { %3848 = vrot.lane.b32.xlu0 %v9786_v12, %s9262_s15 }
 0x4c3   : > { %4021 = vrot.lane.b32.xlu1 %v9800_v15, %s9263_s16 }
 0x4c6   : > { %3846 = vrot.lane.b32.xlu0 %v9792_v14, %s9262_s15 }
 0x4c7   : > { %4188 = vrot.lane.b32.xlu1 %v9800_v15, %s9264_s17 }
 0x4ca   : > { %4017 = vrot.lane.b32.xlu0 %v9775_v6, %s9263_s16 }
 0x4cb   : > { %4184 = vrot.lane.b32.xlu1 %v9775_v6, %s9264_s17 }
 0x4ce   : > { %4019 = vrot.lane.b32.xlu0 %v9780_v10, %s9263_s16 }
 0x4cf   : > { %4349 = vrot.lane.b32.xlu1 %v9786_v12, %s9265_s18 }
 0x4d2   : > { %4186 = vrot.lane.b32.xlu0 %v9780_v10, %s9264_s17 }
 0x4d3   : > { %4347 = vrot.lane.b32.xlu1 %v9792_v14, %s9265_s18 }
 0x4d6   : > { %4182 = vrot.lane.b32.xlu0 %v9786_v12, %s9264_s17 }
 0x4d7   : > { %4355 = vrot.lane.b32.xlu1 %v9800_v15, %s9265_s18 }
 0x4da   : > { %4180 = vrot.lane.b32.xlu0 %v9792_v14, %s9264_s17 }
 0x4db   : > { %4516 = vperm.xlu1 %9143, %v8326_v16  }
 0x4de   : > { %4351 = vrot.lane.b32.xlu0 %v9775_v6, %s9265_s18 }
 0x4df   : > { %9150 = vrot.lane.b32.xlu1 %v9149_v19, %s9261_s14 }
 0x4e2   : > { %4353 = vrot.lane.b32.xlu0 %v9780_v10, %s9265_s18 }
 0x4e3   : > { %9160 = vrot.lane.b32.xlu1 %v9159_v22, %s9261_s14 }
 0x4e6   : > { %4511 = vperm.xlu0 %9142, %v8325_v23  }
 0x4ea   : > { %9145 = vrot.lane.b32.xlu0 %v9144_v34, %s9261_s14 }
 0x4ee   : > { %9155 = vrot.lane.b32.xlu0 %v9154_v27, %s9261_s14 }
 0x4f2   : > { %9165 = vrot.lane.b32.xlu0 %v9164_v31, %s9261_s14 }
 0x4fd   : > { %v3058_v36 = vpop.permute.xlu1 %3057 }
 0x501   : > { %v3060_v38 = vpop.permute.xlu1 %3059 }
 0x502   : > { %v3065_v46 = vsel %vm380_vm1, %v3058_v36, %v3060_v38 }
 0x505   : > { %v3348_v35 = vpop.permute.xlu1 %3347 }
 0x508   : > { %v3054_v37 = vpop.permute.xlu0 %3053 }
 0x509   : > { %v3346_v48 = vpop.permute.xlu1 %3345 }
 0x50a   : > { %v3355_v55 = vsel %vm583_vm3, %v3346_v48, %v3348_v35 }
 0x50c   : > { %v3056_v39 = vpop.permute.xlu0 %3055 }
 0x50d   : > { %v3064_v33 = vsel %vm380_vm1, %v3056_v39, %v3058_v36  ;;  %v3063_v40 = vsel %vm380_vm1, %v3054_v37, %v3056_v39  ;;  %v3354_v51 = vpop.permute.xlu1 %3353 }
 0x50e   : > { %3075 = vmatprep.subr.bf16.mxu1 %v3064_v33 }
 0x50f   : > { %3076 = vmatpush1.bf16.msra.mxu1 %v3063_v40 }
 0x510   : > { %v3062_v42 = vpop.permute.xlu0 %3061  ;;  %8650 = vmatprep.subr.bf16.mxu1 %v9255_v0 }
 0x511   : > { %v3066_v44 = vsel %vm380_vm1, %v3060_v38, %v3062_v42  ;;  %v3521_v56 = vpop.permute.xlu1 %3520 }
 0x512   : > { %8276 = vmatmul.mubr.msk.bf16.vlgmr.msra.gmra.mrb[56].mxu1 %vm386_vm2, %v9220_v28  ;;  %3118 = vmatprep.subr.bf16.mxu0 %v3066_v44 }
 0x513   : > { %3119 = vmatpush1.bf16.msra.mxu0 %v3065_v46  ;;  %8651 = vmatpush3.bf16.msra.mxu1 %v3062_v42 }
 0x514   : > { %v3350_v47 = vpop.permute.xlu0 %3349  ;;  %3210 = vmatprep.subr.bf16.mxu1 %v9786_v12  ;;  %3253 = vmatprep.subr.bf16.mxu0 %v9780_v10  ;;  %v9223_v12 = vld [vmem:[%s10638_s3 + $0xa8] sm:$0xff]  }
 0x515   : > { %8652 = vmatprep.mubr.msk.bf16.mxu1 %vm9256_vm0, %v9255_v0  ;;  %v3356_v50 = vsel %vm583_vm3, %v3348_v35, %v3350_v47  ;;  %v3517_v60 = vpop.permute.xlu1 %3516 }
 0x516   : > { %8277 = vmatmul.mubr.msk.bf16.vlgmr.msra.gmra.mrb[28].mxu0 %vm386_vm2, %v9220_v28 }
 0x517   : > { %3254 = vmatpush1.bf16.msra.mxu0 %v9775_v6  ;;  %3285 = vmatprep.mubr.bf16.mxu0 %v9257_v1 }
 0x518   : > { %v3352_v49 = vpop.permute.xlu0 %3351  ;;  %8656 = vmatprep.subr.bf16.mxu0 %v9255_v0 }
 0x519   : > { %v3358_v57 = vsel %vm583_vm3, %v3352_v49, %v3354_v51  ;;  %v3357_v59 = vsel %vm583_vm3, %v3350_v47, %v3352_v49  ;;  %v3682_v45 = vpop.permute.xlu1 %3681 }
 0x51a   : > { %8653 = vmatmul.mubr.msk.bf16.vlgmr.msra.gmra.mrb[60].mxu1 %vm386_vm2, %v9220_v28  ;;  %v9226_v28 = vld [vmem:[%s10638_s3 + $0xc0] sm:$0xff]  }
 0x51b   : > { %3211 = vmatpush1.bf16.msra.mxu1 %v9792_v14  ;;  %3242 = vmatprep.mubr.bf16.mxu1 %v9257_v1 }
 0x51c   : > { %3367 = vmatprep.subr.bf16.mxu1 %v3356_v50  ;;  %v3519_v53 = vpop.permute.xlu0 %3518 }
 0x51d   : > { %v3525_v63 = vsel %vm696_vm4, %v3519_v53, %v3521_v56  ;;  %v3524_v5 = vsel %vm696_vm4, %v3517_v60, %v3519_v53  ;;  %v3680_v6 = vpop.permute.xlu1 %3679 }
 0x51e   : > { %v3689_v14 = vsel %vm809_vm5, %v3680_v6, %v3682_v45 }
 0x520   : > { %v3515_v58 = vpop.permute.xlu0 %3514 }
 0x521   : > { %v3523_v2 = vsel %vm696_vm4, %v3515_v58, %v3517_v60  ;;  %v3688_v11 = vpop.permute.xlu1 %3687 }
 0x522   : > { %8280 = vmatmul.mubr.msk.bf16.vlgmr.msra.gmra.mrb[56].mxu1 %vm386_vm2, %v9221_v54  ;;  %8281 = vmatmul.mubr.msk.bf16.vlgmr.msra.gmra.mrb[28].mxu0 %vm386_vm2, %v9221_v54 }
 0x523   : > { %8657 = vmatpush3.bf16.msra.mxu0 %v9800_v15  ;;  %3368 = vmatpush1.bf16.msra.mxu1 %v3355_v55 }
 0x524   : > { %3410 = vmatprep.subr.bf16.mxu0 %v3358_v57  ;;  %8658 = vmatprep.mubr.msk.bf16.mxu0 %vm9256_vm0, %v9255_v0  ;;  %v3513_v61 = vpop.permute.xlu0 %3512 }
 0x525   : > { %3399 = vmatprep.mubr.bf16.mxu1 %v9257_v1  ;;  %8662 = vmatprep.subr.bf16.mxu1 %v9255_v0  ;;  %v3522_v8 = vsel %vm696_vm4, %v3513_v61, %v3515_v58  ;;  %v3855_v16 = vpop.permute.xlu1 %3854  ;;  %v9228_v61 = vld [vmem:[%s10638_s3 + $0xd0] sm:$0xff]  }
 0x528   : > { %v3684_v3 = vpop.permute.xlu0 %3683 }
 0x529   : > { %v3690_v10 = vsel %vm809_vm5, %v3682_v45, %v3684_v3  ;;  %v3851_v18 = vpop.permute.xlu1 %3850 }
 0x52a   : > { %8659 = vmatmul.mubr.msk.bf16.vlgmr.msra.gmra.mrb[32].mxu0 %vm386_vm2, %v9221_v54  ;;  %v9227_v54 = vld [vmem:[%s10638_s3 + $0xc8] sm:$0xff]  }
 0x52b   : > { %3411 = vmatpush1.bf16.msra.mxu0 %v3357_v59  ;;  %3442 = vmatprep.mubr.bf16.mxu0 %v9257_v1 }
 0x52c   : > { %3577 = vmatprep.subr.bf16.mxu0 %v3525_v63  ;;  %v3686_v9 = vpop.permute.xlu0 %3685 }
 0x52d   : > { %v3692_v15 = vsel %vm809_vm5, %v3686_v9, %v3688_v11  ;;  %v3691_v19 = vsel %vm809_vm5, %v3684_v3, %v3686_v9  ;;  %v4016_v24 = vpop.permute.xlu1 %4015 }
 0x52e   : > { %8286 = vmatmul.mubr.msk.bf16.vlgmr.msra.gmra.mrb[56].mxu1 %vm386_vm2, %v9222_v62 }
 0x52f   : > { %8663 = vmatpush3.bf16.msra.mxu1 %v3354_v51  ;;  %8664 = vmatprep.mubr.msk.bf16.mxu1 %vm9256_vm0, %v9255_v0 }
 0x530   : > { %3534 = vmatprep.subr.bf16.mxu1 %v3523_v2  ;;  %v3853_v13 = vpop.permute.xlu0 %3852 }
 0x531   : > { %v3859_v21 = vsel %vm922_vm6, %v3853_v13, %v3855_v16  ;;  %v3858_v34 = vsel %vm922_vm6, %v3851_v18, %v3853_v13  ;;  %v4014_v26 = vpop.permute.xlu1 %4013 }
 0x532   : > { %8287 = vmatmul.mubr.msk.bf16.vlgmr.msra.gmra.mrb[28].mxu0 %vm386_vm2, %v9222_v62  ;;  %v4023_v36 = vsel %vm1035_vm7, %v4014_v26, %v4016_v24 }
 0x533   : > { %3578 = vmatpush1.bf16.msra.mxu0 %v3524_v5  ;;  %3609 = vmatprep.mubr.bf16.mxu0 %v9257_v1 }
 0x534   : > { %8668 = vmatprep.subr.bf16.mxu0 %v9255_v0  ;;  %v3849_v17 = vpop.permute.xlu0 %3848 }
 0x535   : > { %v3857_v23 = vsel %vm922_vm6, %v3849_v17, %v3851_v18  ;;  %v4022_v31 = vpop.permute.xlu1 %4021 }
 0x536   : > { %8665 = vmatmul.mubr.msk.bf16.vlgmr.msra.gmra.mrb[64].mxu1 %vm386_vm2, %v9222_v62 }
 0x537   : > { %3535 = vmatpush1.bf16.msra.mxu1 %v3522_v8  ;;  %3566 = vmatprep.mubr.bf16.mxu1 %v9257_v1 }
 0x538   : > { %3701 = vmatprep.subr.bf16.mxu1 %v3690_v10  ;;  %v3847_v22 = vpop.permute.xlu0 %3846 }
 0x539   : > { %v3856_v25 = vsel %vm922_vm6, %v3847_v22, %v3849_v17  ;;  %v4189_v39 = vpop.permute.xlu1 %4188 }
 0x53c   : > { %v4018_v32 = vpop.permute.xlu0 %4017 }
 0x53d   : > { %v4024_v27 = vsel %vm1035_vm7, %v4016_v24, %v4018_v32  ;;  %v4185_v42 = vpop.permute.xlu1 %4184 }
 0x53e   : > { %8292 = vmatmul.mubr.msk.bf16.vlgmr.msra.gmra.mrb[56].mxu1 %vm386_vm2, %v9223_v12  ;;  %8293 = vmatmul.mubr.msk.bf16.vlgmr.msra.gmra.mrb[28].mxu0 %vm386_vm2, %v9223_v12 }
 0x53f   : > { %8669 = vmatpush3.bf16.msra.mxu0 %v3521_v56  ;;  %3702 = vmatpush1.bf16.msra.mxu1 %v3689_v14 }
 0x540   : > { %3744 = vmatprep.subr.bf16.mxu0 %v3692_v15  ;;  %8670 = vmatprep.mubr.msk.bf16.mxu0 %vm9256_vm0, %v9255_v0  ;;  %v4020_v29 = vpop.permute.xlu0 %4019 }
 0x541   : > { %3733 = vmatprep.mubr.bf16.mxu1 %v9257_v1  ;;  %8674 = vmatprep.subr.bf16.mxu1 %v9255_v0  ;;  %v4026_v38 = vsel %vm1035_vm7, %v4020_v29, %v4022_v31  ;;  %v4025_v40 = vsel %vm1035_vm7, %v4018_v32, %v4020_v29  ;;  %v4350_v47 = vpop.permute.xlu1 %4349 }
 0x544   : > { %v4187_v37 = vpop.permute.xlu0 %4186 }
 0x545   : > { %v4193_v35 = vsel %vm1148_vm8, %v4187_v37, %v4189_v39  ;;  %v4192_v48 = vsel %vm1148_vm8, %v4185_v42, %v4187_v37  ;;  %v4348_v53 = vpop.permute.xlu1 %4347 }
 0x546   : > { %8671 = vmatmul.mubr.msk.bf16.vlgmr.msra.gmra.mrb[36].mxu0 %vm386_vm2, %v9223_v12  ;;  %v4357_v56 = vsel %vm1261_vm9, %v4348_v53, %v4350_v47 }
 0x547   : > { %3745 = vmatpush1.bf16.msra.mxu0 %v3691_v19  ;;  %3776 = vmatprep.mubr.bf16.mxu0 %v9257_v1 }
 0x548   : > { %3911 = vmatprep.subr.bf16.mxu0 %v3859_v21  ;;  %v4183_v33 = vpop.permute.xlu0 %4182 }
 0x549   : > { %v4191_v46 = vsel %vm1148_vm8, %v4183_v33, %v4185_v42  ;;  %v4356_v57 = vpop.permute.xlu1 %4355 }
 0x54a   : > { %8298 = vmatmul.mubr.msk.bf16.vlgmr.msra.gmra.mrb[56].mxu1 %vm386_vm2, %v9224_v20 }
 0x54b   : > { %8675 = vmatpush3.bf16.msra.mxu1 %v3688_v11  ;;  %8676 = vmatprep.mubr.msk.bf16.mxu1 %vm9256_vm0, %v9255_v0 }
 0x54c   : > { %3868 = vmatprep.subr.bf16.mxu1 %v3857_v23  ;;  %v4181_v44 = vpop.permute.xlu0 %4180 }
 0x54d   : > { %v4190_v50 = vsel %vm1148_vm8, %v4181_v44, %v4183_v33 }
 0x54e   : > { %8299 = vmatmul.mubr.msk.bf16.vlgmr.msra.gmra.mrb[28].mxu0 %vm386_vm2, %v9224_v20 }
 0x54f   : > { %3912 = vmatpush1.bf16.msra.mxu0 %v3858_v34  ;;  %3943 = vmatprep.mubr.bf16.mxu0 %v9257_v1 }
 0x550   : > { %8680 = vmatprep.subr.bf16.mxu0 %v9255_v0  ;;  %v4352_v49 = vpop.permute.xlu0 %4351 }
 0x551   : > { %v4358_v51 = vsel %vm1261_vm9, %v4350_v47, %v4352_v49 }
 0x552   : > { %8677 = vmatmul.mubr.msk.bf16.vlgmr.msra.gmra.mrb[68].mxu1 %vm386_vm2, %v9224_v20 }
 0x553   : > { %3869 = vmatpush1.bf16.msra.mxu1 %v3856_v25  ;;  %3900 = vmatprep.mubr.bf16.mxu1 %v9257_v1 }
 0x554   : > { %4035 = vmatprep.subr.bf16.mxu1 %v4024_v27  ;;  %v4354_v55 = vpop.permute.xlu0 %4353 }
 0x555   : > { %v4360_v58 = vsel %vm1261_vm9, %v4354_v55, %v4356_v57  ;;  %v4359_v60 = vsel %vm1261_vm9, %v4352_v49, %v4354_v55 }
 0x55a   : > { %8304 = vmatmul.mubr.msk.bf16.vlgmr.msra.gmra.mrb[56].mxu1 %vm386_vm2, %v9225_v30  ;;  %8305 = vmatmul.mubr.msk.bf16.vlgmr.msra.gmra.mrb[28].mxu0 %vm386_vm2, %v9225_v30  ;;  %v10029_v42 = vpop.permute.xlu1 %4516 }
 0x55b   : > { %8681 = vmatpush3.bf16.msra.mxu0 %v3855_v16  ;;  %4036 = vmatpush1.bf16.msra.mxu1 %v4023_v36 }
 0x55c   : > { %4078 = vmatprep.subr.bf16.mxu0 %v4026_v38  ;;  %8682 = vmatprep.mubr.msk.bf16.mxu0 %vm9256_vm0, %v9255_v0 }
 0x55d   : > { %4067 = vmatprep.mubr.bf16.mxu1 %v9257_v1  ;;  %8686 = vmatprep.subr.bf16.mxu1 %v9255_v0 }
 0x562   : > { %8683 = vmatmul.mubr.msk.bf16.vlgmr.msra.gmra.mrb[40].mxu0 %vm386_vm2, %v9225_v30 }
 0x563   : > { %4079 = vmatpush1.bf16.msra.mxu0 %v4025_v40  ;;  %4110 = vmatprep.mubr.bf16.mxu0 %v9257_v1 }
 0x564   : > { %4245 = vmatprep.subr.bf16.mxu0 %v4193_v35 }
 0x565   : > { %v10027_v38 = vpop.permute.xlu0 %4511 }
 0x566   : > { %8310 = vmatmul.mubr.msk.bf16.vlgmr.msra.gmra.mrb[56].mxu1 %vm386_vm2, %v9226_v28 }
 0x567   : > { %8687 = vmatpush3.bf16.msra.mxu1 %v4022_v31  ;;  %8688 = vmatprep.mubr.msk.bf16.mxu1 %vm9256_vm0, %v9255_v0 }
 0x568   : > { %4202 = vmatprep.subr.bf16.mxu1 %v4191_v46  ;;  %v9151_v46 = vpop.permute.xlu1 %9150 }
 0x569   : > { %v9146_v44 = vpop.permute.xlu0 %9145  ;;  %v9153_v53 = vunpack.i.h.bf16 %v9151_v46 }
 0x56a   : > { %8311 = vmatmul.mubr.msk.bf16.vlgmr.msra.gmra.mrb[28].mxu0 %vm386_vm2, %v9226_v28  ;;  %v9148_v55 = vunpack.i.h.bf16 %v9146_v44 }
 0x56b   : > { %4246 = vmatpush1.bf16.msra.mxu0 %v4192_v48  ;;  %4277 = vmatprep.mubr.bf16.mxu0 %v9257_v1 }
 0x56c   : > { %8692 = vmatprep.subr.bf16.mxu0 %v9255_v0  ;;  %v9161_v49 = vpop.permute.xlu1 %9160 }
 0x56d   : > { %v9156_v47 = vpop.permute.xlu0 %9155 }
 0x56e   : > { %8689 = vmatmul.mubr.msk.bf16.vlgmr.msra.gmra.mrb[72].mxu1 %vm386_vm2, %v9226_v28 }
 0x56f   : > { %4203 = vmatpush1.bf16.msra.mxu1 %v4190_v50  ;;  %4234 = vmatprep.mubr.bf16.mxu1 %v9257_v1 }
 0x570   : > { %4369 = vmatprep.subr.bf16.mxu1 %v4358_v51 }
 0x576   : > { %8316 = vmatmul.mubr.msk.bf16.vlgmr.msra.gmra.mrb[56].mxu1 %vm386_vm2, %v9227_v54  ;;  %8317 = vmatmul.mubr.msk.bf16.vlgmr.msra.gmra.mrb[28].mxu0 %vm386_vm2, %v9227_v54 }
 0x577   : > { %8693 = vmatpush3.bf16.msra.mxu0 %v4189_v39  ;;  %4370 = vmatpush1.bf16.msra.mxu1 %v4357_v56  ;;  %v9147_v56 = vunpack.i.l.bf16 %v9146_v44 }
 0x578   : > { %4412 = vmatprep.subr.bf16.mxu0 %v4360_v58  ;;  %8694 = vmatprep.mubr.msk.bf16.mxu0 %vm9256_vm0, %v9255_v0  ;;  %v10031_v58 = vpop.permute.xlu0 %9165 }
 0x579   : > { %4401 = vmatprep.mubr.bf16.mxu1 %v9257_v1  ;;  %8698 = vmatprep.subr.bf16.mxu1 %v9255_v0 }
 0x57e   : > { %8695 = vmatmul.mubr.msk.bf16.vlgmr.msra.gmra.mrb[44].mxu0 %vm386_vm2, %v9227_v54  ;;  %v9152_v54 = vunpack.i.l.bf16 %v9151_v46 }
 0x57f   : > { %4413 = vmatpush1.bf16.msra.mxu0 %v4359_v60  ;;  %4444 = vmatprep.mubr.bf16.mxu0 %v9257_v1 }
 0x582   : > { %8322 = vmatmul.mubr.msk.bf16.vlgmr.msra.gmra.mrb[56].mxu1 %vm386_vm2, %v9228_v61 }
 0x583   : > { %8699 = vmatpush3.bf16.msra.mxu1 %v4356_v57  ;;  %8700 = vmatprep.mubr.msk.bf16.mxu1 %vm9256_vm0, %v9255_v0 }
 0x586   : > { %8323 = vmatmul.mubr.msk.bf16.vlgmr.msra.gmra.mrb[28].mxu0 %vm386_vm2, %v9228_v61 }
 0x587   : > { %4727 = vmatprep.mubr.bf16.mxu0 %v9257_v1 }
 0x58a   : > { %8701 = vmatmul.mubr.msk.bf16.vlgmr.msra.gmra.mrb[76].mxu1 %vm386_vm2, %v9228_v61 }
 0x58b   : > { %4770 = vmatprep.mubr.bf16.mxu1 %v9257_v1 }
 0x5ed   : > { %v3195_v59 = vpop.f32.mrb[60].mxu1 }
 0x5ee   : > { %v8654_v62 = vpop.f32.mrb[61].mxu1 }
 0x5ef   : > { %v3198_v63 = vpop.f32.mrb[62].mxu1  ;;  %v9162_v62 = vunpack.i.l.bf16 %v9161_v49 }
 0x5f0   : > { %v8655_v45 = vpop.f32.mrb[63].mxu1 }
 0x5f1   : > { %v9157_v45 = vunpack.i.l.bf16 %v9156_v47 }
 0x5fd   : > { %v3330_v2 = vpop.f32.mrb[32].mxu0 }
 0x5fe   : > { %v3331_v3 = vadd.f32 %v3330_v2, %v3195_v59  ;;  %v8660_v5 = vpop.f32.mrb[33].mxu0  ;;  %v9163_v59 = vunpack.i.h.bf16 %v9161_v49 }
 0x5ff   : > { %v3333_v6 = vpop.f32.mrb[34].mxu0 }
 0x600   : > { %v3334_v8 = vadd.f32 %v3333_v6, %v3198_v63  ;;  %v8661_v9 = vpop.f32.mrb[35].mxu0  ;;  %v9158_v63 = vunpack.i.h.bf16 %v9156_v47  ;;  %v9167_v6 = vunpack.i.l.bf16 %v10031_v58 }
 0x609   : > { %v3487_v10 = vpop.f32.mrb[64].mxu1 }
 0x60a   : > { %v3498_v11 = vadd.f32 %v3487_v10, %v3331_v3  ;;  %v8666_v12 = vpop.f32.mrb[65].mxu1 }
 0x60b   : > { %v3490_v13 = vpop.f32.mrb[66].mxu1  ;;  %v9168_v12 = vunpack.i.h.bf16 %v10031_v58 }
 0x60c   : > { %v3503_v14 = vadd.f32 %v3490_v13, %v3334_v8  ;;  %v8667_v15 = vpop.f32.mrb[67].mxu1  ;;  %v4570_v8 = vsel %vm809_vm5, %v9147_v56, %v9148_v55 }
 0x619   : > { %v3654_v16 = vpop.f32.mrb[36].mxu0 }
 0x61a   : > { %v3665_v17 = vadd.f32 %v3654_v16, %v3498_v11  ;;  %v8672_v18 = vpop.f32.mrb[37].mxu0  ;;  %v4572_v11 = vsel %vm809_vm5, %v9152_v54, %v9153_v53 }
 0x61b   : > { %v3657_v19 = vpop.f32.mrb[38].mxu0  ;;  %v4574_v18 = vsel %vm809_vm5, %v9157_v45, %v9158_v63 }
 0x61c   : > { %v3670_v20 = vadd.f32 %v3657_v19, %v3503_v14  ;;  %v8673_v21 = vpop.f32.mrb[39].mxu0  ;;  %v4571_v14 = vsel %vm809_vm5, %v9148_v55, %v9152_v54 }
 0x61d   : > { %v4576_v21 = vsel %vm809_vm5, %v9162_v62, %v9163_v59 }
 0x625   : > { %v3821_v22 = vpop.f32.mrb[68].mxu1 }
 0x626   : > { %v3832_v23 = vadd.f32 %v3821_v22, %v3665_v17  ;;  %v8678_v24 = vpop.f32.mrb[69].mxu1 }
 0x627   : > { %v3824_v32 = vpop.f32.mrb[70].mxu1  ;;  %v4575_v24 = vsel %vm809_vm5, %v9158_v63, %v9162_v62 }
 0x628   : > { %v3837_v34 = vadd.f32 %v3824_v32, %v3670_v20  ;;  %v8679_v25 = vpop.f32.mrb[71].mxu1 }
 0x635   : > { %v3988_v26 = vpop.f32.mrb[40].mxu0 }
 0x636   : > { %v3999_v27 = vadd.f32 %v3988_v26, %v3832_v23  ;;  %v8684_v29 = vpop.f32.mrb[41].mxu0 }
 0x637   : > { %v3991_v30 = vpop.f32.mrb[42].mxu0  ;;  %v4573_v29 = vsel %vm809_vm5, %v9153_v53, %v9167_v6 }
 0x638   : > { %v4004_v31 = vadd.f32 %v3991_v30, %v3837_v34  ;;  %v8685_v36 = vpop.f32.mrb[43].mxu0 }
 0x641   : > { %v4155_v37 = vpop.f32.mrb[72].mxu1 }
 0x642   : > { %v4166_v39 = vadd.f32 %v4155_v37, %v3999_v27  ;;  %v8690_v33 = vpop.f32.mrb[73].mxu1 }
 0x643   : > { %v4158_v40 = vpop.f32.mrb[74].mxu1  ;;  %v4577_v33 = vsel %vm809_vm5, %v9163_v59, %v9168_v12 }
 0x644   : > { %v4171_v28 = vadd.f32 %v4158_v40, %v4004_v31  ;;  %v8691_v35 = vpop.f32.mrb[75].mxu1 }
 0x651   : > { %v4322_v48 = vpop.f32.mrb[44].mxu0 }
 0x652   : > { %v4333_v50 = vadd.f32 %v4322_v48, %v4166_v39  ;;  %v8696_v51 = vpop.f32.mrb[45].mxu0 }
 0x653   : > { %v4325_v57 = vpop.f32.mrb[46].mxu0 }
 0x654   : > { %v4338_v60 = vadd.f32 %v4325_v57, %v4171_v28  ;;  %v8697_v61 = vpop.f32.mrb[47].mxu0 }
 0x655   : > { %v4403_v2 = vpop.f32.mrb[56].mxu1 }
 0x656   : > { %v4519_v3 = vadd.f32 %v10027_v38, %v4403_v2  ;;  %v4405_v5 = vpop.f32.mrb[57].mxu1 }
 0x657   : > { %v4520_v9 = vadd.f32 %v10027_v38, %v4405_v5  ;;  %v4407_v10 = vpop.f32.mrb[58].mxu1 }
 0x658   : > { %v4588_v13 = vadd.f32 %v4570_v8, %v4519_v3  ;;  %v4524_v15 = vadd.f32 %v10029_v42, %v4407_v10  ;;  %v4409_v16 = vpop.f32.mrb[59].mxu1 }
 0x659   : > { %v4589_v17 = vadd.f32 %v4571_v14, %v4520_v9  ;;  %v4525_v19 = vadd.f32 %v10029_v42, %v4409_v16  ;;  %v4446_v20 = vpop.f32.mrb[28].mxu0 }
 0x65a   : > { %v4598_v22 = vmax.f32 %v4588_v13, 0.0  ;;  %v4593_v23 = vadd.f32 %v4574_v18, %v4524_v15  ;;  %v4521_v32 = vadd.f32 %v10027_v38, %v4446_v20  ;;  %v4448_v34 = vpop.f32.mrb[29].mxu0 }
 0x65b   : > { %v4599_v25 = vmax.f32 %v4589_v17, 0.0  ;;  %v4594_v26 = vadd.f32 %v4575_v24, %v4525_v19  ;;  %v4522_v27 = vadd.f32 %v10027_v38, %v4448_v34  ;;  %v4450_v30 = vpop.f32.mrb[30].mxu0 }
 0x65c   : > { %v4603_v31 = vmax.f32 %v4593_v23, 0.0  ;;  %v4590_v36 = vadd.f32 %v4572_v11, %v4521_v32  ;;  %v4526_v37 = vadd.f32 %v10029_v42, %v4450_v30  ;;  %v4452_v39 = vpop.f32.mrb[31].mxu0  ;;  %v4608_v40 = vmul.f32 %v4598_v22, %v9498_v4 }
 0x65d   : > { %v4604_v28 = vmax.f32 %v4594_v26, 0.0  ;;  %v4591_v35 = vadd.f32 %v4573_v29, %v4522_v27  ;;  %v4527_v44 = vadd.f32 %v10029_v42, %v4452_v39  ;;  %v4489_v46 = vpop.f32.mrb[76].mxu1  ;;  %v4609_v54 = vmul.f32 %v4599_v25, %v9501_v7  ;;  %v8382_v25 = vld [vmem:[%s10639_s4 + $0x38] sm:$0xff]  ;;  %v8381_v26 = vld [vmem:[%s10639_s4 + $0x30] sm:$0xff] }
 0x65e   : > { %v4613_v47 = vmul.f32 %v4603_v31, %v9498_v4  ;;  %v4600_v48 = vmax.f32 %v4590_v36, 0.0  ;;  %v4595_v49 = vadd.f32 %v4576_v21, %v4526_v37  ;;  %v4500_v51 = vadd.f32 %v4489_v46, %v4333_v50  ;;  %v8702_v53 = vpop.f32.mrb[77].mxu1  ;;  %v9229_v37 = vld [vmem:[%s10638_s3 + $0xe0] sm:$0xff]  }
 0x65f   : > { %v4614_v55 = vmul.f32 %v4604_v28, %v9501_v7  ;;  %v4601_v56 = vmax.f32 %v4591_v35, 0.0  ;;  %v4596_v57 = vadd.f32 %v4577_v33, %v4527_v44  ;;  %v4492_v58 = vpop.f32.mrb[78].mxu1 }
 0x660   : > { %v4618_v61 = vpack.c.bf16 %v4613_v47, %v4608_v40  ;;  %v4605_v59 = vmax.f32 %v4595_v49, 0.0  ;;  %v4523_v62 = vadd.f32 %v10027_v38, %v4500_v51  ;;  %v8703_v63 = vpop.f32.mrb[79].mxu1  ;;  %v4505_v3 = vadd.f32 %v4492_v58, %v4338_v60  ;;  %v9230_v49 = vld [vmem:[%s10638_s3 + $0xd8] sm:$0xff]  }
 0x661   : > { %v4619_v45 = vpack.c.bf16 %v4614_v55, %v4609_v54  ;;  %v4606_v2 = vmax.f32 %v4596_v57, 0.0  ;;  %v4610_v5 = vmul.f32 %v4600_v48, %v9479_v52  ;;  %v4611_v9 = vmul.f32 %v4601_v56, %v9758_v43 }
 0x662   : > { %v4615_v50 = vmul.f32 %v4605_v59, %v9479_v52  ;;  %v4592_v8 = vadd.f32 %v9167_v6, %v4523_v62  ;;  %4628 = vrot.lane.b32.xlu1 %v4618_v61, %s9266_s30  ;;  %v4528_v11 = vadd.f32 %v10029_v42, %v4505_v3  ;;  %v9231_v61 = vld [vmem:[%s10638_s3 + $0xe8] sm:$0xff]  }
 0x663   : > { %v4616_v10 = vmul.f32 %v4606_v2, %v9758_v43  ;;  %4630 = vrot.lane.b32.xlu0 %v4619_v45, %s9266_s30 }
 0x664   : > { %v4620_v38 = vpack.c.bf16 %v4615_v50, %v4610_v5  ;;  %v4602_v14 = vmax.f32 %v4592_v8, 0.0  ;;  %v4597_v15 = vadd.f32 %v9168_v12, %v4528_v11  ;;  %v9232_v11 = vld [vmem:[%s10638_s3 + $0xf0] sm:$0xff]  }
 0x665   : > { %v4621_v13 = vpack.c.bf16 %v4616_v10, %v4611_v9 }
 0x666   : > { %4632 = vrot.lane.b32.xlu1 %v4620_v38, %s9266_s30  ;;  %v4607_v60 = vmax.f32 %v4597_v15, 0.0  ;;  %v4612_v6 = vmul.f32 %v4602_v14, %v9761_v41 }
 0x667   : > { %4634 = vrot.lane.b32.xlu0 %v4621_v13, %s9266_s30 }
 0x668   : > { %v4617_v16 = vmul.f32 %v4607_v60, %v9761_v41 }
 0x66a   : > { %v4622_v17 = vpack.c.bf16 %v4617_v16, %v4612_v6  ;;  %v9233_v16 = vld [vmem:[%s10638_s3 + $0xf8] sm:$0xff]  }
 0x66c   : > { %4636 = vrot.lane.b32.xlu1 %v4622_v17, %s9266_s30 }
 0x6d4   : > { %v4629_v18 = vpop.permute.xlu1 %4628 }
 0x6d5   : > { %4647 = vst.msk [vmem:[#allocation2] sm:$0xff] %vm1431_vm15, %v4629_v18  ;;  %v4631_v42 = vpop.permute.xlu0 %4630 }
 0x6d6   : > { %v10070_v19 = vsel %vm1425_vm12, %v4629_v18, %v4631_v42 }
 0x6d7   : > { %4675 = vrot.lane.b32.xlu0 %v10070_v19, %s9258_s11 }
 0x6d8   : > { %v4633_v12 = vpop.permute.xlu1 %4632 }
 0x6d9   : > { %v10075_v20 = vsel %vm1425_vm12, %v4631_v42, %v4633_v12  ;;  %v4635_v21 = vpop.permute.xlu0 %4634 }
 0x6da   : > { %4677 = vrot.lane.b32.xlu1 %v10075_v20, %s9258_s11  ;;  %v10082_v23 = vsel %vm1425_vm12, %v4633_v12, %v4635_v21 }
 0x6dc   : > { %v10079_v22 = vld [vmem:[#allocation2] sm:$0xff] }
 0x6dd   : > { %4673 = vrot.lane.b32.xlu0 %v10079_v22, %s9258_s11 }
 0x6de   : > { %4679 = vrot.lane.b32.xlu1 %v10082_v23, %s9258_s11  ;;  %v4637_v24 = vpop.permute.xlu1 %4636 }
 0x6df   : > { %v4641_v32 = vsel %vm1425_vm12, %v4635_v21, %v4637_v24 }
 0x6e0   : > { %4651 = vst.msk [vmem:[#allocation2 + $0x20] sm:$0xff] %vm3030_vm13, %v4641_v32 }
 0x6e2   : > { %4967 = vrot.lane.b32.xlu1 %v10070_v19, %s9259_s12 }
 0x6e6   : > { %4965 = vrot.lane.b32.xlu1 %v10079_v22, %s9259_s12 }
 0x6e7   : > { %v10094_v34 = vld [vmem:[#allocation2 + $0x20] sm:$0xff] }
 0x6e8   : > { %4681 = vrot.lane.b32.xlu0 %v10094_v34, %s9258_s11 }
 0x6ea   : > { %4973 = vrot.lane.b32.xlu1 %v10094_v34, %s9259_s12 }
 0x6ec   : > { %4969 = vrot.lane.b32.xlu0 %v10075_v20, %s9259_s12 }
 0x6ee   : > { %5136 = vrot.lane.b32.xlu1 %v10075_v20, %s9260_s13 }
 0x6f0   : > { %4971 = vrot.lane.b32.xlu0 %v10082_v23, %s9259_s12 }
 0x6f2   : > { %5138 = vrot.lane.b32.xlu1 %v10082_v23, %s9260_s13 }
 0x6f4   : > { %5134 = vrot.lane.b32.xlu0 %v10070_v19, %s9260_s13 }
 0x6f6   : > { %5301 = vrot.lane.b32.xlu1 %v10070_v19, %s9261_s14 }
 0x6f8   : > { %5132 = vrot.lane.b32.xlu0 %v10079_v22, %s9260_s13 }
 0x6fa   : > { %5299 = vrot.lane.b32.xlu1 %v10079_v22, %s9261_s14 }
 0x6fc   : > { %5140 = vrot.lane.b32.xlu0 %v10094_v34, %s9260_s13 }
 0x6fe   : > { %5307 = vrot.lane.b32.xlu1 %v10094_v34, %s9261_s14 }
 0x700   : > { %5303 = vrot.lane.b32.xlu0 %v10075_v20, %s9261_s14 }
 0x702   : > { %5470 = vrot.lane.b32.xlu1 %v10075_v20, %s9262_s15 }
 0x704   : > { %5305 = vrot.lane.b32.xlu0 %v10082_v23, %s9261_s14 }
 0x706   : > { %5472 = vrot.lane.b32.xlu1 %v10082_v23, %s9262_s15 }
 0x708   : > { %5468 = vrot.lane.b32.xlu0 %v10070_v19, %s9262_s15 }
 0x70a   : > { %5635 = vrot.lane.b32.xlu1 %v10070_v19, %s9263_s16 }
 0x70c   : > { %5466 = vrot.lane.b32.xlu0 %v10079_v22, %s9262_s15 }
 0x70e   : > { %5633 = vrot.lane.b32.xlu1 %v10079_v22, %s9263_s16 }
 0x710   : > { %5474 = vrot.lane.b32.xlu0 %v10094_v34, %s9262_s15 }
 0x712   : > { %5641 = vrot.lane.b32.xlu1 %v10094_v34, %s9263_s16 }
 0x714   : > { %5637 = vrot.lane.b32.xlu0 %v10075_v20, %s9263_s16 }
 0x716   : > { %5804 = vrot.lane.b32.xlu1 %v10075_v20, %s9264_s17 }
 0x718   : > { %5639 = vrot.lane.b32.xlu0 %v10082_v23, %s9263_s16 }
 0x71a   : > { %5806 = vrot.lane.b32.xlu1 %v10082_v23, %s9264_s17 }
 0x71c   : > { %5802 = vrot.lane.b32.xlu0 %v10070_v19, %s9264_s17 }
 0x71e   : > { %5969 = vrot.lane.b32.xlu1 %v10070_v19, %s9265_s18 }
 0x720   : > { %5800 = vrot.lane.b32.xlu0 %v10079_v22, %s9264_s17 }
 0x722   : > { %5967 = vrot.lane.b32.xlu1 %v10079_v22, %s9265_s18 }
 0x724   : > { %5808 = vrot.lane.b32.xlu0 %v10094_v34, %s9264_s17 }
 0x726   : > { %5975 = vrot.lane.b32.xlu1 %v10094_v34, %s9265_s18 }
 0x728   : > { %5971 = vrot.lane.b32.xlu0 %v10075_v20, %s9265_s18 }
 0x72a   : > { %6136 = vperm.xlu1 %9143, %v8382_v25  }
 0x72c   : > { %5973 = vrot.lane.b32.xlu0 %v10082_v23, %s9265_s18 }
 0x730   : > { %6131 = vperm.xlu0 %9142, %v8381_v26  }
 0x749   : > { %v4676_v27 = vpop.permute.xlu0 %4675 }
 0x74c   : > { %v4678_v29 = vpop.permute.xlu1 %4677 }
 0x74d   : > { %v4684_v30 = vsel %vm380_vm1, %v4676_v27, %v4678_v29 }
 0x74e   : > { %4695 = vmatprep.subr.bf16.mxu0 %v4684_v30 }
 0x74f   : > { %v4674_v31 = vpop.permute.xlu0 %4673 }
 0x750   : > { %v4683_v36 = vsel %vm380_vm1, %v4674_v31, %v4676_v27  ;;  %v4680_v39 = vpop.permute.xlu1 %4679  ;;  %v9234_v31 = vld [vmem:[%s10638_s3 + $0x100] sm:$0xff]  }
 0x751   : > { %4696 = vmatpush1.bf16.msra.mxu0 %v4683_v36  ;;  %v4685_v35 = vsel %vm380_vm1, %v4678_v29, %v4680_v39 }
 0x752   : > { %8704 = vmatprep.subr.bf16.mxu0 %v9255_v0 }
 0x754   : > { %8332 = vmatmul.mubr.msk.bf16.vlgmr.msra.gmra.mrb[48].mxu0 %vm386_vm2, %v9229_v37  ;;  %v4968_v33 = vpop.permute.xlu1 %4967 }
 0x755   : > { %8706 = vmatprep.mubr.msk.bf16.mxu0 %vm9256_vm0, %v9255_v0 }
 0x758   : > { %v4966_v44 = vpop.permute.xlu1 %4965 }
 0x759   : > { %v4975_v53 = vsel %vm583_vm3, %v4966_v44, %v4968_v33 }
 0x75a   : > { %v4682_v40 = vpop.permute.xlu0 %4681 }
 0x75b   : > { %8705 = vmatpush3.bf16.msra.mxu0 %v4682_v40  ;;  %v4686_v28 = vsel %vm380_vm1, %v4680_v39, %v4682_v40 }
 0x75c   : > { %4738 = vmatprep.subr.bf16.mxu1 %v4686_v28  ;;  %4830 = vmatprep.subr.bf16.mxu0 %v10070_v19  ;;  %v4974_v51 = vpop.permute.xlu1 %4973 }
 0x75d   : > { %4739 = vmatpush1.bf16.msra.mxu1 %v4685_v35  ;;  %v9235_v35 = vld [vmem:[%s10638_s3 + $0x108] sm:$0xff]  }
 0x75e   : > { %4873 = vmatprep.subr.bf16.mxu1 %v10082_v23  ;;  %v4970_v46 = vpop.permute.xlu0 %4969  ;;  %8707 = vmatmul.mubr.msk.bf16.vlgmr.msra.gmra.mrb[52].mxu0 %vm386_vm2, %v9229_v37 }
 0x75f   : > { %4831 = vmatpush1.bf16.msra.mxu0 %v10079_v22  ;;  %v4976_v47 = vsel %vm583_vm3, %v4968_v33, %v4970_v46  ;;  %4862 = vmatprep.mubr.bf16.mxu0 %v9257_v1 }
 0x760   : > { %8333 = vmatmul.mubr.msk.bf16.vlgmr.msra.gmra.mrb[80].mxu1 %vm386_vm2, %v9229_v37  ;;  %4987 = vmatprep.subr.bf16.mxu0 %v4976_v47  ;;  %v5137_v55 = vpop.permute.xlu1 %5136 }
 0x761   : > { %4874 = vmatpush1.bf16.msra.mxu1 %v10075_v20  ;;  %4905 = vmatprep.mubr.bf16.mxu1 %v9257_v1 }
 0x762   : > { %v4972_v48 = vpop.permute.xlu0 %4971  ;;  %8710 = vmatprep.subr.bf16.mxu1 %v9255_v0 }
 0x763   : > { %v4978_v57 = vsel %vm583_vm3, %v4972_v48, %v4974_v51  ;;  %v4977_v63 = vsel %vm583_vm3, %v4970_v46, %v4972_v48 }
 0x764   : > { %v5139_v59 = vpop.permute.xlu1 %5138 }
 0x765   : > { %v5144_v10 = vsel %vm696_vm4, %v5137_v55, %v5139_v59 }
 0x766   : > { %v5135_v54 = vpop.permute.xlu0 %5134  ;;  %8336 = vmatmul.mubr.msk.bf16.vlgmr.msra.gmra.mrb[48].mxu0 %vm386_vm2, %v9230_v49 }
 0x767   : > { %4988 = vmatpush1.bf16.msra.mxu0 %v4975_v53  ;;  %5019 = vmatprep.mubr.bf16.mxu0 %v9257_v1  ;;  %v5143_v62 = vsel %vm696_vm4, %v5135_v54, %v5137_v55 }
 0x768   : > { %8716 = vmatprep.subr.bf16.mxu0 %v9255_v0  ;;  %v5302_v2 = vpop.permute.xlu1 %5301 }
 0x76a   : > { %v5133_v56 = vpop.permute.xlu0 %5132 }
 0x76b   : > { %v5142_v5 = vsel %vm696_vm4, %v5133_v56, %v5135_v54 }
 0x76c   : > { %8337 = vmatmul.mubr.msk.bf16.vlgmr.msra.gmra.mrb[80].mxu1 %vm386_vm2, %v9230_v49  ;;  %v5300_v8 = vpop.permute.xlu1 %5299 }
 0x76d   : > { %8711 = vmatpush3.bf16.msra.mxu1 %v10094_v34  ;;  %8712 = vmatprep.mubr.msk.bf16.mxu1 %vm9256_vm0, %v9255_v0  ;;  %v5309_v14 = vsel %vm809_vm5, %v5300_v8, %v5302_v2 }
 0x76e   : > { %5030 = vmatprep.subr.bf16.mxu1 %v4978_v57  ;;  %v5141_v58 = vpop.permute.xlu0 %5140  ;;  %v9236_v57 = vld [vmem:[%s10638_s3 + $0x110] sm:$0xff]  }
 0x76f   : > { %v5145_v3 = vsel %vm696_vm4, %v5139_v59, %v5141_v58 }
 0x770   : > { %v5308_v13 = vpop.permute.xlu1 %5307 }
 0x772   : > { %8342 = vmatmul.mubr.msk.bf16.vlgmr.msra.gmra.mrb[48].mxu0 %vm386_vm2, %v9231_v61  ;;  %v5304_v45 = vpop.permute.xlu0 %5303 }
 0x773   : > { %8717 = vmatpush3.bf16.msra.mxu0 %v4974_v51  ;;  %8718 = vmatprep.mubr.msk.bf16.mxu0 %vm9256_vm0, %v9255_v0  ;;  %v5310_v9 = vsel %vm809_vm5, %v5302_v2, %v5304_v45 }
 0x774   : > { %8713 = vmatmul.mubr.msk.bf16.vlgmr.msra.gmra.mrb[84].mxu1 %vm386_vm2, %v9230_v49  ;;  %5154 = vmatprep.subr.bf16.mxu0 %v5143_v62  ;;  %v5471_v60 = vpop.permute.xlu1 %5470 }
 0x775   : > { %5031 = vmatpush1.bf16.msra.mxu1 %v4977_v63  ;;  %5062 = vmatprep.mubr.bf16.mxu1 %v9257_v1 }
 0x776   : > { %5197 = vmatprep.subr.bf16.mxu1 %v5145_v3  ;;  %v5306_v50 = vpop.permute.xlu0 %5305 }
 0x777   : > { %v5312_v6 = vsel %vm809_vm5, %v5306_v50, %v5308_v13  ;;  %v5311_v12 = vsel %vm809_vm5, %v5304_v45, %v5306_v50  ;;  %v9237_v45 = vld [vmem:[%s10638_s3 + $0x118] sm:$0xff]  }
 0x778   : > { %v5473_v18 = vpop.permute.xlu1 %5472 }
 0x779   : > { %v5478_v27 = vsel %vm922_vm6, %v5471_v60, %v5473_v18 }
 0x77a   : > { %8719 = vmatmul.mubr.msk.bf16.vlgmr.msra.gmra.mrb[56].mxu0 %vm386_vm2, %v9231_v61  ;;  %v5469_v38 = vpop.permute.xlu0 %5468 }
 0x77b   : > { %5155 = vmatpush1.bf16.msra.mxu0 %v5142_v5  ;;  %5186 = vmatprep.mubr.bf16.mxu0 %v9257_v1  ;;  %v5477_v42 = vsel %vm922_vm6, %v5469_v38, %v5471_v60 }
 0x77c   : > { %8343 = vmatmul.mubr.msk.bf16.vlgmr.msra.gmra.mrb[80].mxu1 %vm386_vm2, %v9231_v61  ;;  %5321 = vmatprep.subr.bf16.mxu0 %v5310_v9  ;;  %v5636_v32 = vpop.permute.xlu1 %5635 }
 0x77d   : > { %5198 = vmatpush1.bf16.msra.mxu1 %v5144_v10  ;;  %5229 = vmatprep.mubr.bf16.mxu1 %v9257_v1 }
 0x77e   : > { %8722 = vmatprep.subr.bf16.mxu1 %v9255_v0  ;;  %v5467_v15 = vpop.permute.xlu0 %5466 }
 0x77f   : > { %v5476_v25 = vsel %vm922_vm6, %v5467_v15, %v5469_v38 }
 0x780   : > { %v5634_v30 = vpop.permute.xlu1 %5633 }
 0x781   : > { %v5643_v36 = vsel %vm1035_vm7, %v5634_v30, %v5636_v32 }
 0x782   : > { %8348 = vmatmul.mubr.msk.bf16.vlgmr.msra.gmra.mrb[48].mxu0 %vm386_vm2, %v9232_v11  ;;  %v5475_v17 = vpop.permute.xlu0 %5474 }
 0x783   : > { %5322 = vmatpush1.bf16.msra.mxu0 %v5309_v14  ;;  %5353 = vmatprep.mubr.bf16.mxu0 %v9257_v1  ;;  %v5479_v21 = vsel %vm922_vm6, %v5473_v18, %v5475_v17 }
 0x784   : > { %8728 = vmatprep.subr.bf16.mxu0 %v9255_v0  ;;  %v5642_v39 = vpop.permute.xlu1 %5641 }
 0x786   : > { %v5638_v24 = vpop.permute.xlu0 %5637 }
 0x787   : > { %v5644_v26 = vsel %vm1035_vm7, %v5636_v32, %v5638_v24 }
 0x788   : > { %8349 = vmatmul.mubr.msk.bf16.vlgmr.msra.gmra.mrb[80].mxu1 %vm386_vm2, %v9232_v11  ;;  %v5805_v40 = vpop.permute.xlu1 %5804 }
 0x789   : > { %8723 = vmatpush3.bf16.msra.mxu1 %v5141_v58  ;;  %8724 = vmatprep.mubr.msk.bf16.mxu1 %vm9256_vm0, %v9255_v0 }
 0x78a   : > { %5364 = vmatprep.subr.bf16.mxu1 %v5312_v6  ;;  %v5640_v29 = vpop.permute.xlu0 %5639 }
 0x78b   : > { %v5646_v28 = vsel %vm1035_vm7, %v5640_v29, %v5642_v39  ;;  %v5645_v48 = vsel %vm1035_vm7, %v5638_v24, %v5640_v29 }
 0x78c   : > { %v5807_v46 = vpop.permute.xlu1 %5806 }
 0x78d   : > { %v5812_v56 = vsel %vm1148_vm8, %v5805_v40, %v5807_v46 }
 0x78e   : > { %8354 = vmatmul.mubr.msk.bf16.vlgmr.msra.gmra.mrb[48].mxu0 %vm386_vm2, %v9233_v16  ;;  %v5803_v37 = vpop.permute.xlu0 %5802 }
 0x78f   : > { %8729 = vmatpush3.bf16.msra.mxu0 %v5308_v13  ;;  %8730 = vmatprep.mubr.msk.bf16.mxu0 %vm9256_vm0, %v9255_v0  ;;  %v5811_v47 = vsel %vm1148_vm8, %v5803_v37, %v5805_v40 }
 0x790   : > { %8725 = vmatmul.mubr.msk.bf16.vlgmr.msra.gmra.mrb[88].mxu1 %vm386_vm2, %v9232_v11  ;;  %5488 = vmatprep.subr.bf16.mxu0 %v5477_v42  ;;  %v5970_v53 = vpop.permute.xlu1 %5969 }
 0x791   : > { %5365 = vmatpush1.bf16.msra.mxu1 %v5311_v12  ;;  %5396 = vmatprep.mubr.bf16.mxu1 %v9257_v1 }
 0x792   : > { %5531 = vmatprep.subr.bf16.mxu1 %v5479_v21  ;;  %v5801_v33 = vpop.permute.xlu0 %5800 }
 0x793   : > { %v5810_v54 = vsel %vm1148_vm8, %v5801_v33, %v5803_v37 }
 0x794   : > { %v5968_v58 = vpop.permute.xlu1 %5967 }
 0x795   : > { %v5977_v61 = vsel %vm1261_vm9, %v5968_v58, %v5970_v53 }
 0x796   : > { %8731 = vmatmul.mubr.msk.bf16.vlgmr.msra.gmra.mrb[60].mxu0 %vm386_vm2, %v9233_v16  ;;  %v5809_v44 = vpop.permute.xlu0 %5808 }
 0x797   : > { %5489 = vmatpush1.bf16.msra.mxu0 %v5476_v25  ;;  %5520 = vmatprep.mubr.bf16.mxu0 %v9257_v1  ;;  %v5813_v49 = vsel %vm1148_vm8, %v5807_v46, %v5809_v44 }
 0x798   : > { %8355 = vmatmul.mubr.msk.bf16.vlgmr.msra.gmra.mrb[80].mxu1 %vm386_vm2, %v9233_v16  ;;  %5655 = vmatprep.subr.bf16.mxu0 %v5644_v26  ;;  %v5976_v62 = vpop.permute.xlu1 %5975 }
 0x799   : > { %5532 = vmatpush1.bf16.msra.mxu1 %v5478_v27  ;;  %5563 = vmatprep.mubr.bf16.mxu1 %v9257_v1 }
 0x79a   : > { %8734 = vmatprep.subr.bf16.mxu1 %v9255_v0  ;;  %v5972_v51 = vpop.permute.xlu0 %5971 }
 0x79b   : > { %v5978_v55 = vsel %vm1261_vm9, %v5970_v53, %v5972_v51 }
 0x79e   : > { %8360 = vmatmul.mubr.msk.bf16.vlgmr.msra.gmra.mrb[48].mxu0 %vm386_vm2, %v9234_v31  ;;  %v5974_v59 = vpop.permute.xlu0 %5973 }
 0x79f   : > { %5656 = vmatpush1.bf16.msra.mxu0 %v5643_v36  ;;  %5687 = vmatprep.mubr.bf16.mxu0 %v9257_v1  ;;  %v5980_v63 = vsel %vm1261_vm9, %v5974_v59, %v5976_v62  ;;  %v5979_v2 = vsel %vm1261_vm9, %v5972_v51, %v5974_v59 }
 0x7a0   : > { %8740 = vmatprep.subr.bf16.mxu0 %v9255_v0 }
 0x7a4   : > { %8361 = vmatmul.mubr.msk.bf16.vlgmr.msra.gmra.mrb[80].mxu1 %vm386_vm2, %v9234_v31 }
 0x7a5   : > { %8735 = vmatpush3.bf16.msra.mxu1 %v5475_v17  ;;  %8736 = vmatprep.mubr.msk.bf16.mxu1 %vm9256_vm0, %v9255_v0 }
 0x7a6   : > { %5698 = vmatprep.subr.bf16.mxu1 %v5646_v28 }
 0x7aa   : > { %8366 = vmatmul.mubr.msk.bf16.vlgmr.msra.gmra.mrb[48].mxu0 %vm386_vm2, %v9235_v35 }
 0x7ab   : > { %8741 = vmatpush3.bf16.msra.mxu0 %v5642_v39  ;;  %8742 = vmatprep.mubr.msk.bf16.mxu0 %vm9256_vm0, %v9255_v0 }
 0x7ac   : > { %8737 = vmatmul.mubr.msk.bf16.vlgmr.msra.gmra.mrb[92].mxu1 %vm386_vm2, %v9234_v31  ;;  %5822 = vmatprep.subr.bf16.mxu0 %v5811_v47 }
 0x7ad   : > { %5699 = vmatpush1.bf16.msra.mxu1 %v5645_v48  ;;  %5730 = vmatprep.mubr.bf16.mxu1 %v9257_v1 }
 0x7ae   : > { %5865 = vmatprep.subr.bf16.mxu1 %v5813_v49 }
 0x7af   : > { %v6132_v53 = vpop.permute.xlu0 %6131 }
 0x7b2   : > { %8743 = vmatmul.mubr.msk.bf16.vlgmr.msra.gmra.mrb[64].mxu0 %vm386_vm2, %v9235_v35 }
 0x7b3   : > { %5823 = vmatpush1.bf16.msra.mxu0 %v5810_v54  ;;  %5854 = vmatprep.mubr.bf16.mxu0 %v9257_v1 }
 0x7b4   : > { %8367 = vmatmul.mubr.msk.bf16.vlgmr.msra.gmra.mrb[80].mxu1 %vm386_vm2, %v9235_v35  ;;  %5989 = vmatprep.subr.bf16.mxu0 %v5978_v55  ;;  %v6137_v55 = vpop.permute.xlu1 %6136 }
 0x7b5   : > { %5866 = vmatpush1.bf16.msra.mxu1 %v5812_v56  ;;  %5897 = vmatprep.mubr.bf16.mxu1 %v9257_v1 }
 0x7b6   : > { %8746 = vmatprep.subr.bf16.mxu1 %v9255_v0 }
 0x7ba   : > { %8372 = vmatmul.mubr.msk.bf16.vlgmr.msra.gmra.mrb[48].mxu0 %vm386_vm2, %v9236_v57 }
 0x7bb   : > { %5990 = vmatpush1.bf16.msra.mxu0 %v5977_v61  ;;  %6021 = vmatprep.mubr.bf16.mxu0 %v9257_v1 }
 0x7bc   : > { %8752 = vmatprep.subr.bf16.mxu0 %v9255_v0 }
 0x7c0   : > { %8373 = vmatmul.mubr.msk.bf16.vlgmr.msra.gmra.mrb[80].mxu1 %vm386_vm2, %v9236_v57 }
 0x7c1   : > { %8747 = vmatpush3.bf16.msra.mxu1 %v5809_v44  ;;  %8748 = vmatprep.mubr.msk.bf16.mxu1 %vm9256_vm0, %v9255_v0 }
 0x7c2   : > { %6032 = vmatprep.subr.bf16.mxu1 %v5980_v63 }
 0x7c6   : > { %8378 = vmatmul.mubr.msk.bf16.vlgmr.msra.gmra.mrb[48].mxu0 %vm386_vm2, %v9237_v45 }
 0x7c7   : > { %8753 = vmatpush3.bf16.msra.mxu0 %v5976_v62  ;;  %8754 = vmatprep.mubr.msk.bf16.mxu0 %vm9256_vm0, %v9255_v0 }
 0x7c8   : > { %8749 = vmatmul.mubr.msk.bf16.vlgmr.msra.gmra.mrb[96].mxu1 %vm386_vm2, %v9236_v57 }
 0x7c9   : > { %6033 = vmatpush1.bf16.msra.mxu1 %v5979_v2  ;;  %6064 = vmatprep.mubr.bf16.mxu1 %v9257_v1 }
 0x7ce   : > { %8755 = vmatmul.mubr.msk.bf16.vlgmr.msra.gmra.mrb[68].mxu0 %vm386_vm2, %v9237_v45 }
 0x7cf   : > { %6321 = vmatprep.mubr.bf16.mxu0 %v9257_v1 }
 0x7d0   : > { %8379 = vmatmul.mubr.msk.bf16.vlgmr.msra.gmra.mrb[80].mxu1 %vm386_vm2, %v9237_v45 }
 0x7d1   : > { %6278 = vmatprep.mubr.bf16.mxu1 %v9257_v1 }
 0x831   : > { %v4815_v3 = vpop.f32.mrb[52].mxu0 }
 0x832   : > { %v8708_v5 = vpop.f32.mrb[53].mxu0 }
 0x833   : > { %v4818_v50 = vpop.f32.mrb[54].mxu0 }
 0x834   : > { %v8709_v8 = vpop.f32.mrb[55].mxu0 }
 0x847   : > { %v4950_v9 = vpop.f32.mrb[84].mxu1 }
 0x848   : > { %v4951_v10 = vadd.f32 %v4950_v9, %v4815_v3  ;;  %v8714_v11 = vpop.f32.mrb[85].mxu1 }
 0x849   : > { %v4953_v38 = vpop.f32.mrb[86].mxu1 }
 0x84a   : > { %v4954_v13 = vadd.f32 %v4953_v38, %v4818_v50  ;;  %v8715_v14 = vpop.f32.mrb[87].mxu1 }
 0x84d   : > { %v5107_v15 = vpop.f32.mrb[56].mxu0 }
 0x84e   : > { %v5118_v60 = vadd.f32 %v5107_v15, %v4951_v10  ;;  %v8720_v6 = vpop.f32.mrb[57].mxu0 }
 0x84f   : > { %v5110_v16 = vpop.f32.mrb[58].mxu0 }
 0x850   : > { %v5123_v17 = vadd.f32 %v5110_v16, %v4954_v13  ;;  %v8721_v18 = vpop.f32.mrb[59].mxu0 }
 0x863   : > { %v5274_v42 = vpop.f32.mrb[88].mxu1 }
 0x864   : > { %v5285_v12 = vadd.f32 %v5274_v42, %v5118_v60  ;;  %v8726_v21 = vpop.f32.mrb[89].mxu1 }
 0x865   : > { %v5277_v24 = vpop.f32.mrb[90].mxu1 }
 0x866   : > { %v5290_v32 = vadd.f32 %v5277_v24, %v5123_v17  ;;  %v8727_v25 = vpop.f32.mrb[91].mxu1 }
 0x869   : > { %v5441_v26 = vpop.f32.mrb[60].mxu0 }
 0x86a   : > { %v5452_v27 = vadd.f32 %v5441_v26, %v5285_v12  ;;  %v8732_v29 = vpop.f32.mrb[61].mxu0 }
 0x86b   : > { %v5444_v30 = vpop.f32.mrb[62].mxu0 }
 0x86c   : > { %v5457_v31 = vadd.f32 %v5444_v30, %v5290_v32  ;;  %v8733_v36 = vpop.f32.mrb[63].mxu0 }
 0x87f   : > { %v5608_v37 = vpop.f32.mrb[92].mxu1 }
 0x880   : > { %v5619_v39 = vadd.f32 %v5608_v37, %v5452_v27  ;;  %v8738_v33 = vpop.f32.mrb[93].mxu1 }
 0x881   : > { %v5611_v40 = vpop.f32.mrb[94].mxu1 }
 0x882   : > { %v5624_v28 = vadd.f32 %v5611_v40, %v5457_v31  ;;  %v8739_v35 = vpop.f32.mrb[95].mxu1 }
 0x885   : > { %v5775_v44 = vpop.f32.mrb[64].mxu0 }
 0x886   : > { %v5786_v46 = vadd.f32 %v5775_v44, %v5619_v39  ;;  %v8744_v47 = vpop.f32.mrb[65].mxu0 }
 0x887   : > { %v5778_v48 = vpop.f32.mrb[66].mxu0 }
 0x888   : > { %v5791_v49 = vadd.f32 %v5778_v48, %v5624_v28  ;;  %v8745_v51 = vpop.f32.mrb[67].mxu0 }
 0x899   : > { %v6023_v54 = vpop.f32.mrb[48].mxu0 }
 0x89a   : > { %v6139_v56 = vadd.f32 %v6132_v53, %v6023_v54  ;;  %v6025_v57 = vpop.f32.mrb[49].mxu0 }
 0x89b   : > { %v5942_v58 = vpop.f32.mrb[96].mxu1  ;;  %v6140_v61 = vadd.f32 %v6132_v53, %v6025_v57  ;;  %v6027_v59 = vpop.f32.mrb[50].mxu0 }
 0x89c   : > { %v5953_v62 = vadd.f32 %v5942_v58, %v5786_v46  ;;  %v8750_v63 = vpop.f32.mrb[97].mxu1  ;;  %v6149_v45 = vmax.f32 %v6139_v56, 0.0  ;;  %v6144_v2 = vadd.f32 %v6137_v55, %v6027_v59  ;;  %v6029_v3 = vpop.f32.mrb[51].mxu0 }
 0x89d   : > { %v5945_v5 = vpop.f32.mrb[98].mxu1  ;;  %v6150_v50 = vmax.f32 %v6140_v61, 0.0  ;;  %v6145_v8 = vadd.f32 %v6137_v55, %v6029_v3 }
 0x89e   : > { %v5958_v9 = vadd.f32 %v5945_v5, %v5791_v49  ;;  %v8751_v10 = vpop.f32.mrb[99].mxu1  ;;  %v6154_v11 = vmax.f32 %v6144_v2, 0.0  ;;  %v6159_v13 = vmul.f32 %v6149_v45, %v9498_v4 }
 0x89f   : > { %v6155_v38 = vmax.f32 %v6145_v8, 0.0  ;;  %v6160_v15 = vmul.f32 %v6150_v50, %v9501_v7  ;;  %v7707_v10 = vunpack.c.h.bf16 %v10075_v20 }
 0x8a0   : > { %v6164_v14 = vmul.f32 %v6154_v11, %v9498_v4  ;;  %v7706_v11 = vunpack.c.h.bf16 %v10070_v19 }
 0x8a1   : > { %v6165_v60 = vmul.f32 %v6155_v38, %v9501_v7  ;;  %v6109_v6 = vpop.f32.mrb[68].mxu0  ;;  %v8437_v38 = vld [vmem:[%s10639_s4 + $0x40] sm:$0xff] }
 0x8a2   : > { %v6169_v16 = vpack.c.bf16 %v6164_v14, %v6159_v13  ;;  %v6120_v17 = vadd.f32 %v6109_v6, %v5953_v62  ;;  %v8756_v18 = vpop.f32.mrb[69].mxu0  ;;  %v7702_v13 = vunpack.c.l.bf16 %v10075_v20  ;;  %v9174_v14 = vpack.i.bf16 %v7707_v10, %v7706_v11  ;;  %v9242_v11 = vld [vmem:[%s10638_s3 + $0x140] sm:$0xff]  }
 0x8a3   : > { %v6170_v42 = vpack.c.bf16 %v6165_v60, %v6160_v15  ;;  %v6066_v12 = vpop.f32.mrb[80].mxu1  ;;  %v6112_v21 = vpop.f32.mrb[70].mxu0  ;;  %v7704_v15 = vunpack.c.l.bf16 %v10094_v34  ;;  %v7701_v60 = vunpack.c.l.bf16 %v10070_v19  ;;  %v7703_v6 = vunpack.c.l.bf16 %v10082_v23 }
 0x8a4   : > { %v6141_v24 = vadd.f32 %v6132_v53, %v6066_v12  ;;  %v6068_v32 = vpop.f32.mrb[81].mxu1  ;;  %v6143_v25 = vadd.f32 %v6132_v53, %v6120_v17  ;;  %v6125_v26 = vadd.f32 %v6112_v21, %v5958_v9  ;;  %v8757_v27 = vpop.f32.mrb[71].mxu0  ;;  %6179 = vrot.lane.b32.xlu0 %v6169_v16, %s9266_s30  ;;  %v8438_v9 = vld [vmem:[%s10639_s4 + $0x48] sm:$0xff]  ;;  %v7700_v17 = vunpack.c.l.bf16 %v10079_v22 }
 0x8a5   : > { %v6142_v29 = vadd.f32 %v6132_v53, %v6068_v32  ;;  %v6070_v30 = vpop.f32.mrb[82].mxu1  ;;  %6181 = vrot.lane.b32.xlu1 %v6170_v42, %s9266_s30  ;;  %v9169_v16 = vpack.i.bf16 %v7702_v13, %v7701_v60  ;;  %v7705_v18 = vunpack.c.h.bf16 %v10079_v22  ;;  %v9184_v42 = vpack.i.bf16 %v7704_v15, %v7703_v6  ;;  %v9238_v27 = vld [vmem:[%s10638_s3 + $0x128] sm:$0xff]  }
 0x8a6   : > { %v6151_v31 = vmax.f32 %v6141_v24, 0.0  ;;  %v6146_v36 = vadd.f32 %v6137_v55, %v6070_v30  ;;  %v6153_v37 = vmax.f32 %v6143_v25, 0.0  ;;  %v6072_v39 = vpop.f32.mrb[83].mxu1  ;;  %v6148_v33 = vadd.f32 %v6137_v55, %v6125_v26 }
 0x8a7   : > { %v6152_v40 = vmax.f32 %v6142_v29, 0.0  ;;  %v6147_v28 = vadd.f32 %v6137_v55, %v6072_v39  ;;  %v9179_v20 = vpack.i.bf16 %v7705_v18, %v7700_v17  ;;  %v7709_v12 = vunpack.c.h.bf16 %v10094_v34 }
 0x8a8   : > { %v6156_v35 = vmax.f32 %v6146_v36, 0.0  ;;  %v6158_v44 = vmax.f32 %v6148_v33, 0.0  ;;  %v6161_v47 = vmul.f32 %v6151_v31, %v9479_v52  ;;  %v6163_v49 = vmul.f32 %v6153_v37, %v9761_v41 }
 0x8a9   : > { %v6157_v46 = vmax.f32 %v6147_v28, 0.0  ;;  %v6162_v53 = vmul.f32 %v6152_v40, %v9758_v43  ;;  %v7708_v19 = vunpack.c.h.bf16 %v10082_v23  ;;  %v9239_v28 = vld [vmem:[%s10638_s3 + $0x120] sm:$0xff]  }
 0x8aa   : > { %v6166_v48 = vmul.f32 %v6156_v35, %v9479_v52  ;;  %v6168_v51 = vmul.f32 %v6158_v44, %v9761_v41 }
 0x8ab   : > { %v6167_v54 = vmul.f32 %v6157_v46, %v9758_v43  ;;  %v9189_v21 = vpack.i.bf16 %v7709_v12, %v7708_v19  ;;  %v9243_v19 = vld [vmem:[%s10638_s3 + $0x148] sm:$0xff]  }
 0x8ac   : > { %v6171_v56 = vpack.c.bf16 %v6166_v48, %v6161_v47  ;;  %v6173_v57 = vpack.c.bf16 %v6168_v51, %v6163_v49 }
 0x8ad   : > { %v6172_v58 = vpack.c.bf16 %v6167_v54, %v6162_v53  ;;  %v9240_v53 = vld [vmem:[%s10638_s3 + $0x130] sm:$0xff]  }
 0x8ae   : > { %6183 = vrot.lane.b32.xlu0 %v6171_v56, %s9266_s30 }
 0x8af   : > { %6185 = vrot.lane.b32.xlu1 %v6172_v58, %s9266_s30 }
 0x8b2   : > { %6187 = vrot.lane.b32.xlu0 %v6173_v57, %s9266_s30 }
 0x916   : > { %v6180_v55 = vpop.permute.xlu0 %6179 }
 0x917   : > { %6198 = vst.msk [vmem:[#allocation2] sm:$0xff] %vm1431_vm15, %v6180_v55  ;;  %v6182_v61 = vpop.permute.xlu1 %6181 }
 0x918   : > { %v10323_v59 = vsel %vm1425_vm12, %v6180_v55, %v6182_v61 }
 0x91e   : > { %v10325_v62 = vld [vmem:[#allocation2] sm:$0xff] }
 0x91f   : > { %6224 = vrot.lane.b32.xlu1 %v10325_v62, %s9258_s11 }
 0x920   : > { %v6184_v63 = vpop.permute.xlu0 %6183 }
 0x921   : > { %v10330_v45 = vsel %vm1425_vm12, %v6182_v61, %v6184_v63  ;;  %v6186_v2 = vpop.permute.xlu1 %6185 }
 0x922   : > { %6200 = vst [vmem:[#allocation2 + $0x10] sm:$0xff] %v10330_v45  ;;  %v10334_v3 = vsel %vm1425_vm12, %v6184_v63, %v6186_v2  ;;  %6228 = vrot.lane.b32.xlu0 %v10330_v45, %s9258_s11 }
 0x923   : > { %6226 = vrot.lane.b32.xlu1 %v10323_v59, %s9258_s11 }
 0x924   : > { %v6188_v5 = vpop.permute.xlu0 %6187 }
 0x925   : > { %v6192_v50 = vsel %vm1425_vm12, %v6186_v2, %v6188_v5  ;;  %v9241_v2 = vld [vmem:[%s10638_s3 + $0x138] sm:$0xff]  }
 0x926   : > { %6202 = vst.msk [vmem:[#allocation2 + $0x20] sm:$0xff] %vm3030_vm13, %v6192_v50  ;;  %6230 = vrot.lane.b32.xlu0 %v10334_v3, %s9258_s11 }
 0x92a   : > { %6518 = vrot.lane.b32.xlu0 %v10323_v59, %s9259_s12 }
 0x92d   : > { %v10346_v8 = vld [vmem:[#allocation2 + $0x20] sm:$0xff] }
 0x92e   : > { %6232 = vrot.lane.b32.xlu1 %v10346_v8, %s9258_s11  ;;  %6516 = vrot.lane.b32.xlu0 %v10325_v62, %s9259_s12 }
 0x932   : > { %6520 = vrot.lane.b32.xlu1 %v10330_v45, %s9259_s12  ;;  %6524 = vrot.lane.b32.xlu0 %v10346_v8, %s9259_s12 }
 0x936   : > { %6522 = vrot.lane.b32.xlu1 %v10334_v3, %s9259_s12  ;;  %6691 = vrot.lane.b32.xlu0 %v10346_v8, %s9260_s13 }
 0x93a   : > { %6689 = vrot.lane.b32.xlu1 %v10334_v3, %s9260_s13  ;;  %6687 = vrot.lane.b32.xlu0 %v10330_v45, %s9260_s13 }
 0x93e   : > { %6685 = vrot.lane.b32.xlu1 %v10323_v59, %s9260_s13  ;;  %6852 = vrot.lane.b32.xlu0 %v10323_v59, %s9261_s14 }
 0x942   : > { %6683 = vrot.lane.b32.xlu1 %v10325_v62, %s9260_s13  ;;  %6850 = vrot.lane.b32.xlu0 %v10325_v62, %s9261_s14 }
 0x946   : > { %6854 = vrot.lane.b32.xlu1 %v10330_v45, %s9261_s14  ;;  %6858 = vrot.lane.b32.xlu0 %v10346_v8, %s9261_s14 }
 0x94a   : > { %6856 = vrot.lane.b32.xlu1 %v10334_v3, %s9261_s14  ;;  %7025 = vrot.lane.b32.xlu0 %v10346_v8, %s9262_s15 }
 0x94e   : > { %7023 = vrot.lane.b32.xlu1 %v10334_v3, %s9262_s15  ;;  %7021 = vrot.lane.b32.xlu0 %v10330_v45, %s9262_s15 }
 0x952   : > { %7019 = vrot.lane.b32.xlu1 %v10323_v59, %s9262_s15  ;;  %7186 = vrot.lane.b32.xlu0 %v10323_v59, %s9263_s16 }
 0x956   : > { %7017 = vrot.lane.b32.xlu1 %v10325_v62, %s9262_s15  ;;  %7184 = vrot.lane.b32.xlu0 %v10325_v62, %s9263_s16 }
 0x95a   : > { %7188 = vrot.lane.b32.xlu1 %v10330_v45, %s9263_s16  ;;  %7192 = vrot.lane.b32.xlu0 %v10346_v8, %s9263_s16 }
 0x95e   : > { %7190 = vrot.lane.b32.xlu1 %v10334_v3, %s9263_s16  ;;  %7359 = vrot.lane.b32.xlu0 %v10346_v8, %s9264_s17 }
 0x962   : > { %7357 = vrot.lane.b32.xlu1 %v10334_v3, %s9264_s17  ;;  %7355 = vrot.lane.b32.xlu0 %v10330_v45, %s9264_s17 }
 0x966   : > { %7353 = vrot.lane.b32.xlu1 %v10323_v59, %s9264_s17  ;;  %7520 = vrot.lane.b32.xlu0 %v10323_v59, %s9265_s18 }
 0x96a   : > { %7351 = vrot.lane.b32.xlu1 %v10325_v62, %s9264_s17  ;;  %7518 = vrot.lane.b32.xlu0 %v10325_v62, %s9265_s18 }
 0x96e   : > { %7522 = vrot.lane.b32.xlu1 %v10330_v45, %s9265_s18  ;;  %7526 = vrot.lane.b32.xlu0 %v10346_v8, %s9265_s18 }
 0x972   : > { %7524 = vrot.lane.b32.xlu1 %v10334_v3, %s9265_s18  ;;  %7687 = vperm.xlu0 %9142, %v8438_v9  }
 0x976   : > { %7682 = vperm.xlu1 %9143, %v8437_v38   ;;  %9175 = vrot.lane.b32.xlu0 %v9174_v14, %s9261_s14 }
 0x97a   : > { %9170 = vrot.lane.b32.xlu1 %v9169_v16, %s9261_s14  ;;  %9185 = vrot.lane.b32.xlu0 %v9184_v42, %s9261_s14 }
 0x97e   : > { %9180 = vrot.lane.b32.xlu1 %v9179_v20, %s9261_s14 }
 0x982   : > { %9190 = vrot.lane.b32.xlu1 %v9189_v21, %s9261_s14  ;;  %s8447_s14 = sshll.u32 %s10645_s28, 4 }
 0x983   : > { %s333_s20 = scalar_lea.vmem %s10642_s7, %s8447_s14 }
 0x991   : > { %v6225_v24 = vpop.permute.xlu1 %6224 }
 0x994   : > { %v6229_v32 = vpop.permute.xlu0 %6228 }
 0x995   : > { %v6227_v25 = vpop.permute.xlu1 %6226 }
 0x996   : > { %v6234_v22 = vsel %vm380_vm1, %v6225_v24, %v6227_v25  ;;  %v6235_v26 = vsel %vm380_vm1, %v6227_v25, %v6229_v32 }
 0x997   : > { %6246 = vmatprep.subr.bf16.mxu1 %v6235_v26 }
 0x998   : > { %6247 = vmatpush1.bf16.msra.mxu1 %v6234_v22  ;;  %v6231_v34 = vpop.permute.xlu0 %6230 }
 0x999   : > { %8758 = vmatprep.subr.bf16.mxu1 %v9255_v0  ;;  %v6236_v31 = vsel %vm380_vm1, %v6229_v32, %v6231_v34 }
 0x99b   : > { %8388 = vmatmul.mubr.msk.bf16.vlgmr.msra.gmra.mrb[100].mxu1 %vm386_vm2, %v9238_v27 }
 0x99c   : > { %v6519_v23 = vpop.permute.xlu0 %6518  ;;  %8760 = vmatprep.mubr.msk.bf16.mxu1 %vm9256_vm0, %v9255_v0 }
 0x9a0   : > { %v6233_v29 = vpop.permute.xlu1 %6232  ;;  %v6517_v36 = vpop.permute.xlu0 %6516 }
 0x9a1   : > { %v6237_v30 = vsel %vm380_vm1, %v6231_v34, %v6233_v29  ;;  %8759 = vmatpush3.bf16.msra.mxu1 %v6233_v29  ;;  %v6526_v35 = vsel %vm583_vm3, %v6517_v36, %v6519_v23  ;;  %vm8028_vm1 = vcmask 506880  }
 0x9a2   : > { %6289 = vmatprep.subr.bf16.mxu0 %v6237_v30  ;;  %6381 = vmatprep.subr.bf16.mxu1 %v10323_v59 }
 0x9a3   : > { %6290 = vmatpush1.bf16.msra.mxu0 %v6236_v31 }
 0x9a4   : > { %v6521_v37 = vpop.permute.xlu1 %6520  ;;  %6424 = vmatprep.subr.bf16.mxu0 %v10334_v3  ;;  %8761 = vmatmul.mubr.msk.bf16.vlgmr.msra.gmra.mrb[104].mxu1 %vm386_vm2, %v9238_v27  ;;  %v6525_v40 = vpop.permute.xlu0 %6524 }
 0x9a5   : > { %6382 = vmatpush1.bf16.msra.mxu1 %v10325_v62  ;;  %v6527_v39 = vsel %vm583_vm3, %v6519_v23, %v6521_v37  ;;  %6413 = vmatprep.mubr.bf16.mxu1 %v9257_v1 }
 0x9a6   : > { %8389 = vmatmul.mubr.msk.bf16.vlgmr.msra.gmra.mrb[72].mxu0 %vm386_vm2, %v9238_v27  ;;  %6538 = vmatprep.subr.bf16.mxu1 %v6527_v39  ;;  %v9244_v27 = vld [vmem:[%s10638_s3 + $0x150] sm:$0xff]  }
 0x9a7   : > { %6425 = vmatpush1.bf16.msra.mxu0 %v10330_v45  ;;  %6456 = vmatprep.mubr.bf16.mxu0 %v9257_v1 }
 0x9a8   : > { %v6523_v33 = vpop.permute.xlu1 %6522  ;;  %8764 = vmatprep.subr.bf16.mxu0 %v9255_v0  ;;  %v6692_v46 = vpop.permute.xlu0 %6691 }
 0x9a9   : > { %v6529_v48 = vsel %vm583_vm3, %v6523_v33, %v6525_v40  ;;  %v6528_v56 = vsel %vm583_vm3, %v6521_v37, %v6523_v33  ;;  %vm8052_vm3 = vcmask 7168  }
 0x9ac   : > { %v6690_v44 = vpop.permute.xlu1 %6689  ;;  %8392 = vmatmul.mubr.msk.bf16.vlgmr.msra.gmra.mrb[100].mxu1 %vm386_vm2, %v9239_v28  ;;  %v6688_v51 = vpop.permute.xlu0 %6687 }
 0x9ad   : > { %6539 = vmatpush1.bf16.msra.mxu1 %v6526_v35  ;;  %6570 = vmatprep.mubr.bf16.mxu1 %v9257_v1  ;;  %v6696_v55 = vsel %vm696_vm4, %v6690_v44, %v6692_v46  ;;  %v6695_v45 = vsel %vm696_vm4, %v6688_v51, %v6690_v44 }
 0x9ae   : > { %8770 = vmatprep.subr.bf16.mxu1 %v9255_v0 }
 0x9b0   : > { %v6686_v47 = vpop.permute.xlu1 %6685  ;;  %v6853_v58 = vpop.permute.xlu0 %6852 }
 0x9b1   : > { %v6694_v54 = vsel %vm696_vm4, %v6686_v47, %v6688_v51 }
 0x9b2   : > { %8393 = vmatmul.mubr.msk.bf16.vlgmr.msra.gmra.mrb[72].mxu0 %vm386_vm2, %v9239_v28 }
 0x9b3   : > { %8765 = vmatpush3.bf16.msra.mxu0 %v10346_v8  ;;  %8766 = vmatprep.mubr.msk.bf16.mxu0 %vm9256_vm0, %v9255_v0 }
 0x9b4   : > { %6581 = vmatprep.subr.bf16.mxu0 %v6529_v48  ;;  %v6684_v49 = vpop.permute.xlu1 %6683  ;;  %v6851_v62 = vpop.permute.xlu0 %6850 }
 0x9b5   : > { %v6693_v61 = vsel %vm696_vm4, %v6684_v49, %v6686_v47  ;;  %v6860_v50 = vsel %vm809_vm5, %v6851_v62, %v6853_v58  ;;  %v9246_v49 = vld [vmem:[%s10638_s3 + $0x160] sm:$0xff]   ;;  %vm8054_vm4 = vcmask 1024  }
 0x9b8   : > { %8398 = vmatmul.mubr.msk.bf16.vlgmr.msra.gmra.mrb[100].mxu1 %vm386_vm2, %v9240_v53  ;;  %v6855_v57 = vpop.permute.xlu1 %6854  ;;  %v6859_v5 = vpop.permute.xlu0 %6858 }
 0x9b9   : > { %8771 = vmatpush3.bf16.msra.mxu1 %v6525_v40  ;;  %8772 = vmatprep.mubr.msk.bf16.mxu1 %vm9256_vm0, %v9255_v0  ;;  %v6861_v63 = vsel %vm809_vm5, %v6853_v58, %v6855_v57 }
 0x9ba   : > { %8767 = vmatmul.mubr.msk.bf16.vlgmr.msra.gmra.mrb[76].mxu0 %vm386_vm2, %v9239_v28  ;;  %6705 = vmatprep.subr.bf16.mxu1 %v6694_v54  ;;  %v9245_v28 = vld [vmem:[%s10638_s3 + $0x158] sm:$0xff]  }
 0x9bb   : > { %6582 = vmatpush1.bf16.msra.mxu0 %v6528_v56  ;;  %6613 = vmatprep.mubr.bf16.mxu0 %v9257_v1 }
 0x9bc   : > { %6748 = vmatprep.subr.bf16.mxu0 %v6696_v55  ;;  %v6857_v59 = vpop.permute.xlu1 %6856  ;;  %v7026_v9 = vpop.permute.xlu0 %7025 }
 0x9bd   : > { %v6863_v10 = vsel %vm809_vm5, %v6857_v59, %v6859_v5  ;;  %v6862_v15 = vsel %vm809_vm5, %v6855_v57, %v6857_v59 }
 0x9c0   : > { %8773 = vmatmul.mubr.msk.bf16.vlgmr.msra.gmra.mrb[108].mxu1 %vm386_vm2, %v9240_v53  ;;  %v7024_v3 = vpop.permute.xlu1 %7023  ;;  %v7022_v13 = vpop.permute.xlu0 %7021 }
 0x9c1   : > { %6706 = vmatpush1.bf16.msra.mxu1 %v6693_v61  ;;  %6737 = vmatprep.mubr.bf16.mxu1 %v9257_v1  ;;  %v7030_v60 = vsel %vm922_vm6, %v7024_v3, %v7026_v9  ;;  %v7029_v42 = vsel %vm922_vm6, %v7022_v13, %v7024_v3 }
 0x9c2   : > { %8399 = vmatmul.mubr.msk.bf16.vlgmr.msra.gmra.mrb[72].mxu0 %vm386_vm2, %v9240_v53  ;;  %6872 = vmatprep.subr.bf16.mxu1 %v6861_v63 }
 0x9c3   : > { %6749 = vmatpush1.bf16.msra.mxu0 %v6695_v45  ;;  %6780 = vmatprep.mubr.bf16.mxu0 %v9257_v1 }
 0x9c4   : > { %8776 = vmatprep.subr.bf16.mxu0 %v9255_v0  ;;  %v7020_v8 = vpop.permute.xlu1 %7019  ;;  %v7187_v16 = vpop.permute.xlu0 %7186 }
 0x9c5   : > { %v7028_v14 = vsel %vm922_vm6, %v7020_v8, %v7022_v13 }
 0x9c8   : > { %8404 = vmatmul.mubr.msk.bf16.vlgmr.msra.gmra.mrb[100].mxu1 %vm386_vm2, %v9241_v2  ;;  %v7018_v38 = vpop.permute.xlu1 %7017  ;;  %v7185_v12 = vpop.permute.xlu0 %7184 }
 0x9c9   : > { %6873 = vmatpush1.bf16.msra.mxu1 %v6860_v50  ;;  %6904 = vmatprep.mubr.bf16.mxu1 %v9257_v1  ;;  %v7027_v17 = vsel %vm922_vm6, %v7018_v38, %v7020_v8  ;;  %v7194_v21 = vsel %vm1035_vm7, %v7185_v12, %v7187_v16 }
 0x9ca   : > { %8782 = vmatprep.subr.bf16.mxu1 %v9255_v0 }
 0x9cc   : > { %v7189_v6 = vpop.permute.xlu1 %7188  ;;  %v7193_v32 = vpop.permute.xlu0 %7192 }
 0x9cd   : > { %v7195_v18 = vsel %vm1035_vm7, %v7187_v16, %v7189_v6 }
 0x9ce   : > { %8405 = vmatmul.mubr.msk.bf16.vlgmr.msra.gmra.mrb[72].mxu0 %vm386_vm2, %v9241_v2 }
 0x9cf   : > { %8777 = vmatpush3.bf16.msra.mxu0 %v6692_v46  ;;  %8778 = vmatprep.mubr.msk.bf16.mxu0 %vm9256_vm0, %v9255_v0 }
 0x9d0   : > { %6915 = vmatprep.subr.bf16.mxu0 %v6863_v10  ;;  %v7191_v20 = vpop.permute.xlu1 %7190  ;;  %v7360_v22 = vpop.permute.xlu0 %7359 }
 0x9d1   : > { %v7197_v26 = vsel %vm1035_vm7, %v7191_v20, %v7193_v32  ;;  %v7196_v30 = vsel %vm1035_vm7, %v7189_v6, %v7191_v20 }
 0x9d4   : > { %8410 = vmatmul.mubr.msk.bf16.vlgmr.msra.gmra.mrb[100].mxu1 %vm386_vm2, %v9242_v11  ;;  %v7358_v24 = vpop.permute.xlu1 %7357  ;;  %v7356_v23 = vpop.permute.xlu0 %7355 }
 0x9d5   : > { %8783 = vmatpush3.bf16.msra.mxu1 %v6859_v5  ;;  %8784 = vmatprep.mubr.msk.bf16.mxu1 %vm9256_vm0, %v9255_v0  ;;  %v7364_v31 = vsel %vm1148_vm8, %v7358_v24, %v7360_v22  ;;  %v7363_v40 = vsel %vm1148_vm8, %v7356_v23, %v7358_v24 }
 0x9d6   : > { %8779 = vmatmul.mubr.msk.bf16.vlgmr.msra.gmra.mrb[80].mxu0 %vm386_vm2, %v9241_v2  ;;  %7039 = vmatprep.subr.bf16.mxu1 %v7028_v14 }
 0x9d7   : > { %6916 = vmatpush1.bf16.msra.mxu0 %v6862_v15  ;;  %6947 = vmatprep.mubr.bf16.mxu0 %v9257_v1 }
 0x9d8   : > { %7082 = vmatprep.subr.bf16.mxu0 %v7030_v60  ;;  %v7354_v25 = vpop.permute.xlu1 %7353  ;;  %v7521_v37 = vpop.permute.xlu0 %7520 }
 0x9d9   : > { %v7362_v29 = vsel %vm1148_vm8, %v7354_v25, %v7356_v23 }
 0x9dc   : > { %8785 = vmatmul.mubr.msk.bf16.vlgmr.msra.gmra.mrb[112].mxu1 %vm386_vm2, %v9242_v11  ;;  %v7352_v34 = vpop.permute.xlu1 %7351  ;;  %v7519_v35 = vpop.permute.xlu0 %7518 }
 0x9dd   : > { %7040 = vmatpush1.bf16.msra.mxu1 %v7027_v17  ;;  %7071 = vmatprep.mubr.bf16.mxu1 %v9257_v1  ;;  %v7361_v39 = vsel %vm1148_vm8, %v7352_v34, %v7354_v25  ;;  %v7528_v44 = vsel %vm1261_vm9, %v7519_v35, %v7521_v37 }
 0x9de   : > { %8411 = vmatmul.mubr.msk.bf16.vlgmr.msra.gmra.mrb[72].mxu0 %vm386_vm2, %v9242_v11  ;;  %7206 = vmatprep.subr.bf16.mxu1 %v7195_v18 }
 0x9df   : > { %7083 = vmatpush1.bf16.msra.mxu0 %v7029_v42  ;;  %7114 = vmatprep.mubr.bf16.mxu0 %v9257_v1 }
 0x9e0   : > { %8788 = vmatprep.subr.bf16.mxu0 %v9255_v0  ;;  %v7523_v36 = vpop.permute.xlu1 %7522  ;;  %v7527_v47 = vpop.permute.xlu0 %7526 }
 0x9e1   : > { %v7529_v33 = vsel %vm1261_vm9, %v7521_v37, %v7523_v36 }
 0x9e4   : > { %8416 = vmatmul.mubr.msk.bf16.vlgmr.msra.gmra.mrb[100].mxu1 %vm386_vm2, %v9243_v19  ;;  %v7525_v46 = vpop.permute.xlu1 %7524 }
 0x9e5   : > { %7207 = vmatpush1.bf16.msra.mxu1 %v7194_v21  ;;  %7238 = vmatprep.mubr.bf16.mxu1 %v9257_v1  ;;  %v7531_v48 = vsel %vm1261_vm9, %v7525_v46, %v7527_v47  ;;  %v7530_v51 = vsel %vm1261_vm9, %v7523_v36, %v7525_v46 }
 0x9e6   : > { %8794 = vmatprep.subr.bf16.mxu1 %v9255_v0 }
 0x9ea   : > { %8417 = vmatmul.mubr.msk.bf16.vlgmr.msra.gmra.mrb[72].mxu0 %vm386_vm2, %v9243_v19 }
 0x9eb   : > { %8789 = vmatpush3.bf16.msra.mxu0 %v7026_v9  ;;  %8790 = vmatprep.mubr.msk.bf16.mxu0 %vm9256_vm0, %v9255_v0 }
 0x9ec   : > { %7249 = vmatprep.subr.bf16.mxu0 %v7197_v26 }
 0x9f0   : > { %8422 = vmatmul.mubr.msk.bf16.vlgmr.msra.gmra.mrb[100].mxu1 %vm386_vm2, %v9244_v27 }
 0x9f1   : > { %8795 = vmatpush3.bf16.msra.mxu1 %v7193_v32  ;;  %8796 = vmatprep.mubr.msk.bf16.mxu1 %vm9256_vm0, %v9255_v0 }
 0x9f2   : > { %8791 = vmatmul.mubr.msk.bf16.vlgmr.msra.gmra.mrb[84].mxu0 %vm386_vm2, %v9243_v19  ;;  %7373 = vmatprep.subr.bf16.mxu1 %v7362_v29  ;;  %v10575_v29 = vpop.permute.xlu0 %7687 }
 0x9f3   : > { %7250 = vmatpush1.bf16.msra.mxu0 %v7196_v30  ;;  %7281 = vmatprep.mubr.bf16.mxu0 %v9257_v1 }
 0x9f4   : > { %7416 = vmatprep.subr.bf16.mxu0 %v7364_v31 }
 0x9f5   : > { %v7683_v26 = vpop.permute.xlu1 %7682 }
 0x9f6   : > { %v10577_v36 = vpop.permute.xlu0 %9175 }
 0x9f7   : > { %v9177_v35 = vunpack.i.l.bf16 %v10577_v36 }
 0x9f8   : > { %8797 = vmatmul.mubr.msk.bf16.vlgmr.msra.gmra.mrb[116].mxu1 %vm386_vm2, %v9244_v27 }
 0x9f9   : > { %7374 = vmatpush1.bf16.msra.mxu1 %v7361_v39  ;;  %7405 = vmatprep.mubr.bf16.mxu1 %v9257_v1  ;;  %v9171_v23 = vpop.permute.xlu1 %9170 }
 0x9fa   : > { %8423 = vmatmul.mubr.msk.bf16.vlgmr.msra.gmra.mrb[72].mxu0 %vm386_vm2, %v9244_v27  ;;  %7540 = vmatprep.subr.bf16.mxu1 %v7529_v33  ;;  %v9173_v37 = vunpack.i.h.bf16 %v9171_v23  ;;  %v9172_v39 = vunpack.i.l.bf16 %v9171_v23 }
 0x9fb   : > { %7417 = vmatpush1.bf16.msra.mxu0 %v7363_v40  ;;  %7448 = vmatprep.mubr.bf16.mxu0 %v9257_v1 }
 0x9fc   : > { %8800 = vmatprep.subr.bf16.mxu0 %v9255_v0 }
 0x9fd   : > { %v9181_v30 = vpop.permute.xlu1 %9180 }
 0x9fe   : > { %v9182_v31 = vunpack.i.l.bf16 %v9181_v30  ;;  %v9183_v33 = vunpack.i.h.bf16 %v9181_v30 }
 0xa00   : > { %8428 = vmatmul.mubr.msk.bf16.vlgmr.msra.gmra.mrb[100].mxu1 %vm386_vm2, %v9245_v28 }
 0xa01   : > { %7541 = vmatpush1.bf16.msra.mxu1 %v7528_v44  ;;  %7572 = vmatprep.mubr.bf16.mxu1 %v9257_v1 }
 0xa02   : > { %8806 = vmatprep.subr.bf16.mxu1 %v9255_v0 }
 0xa06   : > { %8429 = vmatmul.mubr.msk.bf16.vlgmr.msra.gmra.mrb[72].mxu0 %vm386_vm2, %v9245_v28 }
 0xa07   : > { %8801 = vmatpush3.bf16.msra.mxu0 %v7360_v22  ;;  %8802 = vmatprep.mubr.msk.bf16.mxu0 %vm9256_vm0, %v9255_v0 }
 0xa08   : > { %7583 = vmatprep.subr.bf16.mxu0 %v7531_v48  ;;  %v7740_v48 = vsel %vm809_vm5, %v9182_v31, %v9172_v39 }
 0xa0c   : > { %8434 = vmatmul.mubr.msk.bf16.vlgmr.msra.gmra.mrb[100].mxu1 %vm386_vm2, %v9246_v49 }
 0xa0d   : > { %8807 = vmatpush3.bf16.msra.mxu1 %v7527_v47  ;;  %8808 = vmatprep.mubr.msk.bf16.mxu1 %vm9256_vm0, %v9255_v0  ;;  %vm8033_vm0 = vcmask 1041408  }
 0xa0e   : > { %8803 = vmatmul.mubr.msk.bf16.vlgmr.msra.gmra.mrb[88].mxu0 %vm386_vm2, %v9245_v28  ;;  %v9178_v28 = vunpack.i.h.bf16 %v10577_v36 }
 0xa0f   : > { %7584 = vmatpush1.bf16.msra.mxu0 %v7530_v51  ;;  %7615 = vmatprep.mubr.bf16.mxu0 %v9257_v1 }
 0xa14   : > { %8809 = vmatmul.mubr.msk.bf16.vlgmr.msra.gmra.mrb[120].mxu1 %vm386_vm2, %v9246_v49 }
 0xa15   : > { %7937 = vmatprep.mubr.f32.mxu1 %v9255_v0 }
 0xa16   : > { %8435 = vmatmul.mubr.msk.bf16.vlgmr.msra.gmra.mrb[72].mxu0 %vm386_vm2, %v9246_v49 }
 0xa17   : > { %7860 = vmatprep.mubr.f32.mxu0 %v9255_v0 }
 0xa77   : > { %v6366_v53 = vpop.f32.mrb[104].mxu1 }
 0xa78   : > { %v8762_v54 = vpop.f32.mrb[105].mxu1 }
 0xa79   : > { %v6369_v56 = vpop.f32.mrb[106].mxu1 }
 0xa7a   : > { %v8763_v57 = vpop.f32.mrb[107].mxu1 }
 0xa7b   : > { %v7741_v57 = vsel %vm809_vm5, %v9172_v39, %v9173_v37 }
 0xa8d   : > { %v6501_v58 = vpop.f32.mrb[76].mxu0 }
 0xa8e   : > { %v6502_v55 = vadd.f32 %v6501_v58, %v6366_v53  ;;  %v8768_v61 = vpop.f32.mrb[77].mxu0 }
 0xa8f   : > { %v6504_v59 = vpop.f32.mrb[78].mxu0 }
 0xa90   : > { %v6505_v62 = vadd.f32 %v6504_v59, %v6369_v56  ;;  %v8769_v63 = vpop.f32.mrb[79].mxu0 }
 0xa93   : > { %v6658_v45 = vpop.f32.mrb[108].mxu1 }
 0xa94   : > { %v6669_v1 = vadd.f32 %v6658_v45, %v6502_v55  ;;  %v8774_v2 = vpop.f32.mrb[109].mxu1  ;;  %v9186_v45 = vpop.permute.xlu0 %9185 }
 0xa95   : > { %v6661_v3 = vpop.f32.mrb[110].mxu1 }
 0xa96   : > { %v6674_v5 = vadd.f32 %v6661_v3, %v6505_v62  ;;  %v8775_v50 = vpop.f32.mrb[111].mxu1  ;;  %v7744_v62 = vsel %vm809_vm5, %v9183_v33, %v9177_v35 }
 0xa97   : > { %v7745_v50 = vsel %vm809_vm5, %v9177_v35, %v9178_v28 }
 0xaa9   : > { %v6825_v8 = vpop.f32.mrb[80].mxu0 }
 0xaaa   : > { %v6836_v9 = vadd.f32 %v6825_v8, %v6669_v1  ;;  %v8780_v10 = vpop.f32.mrb[81].mxu0 }
 0xaab   : > { %v6828_v11 = vpop.f32.mrb[82].mxu0  ;;  %v9191_v10 = vpop.permute.xlu1 %9190 }
 0xaac   : > { %v6841_v38 = vadd.f32 %v6828_v11, %v6674_v5  ;;  %v8781_v13 = vpop.f32.mrb[83].mxu0 }
 0xaad   : > { %v9187_v13 = vunpack.i.l.bf16 %v9186_v45 }
 0xaaf   : > { %v6992_v14 = vpop.f32.mrb[112].mxu1  ;;  %v7742_v23 = vsel %vm809_vm5, %v9173_v37, %v9187_v13 }
 0xab0   : > { %v7003_v15 = vadd.f32 %v6992_v14, %v6836_v9  ;;  %v8786_v60 = vpop.f32.mrb[113].mxu1 }
 0xab1   : > { %v6995_v6 = vpop.f32.mrb[114].mxu1 }
 0xab2   : > { %v7008_v16 = vadd.f32 %v6995_v6, %v6841_v38  ;;  %v8787_v17 = vpop.f32.mrb[115].mxu1  ;;  %v9188_v38 = vunpack.i.h.bf16 %v9186_v45 }
 0xac5   : > { %v7159_v18 = vpop.f32.mrb[84].mxu0 }
 0xac6   : > { %v7170_v42 = vadd.f32 %v7159_v18, %v7003_v15  ;;  %v8792_v20 = vpop.f32.mrb[85].mxu0  ;;  %v9193_v18 = vunpack.i.h.bf16 %v9191_v10 }
 0xac7   : > { %v7162_v12 = vpop.f32.mrb[86].mxu0 }
 0xac8   : > { %v7175_v19 = vadd.f32 %v7162_v12, %v7008_v16  ;;  %v8793_v21 = vpop.f32.mrb[87].mxu0 }
 0xacb   : > { %v7326_v24 = vpop.f32.mrb[116].mxu1 }
 0xacc   : > { %v7337_v32 = vadd.f32 %v7326_v24, %v7170_v42  ;;  %v8798_v25 = vpop.f32.mrb[117].mxu1  ;;  %v9192_v42 = vunpack.i.l.bf16 %v9191_v10 }
 0xacd   : > { %v7329_v22 = vpop.f32.mrb[118].mxu1 }
 0xace   : > { %v7342_v27 = vadd.f32 %v7329_v22, %v7175_v19  ;;  %v8799_v34 = vpop.f32.mrb[119].mxu1 }
 0xadf   : > { %v7574_v40 = vpop.f32.mrb[100].mxu1 }
 0xae0   : > { %v7690_v44 = vadd.f32 %v7683_v26, %v7574_v40  ;;  %v7576_v46 = vpop.f32.mrb[101].mxu1 }
 0xae1   : > { %v7493_v47 = vpop.f32.mrb[88].mxu0  ;;  %v7691_v49 = vadd.f32 %v7683_v26, %v7576_v46  ;;  %v7578_v51 = vpop.f32.mrb[102].mxu1  ;;  %v7746_v46 = vsel %vm809_vm5, %v9178_v28, %v9192_v42 }
 0xae2   : > { %v7504_v53 = vadd.f32 %v7493_v47, %v7337_v32  ;;  %v8804_v54 = vpop.f32.mrb[89].mxu0  ;;  %v7758_v56 = vadd.f32 %v7740_v48, %v7690_v44  ;;  %v7695_v58 = vadd.f32 %v10575_v29, %v7578_v51  ;;  %v7580_v55 = vpop.f32.mrb[103].mxu1  ;;  %v7747_v48 = vsel %vm809_vm5, %v9192_v42, %v9193_v18 }
 0xae3   : > { %v7496_v61 = vpop.f32.mrb[90].mxu0  ;;  %v7759_v59 = vadd.f32 %v7741_v57, %v7691_v49  ;;  %v7696_v63 = vadd.f32 %v10575_v29, %v7580_v55 }
 0xae4   : > { %v7509_v1 = vadd.f32 %v7496_v61, %v7342_v27  ;;  %v8805_v2 = vpop.f32.mrb[91].mxu0  ;;  %v7768_v3 = vmax.f32 %v7758_v56, 0.0  ;;  %v7763_v5 = vadd.f32 %v7744_v62, %v7695_v58  ;;  %v7789_v61 = vld [vmem:[%s10640_s5 + $0x8] sm:$0x3] }
 0xae5   : > { %v7769_v8 = vmax.f32 %v7759_v59, 0.0  ;;  %v7764_v9 = vadd.f32 %v7745_v50, %v7696_v63 }
 0xae6   : > { %v7773_v11 = vmax.f32 %v7763_v5, 0.0  ;;  %v7778_v60 = vmul.f32 %v7768_v3, %v9498_v4 }
 0xae7   : > { %v7774_v14 = vmax.f32 %v7764_v9, 0.0  ;;  %v7660_v15 = vpop.f32.mrb[120].mxu1  ;;  %v7779_v20 = vmul.f32 %v7769_v8, %v9501_v7 }
 0xae8   : > { %v7783_v6 = vmul.f32 %v7773_v11, %v9498_v4  ;;  %v7671_v16 = vadd.f32 %v7660_v15, %v7504_v53  ;;  %v8810_v17 = vpop.f32.mrb[121].mxu1  ;;  %v7743_v4 = vsel %vm809_vm5, %v9187_v13, %v9188_v38  ;;  %v7788_v53 = vld [vmem:[%s10640_s5] sm:$0xff] }
 0xae9   : > { %v7784_v12 = vmul.f32 %v7774_v14, %v9501_v7  ;;  %v7617_v19 = vpop.f32.mrb[72].mxu0  ;;  %v7663_v21 = vpop.f32.mrb[122].mxu1 }
 0xaea   : > { %v8821_v24 = vpack.c.bf16 %v7783_v6, %v7778_v60  ;;  %v7692_v32 = vadd.f32 %v7683_v26, %v7617_v19  ;;  %v7619_v25 = vpop.f32.mrb[73].mxu0  ;;  %v7694_v22 = vadd.f32 %v7683_v26, %v7671_v16  ;;  %v7676_v27 = vadd.f32 %v7663_v21, %v7509_v1  ;;  %v8811_v34 = vpop.f32.mrb[123].mxu1 }
 0xaeb   : > { %v7693_v30 = vadd.f32 %v7683_v26, %v7619_v25  ;;  %v7621_v31 = vpop.f32.mrb[74].mxu0  ;;  %v8819_v36 = vpack.c.bf16 %v7784_v12, %v7779_v20 }
 0xaec   : > { %v7760_v39 = vadd.f32 %v7742_v23, %v7692_v32  ;;  %v7697_v33 = vadd.f32 %v10575_v29, %v7621_v31  ;;  %v7623_v40 = vpop.f32.mrb[75].mxu0  ;;  %v7762_v7 = vadd.f32 %v9188_v38, %v7694_v22  ;;  %v7699_v35 = vadd.f32 %v10575_v29, %v7676_v27  ;;  %v8049_v27 = vld [vmem:[%s10641_s6 + $0x8] sm:$0x3] }
 0xaed   : > { %v7761_v44 = vadd.f32 %v7743_v4, %v7693_v30  ;;  %v7698_v47 = vadd.f32 %v10575_v29, %v7623_v40  ;;  %8820 = vmatprep.subr.bf16.mxu0 %v8819_v36 }
 0xaee   : > { %v7770_v26 = vmax.f32 %v7760_v39, 0.0  ;;  %v7765_v37 = vadd.f32 %v7746_v46, %v7697_v33  ;;  %v7772_v49 = vmax.f32 %v7762_v7, 0.0  ;;  %v7767_v51 = vadd.f32 %v9193_v18, %v7699_v35  ;;  %8822 = vmatpush1.bf16.msra.mxu0 %v8821_v24  ;;  %v8048_v24 = vld [vmem:[%s10641_s6] sm:$0xff] }
 0xaef   : > { %v7771_v54 = vmax.f32 %v7761_v44, 0.0  ;;  %v7766_v56 = vadd.f32 %v7747_v48, %v7698_v47 }
 0xaf0   : > { %v7775_v57 = vmax.f32 %v7765_v37, 0.0  ;;  %v7777_v58 = vmax.f32 %v7767_v51, 0.0  ;;  %v7780_v29 = vmul.f32 %v7770_v26, %v9479_v52  ;;  %v7782_v59 = vmul.f32 %v7772_v49, %v9761_v41 }
 0xaf1   : > { %v7776_v55 = vmax.f32 %v7766_v56, 0.0  ;;  %8439 = vmatmul.mubr.msk.f32.vlgmr.msra.gmra.mrb[92].mxu0 %vm386_vm2, %v7788_v53  ;;  %v7781_v63 = vmul.f32 %v7771_v54, %v9758_v43 }
 0xaf2   : > { %v7785_v28 = vmul.f32 %v7775_v57, %v9479_v52  ;;  %7866 = vmatprep.mubr.f32.mxu0 %v9255_v0  ;;  %v7787_v62 = vmul.f32 %v7777_v58, %v9761_v41 }
 0xaf3   : > { %v7786_v45 = vmul.f32 %v7776_v55, %v9758_v43 }
 0xaf4   : > { %v8825_v1 = vpack.c.bf16 %v7785_v28, %v7780_v29  ;;  %v8827_v2 = vpack.c.bf16 %v7787_v62, %v7782_v59 }
 0xaf5   : > { %v8823_v3 = vpack.c.bf16 %v7786_v45, %v7781_v63  ;;  %8440 = vmatmul.mubr.msk.f32.gmra.mrb[94].mxu0 %vm386_vm2, %v7789_v61 }
 0xaf6   : > { %8828 = vmatprep.subr.bf16.mxu0 %v8827_v2  ;;  %8816 = vmatprep.mubr.msk.f32.mxu0 %vm386_vm2, %v7788_v53 }
 0xaf7   : > { %8824 = vmatprep.subr.bf16.mxu1 %v8823_v3  ;;  %8830 = vmatpush3.bf16.msra.mxu0 %v8827_v2 }
 0xaf8   : > { %8826 = vmatpush1.bf16.msra.mxu1 %v8825_v1 }
 0xafa   : > { %8817 = vmatmul.mubr.msk.f32.vlgmr.msra.gmra.mrb[96].mxu0 %vm386_vm2, %v7789_v61 }
 0xafb   : > { %8441 = vmatmul.mubr.msk.f32.vlgmr.msra.gmra.mrb[124].mxu1 %vm386_vm2, %v7788_v53 }
 0xafc   : > { %7943 = vmatprep.mubr.f32.mxu1 %v9255_v0 }
 0xaff   : > { %8442 = vmatmul.mubr.msk.f32.gmra.mrb[126].mxu1 %vm386_vm2, %v7789_v61  ;;  %vm8041_vm2 = vcmask 500736  }
 0xbc4   : > { %v7862_v52 = vpop.f32.mrb[92].mxu0 }
 0xbc5   : > { %v7864_v43 = vpop.f32.mrb[93].mxu0 }
 0xbc6   : > { %v8025_v41 = vadd.f32 %v7864_v43, %v7862_v52 }
 0xbc8   : > { %v7868_v5 = vpop.f32.mrb[94].mxu0 }
 0xbc9   : > { %v8034_v50 = vsel %vm8033_vm0, %v7868_v5, 0.0  ;;  %v7870_v8 = vpop.f32.mrb[95].mxu0 }
 0xbca   : > { %v8035_v9 = vsel %vm8033_vm0, %v7870_v8, 0.0 }
 0xbcb   : > { %v8036_v10 = vadd.f32 %v8035_v9, %v8034_v50 }
 0xbcd   : > { %v8818_v11 = vpop.f32.mrb[96].mxu0 }
 0xbce   : > { %v7939_v38 = vpop.f32.mrb[124].mxu1  ;;  %v8016_v13 = vpop.f32.mrb[97].mxu0  ;;  %v8042_v12 = vsel %vm8041_vm2, %v8818_v11, 0.0 }
 0xbcf   : > { %v8026_v14 = vadd.f32 %v8025_v41, %v7939_v38  ;;  %v7941_v0 = vpop.f32.mrb[125].mxu1  ;;  %v8029_v15 = vsel %vm8028_vm1, %v8016_v13, 0.0 }
 0xbd1   : > { %v8027_v60 = vadd.f32 %v8026_v14, %v7941_v0 }
 0xbd2   : > { %v7945_v6 = vpop.f32.mrb[126].mxu1 }
 0xbd3   : > { %v8030_v16 = vadd.f32 %v8029_v15, %v8027_v60  ;;  %v8037_v17 = vsel %vm8033_vm0, %v7945_v6, 0.0  ;;  %v7947_v18 = vpop.f32.mrb[127].mxu1 }
 0xbd4   : > { %v8038_v42 = vadd.f32 %v8037_v17, %v8036_v10  ;;  %v8039_v20 = vsel %vm8033_vm0, %v7947_v18, 0.0 }
 0xbd5   : > { %8031 = vadd.xlane.f32.xlu0 %v8030_v16 }
 0xbd6   : > { %v8040_v19 = vadd.f32 %v8039_v20, %v8038_v42 }
 0xbd8   : > { %v8043_v21 = vadd.f32 %v8042_v12, %v8040_v19 }
 0xbda   : > { %8044 = vadd.xlane.f32.xlu1 %v8043_v21 }
 0xc62   : > { %v8032_v32 = vpop.xlane.xlu0 %8031 }
 0xc63   : > { %v8046_v25 = vmul.f32 0.001953125, %v8032_v32 }
 0xc65   : > { %v8050_v22 = vadd.f32 %v8048_v24, %v8046_v25 }
 0xc67   : > { %8053 = vst.msk [vmem:[%s333_s20] sm:$0xff] %vm8052_vm3, %v8050_v22  ;;  %v8045_v34 = vpop.xlane.xlu1 %8044 }
 0xc68   : > { %v8047_v23 = vmul.f32 0.001953125, %v8045_v34 }
 0xc6a   : > { %v8051_v30 = vadd.f32 %v8049_v27, %v8047_v23 }
 0xc6c   : > { %8055 = vst.msk [vmem:[%s333_s20 + $0x8] sm:$0x3] %vm8054_vm4, %v8051_v30 }
 0xc6d PF: > { %s19_s27 = sadd.s32 1, %s9253_s27  }
 0xc6e   : > { %p16_p4 = scmp.ge.s32.totalorder %s19_s27, 4  }
 0xc70   :  { %18 = sbr.rel (!%p16_p4) target bundleno = 1 (0x1), region = 141 }

</bundles_post_ra>
